<compile_context>
chip_gen: v7x
topology: tpu7x:2x2x1
jax: 0.10.0
libtpu: 0.0.40
codegen_flags: <defaults>
</compile_context>

<pallas_src>
import math
import functools

import jax
import jax.numpy as jnp
from jax.experimental import pallas as pl
from jax.experimental.pallas import tpu as pltpu


# --------------------------- VMEM budgeting helpers -------------------------

_MIB = 1024 * 1024


def _vmem_capacity_bytes():
    """Physical VMEM of the current chip (fallback: v7x's 64 MiB per core)."""
    try:
        return int(pltpu.get_tpu_info().vmem_capacity_bytes)
    except Exception:
        return 64 * _MIB


def _vmem_limit(need_bytes):
    """Scoped-VMEM limit derived from actual buffer sizes, with headroom."""
    cap = _vmem_capacity_bytes()
    hi = (cap * 3) // 4                 # leave DMA / compiler-scratch headroom
    return int(max(32 * _MIB, min(int(need_bytes * 1.5), hi)))


def _pick_batch_block(B, T, target_rows=256):
    """Batch elements folded per grid step so the matmul M dim ~ fills the MXU
    (256 rows on v6e/v7x) while keeping >= 2 grid steps when possible (v7x has
    two TensorCores).  At toy sizes the whole batch is folded into one step."""
    divisors = [d for d in range(1, B + 1) if B % d == 0]
    for d in divisors:
        if d * T >= target_rows and B // d >= 2:
            return d
    for d in divisors:
        if d * T >= target_rows:
            return d
    return B


# --------------------------- fused decoder layer ----------------------------

def _decoder_layer_kernel(
    x_ref, mem_ref,
    sa_wqkv_ref, sa_bqkv_ref, sa_wo_ref, sa_bo_ref,
    ln1_g_ref, ln1_b_ref,
    ca_wq_ref, ca_bq_ref, ca_wkv_ref, ca_bkv_ref, ca_wo_ref, ca_bo_ref,
    ln2_g_ref, ln2_b_ref,
    ff1_w_ref, ff1_b_ref, ff2_w_ref, ff2_b_ref,
    ln3_g_ref, ln3_b_ref,
    o_ref,
    *, nhead):
    """One post-LN TransformerDecoderLayer for a block of Bb batch elements.

    All projections run on (Bb*T, D) activations (B*T feeds the MXU M dim);
    attention is one head-batched einsum (no per-head loop, no concatenate);
    the causal mask is generated in-kernel.
    """
    Bb, T, D = x_ref.shape
    S = mem_ref.shape[1]
    dh = D // nhead
    scale = 1.0 / math.sqrt(dh)

    x_bf = x_ref[...].reshape(Bb * T, D)                     # bf16
    x_f32 = x_bf.astype(jnp.float32)
    mem_bf = mem_ref[...].reshape(Bb * S, D)                 # bf16

    def matmul(a_bf, w_ref, b_ref):
        # bf16 MXU operands, f32 accumulation, f32 bias add.
        y = jax.lax.dot_general(a_bf, w_ref[...],
                                (((1,), (0,)), ((), ())),
                                preferred_element_type=jnp.float32)
        return y + b_ref[...]

    def layer_norm(h, g_ref, b_ref):
        mu = jnp.mean(h, axis=-1, keepdims=True)
        var = jnp.mean(jnp.square(h - mu), axis=-1, keepdims=True)
        y = (h - mu) * jax.lax.rsqrt(var + 1e-5) * g_ref[...] + b_ref[...]
        return y, y.astype(jnp.bfloat16)     # f32 for residual, bf16 for MXU

    # Causal mask generated on the fly (VPU iota+cmp; no HBM/VMEM mask buffer).
    row = jax.lax.broadcasted_iota(jnp.int32, (T, T), 0)
    col = jax.lax.broadcasted_iota(jnp.int32, (T, T), 1)
    causal_ok = col <= row

    def split_heads(a_bf, Tx):
        # (Bb*Tx, D) -> (Bb*nhead, Tx, dh); heads become the batch dim.
        a = a_bf.reshape(Bb, Tx, nhead, dh)
        return jnp.transpose(a, (0, 2, 1, 3)).reshape(Bb * nhead, Tx, dh)

    def merge_heads(o_f32, Tq):
        # (Bb*nhead, Tq, dh) -> (Bb*Tq, D)
        o = o_f32.reshape(Bb, nhead, Tq, dh)
        return jnp.transpose(o, (0, 2, 1, 3)).reshape(Bb * Tq, D)

    def mha(q_f32, k_bf, v_bf, Tq, Tk, causal):
        # 1/sqrt(dh) folded into q once (instead of per-head score scaling).
        q3 = split_heads((q_f32 * scale).astype(jnp.bfloat16), Tq)
        k3 = split_heads(k_bf, Tk)
        v3 = split_heads(v_bf, Tk)
        s = jnp.einsum('bqd,bkd->bqk', q3, k3,
                       preferred_element_type=jnp.float32)   # (Bb*H, Tq, Tk)
        if causal:
            s = jnp.where(causal_ok[None], s, -1e30)
        s = s - jnp.max(s, axis=-1, keepdims=True)
        p = jnp.exp(s)
        p = p * pl.reciprocal(jnp.sum(p, axis=-1, keepdims=True), approx=True)
        o3 = jnp.einsum('bqk,bkd->bqd', p.astype(jnp.bfloat16), v3,
                        preferred_element_type=jnp.float32)
        return merge_heads(o3, Tq)

    # ---- self-attention (packed QKV) + residual + LN1 ----
    qkv = matmul(x_bf, sa_wqkv_ref, sa_bqkv_ref)             # (Bb*T, 3D) f32
    sa = mha(qkv[:, :D],
             qkv[:, D:2 * D].astype(jnp.bfloat16),
             qkv[:, 2 * D:].astype(jnp.bfloat16),
             T, T, causal=True)
    sa = matmul(sa.astype(jnp.bfloat16), sa_wo_ref, sa_bo_ref)
    x_f32, x_bf = layer_norm(x_f32 + sa, ln1_g_ref, ln1_b_ref)

    # ---- cross-attention (packed KV from memory) + residual + LN2 ----
    q = matmul(x_bf, ca_wq_ref, ca_bq_ref)                   # (Bb*T, D) f32
    kv = matmul(mem_bf, ca_wkv_ref, ca_bkv_ref)              # (Bb*S, 2D) f32
    ca = mha(q,
             kv[:, :D].astype(jnp.bfloat16),
             kv[:, D:].astype(jnp.bfloat16),
             T, S, causal=False)
    ca = matmul(ca.astype(jnp.bfloat16), ca_wo_ref, ca_bo_ref)
    x_f32, x_bf = layer_norm(x_f32 + ca, ln2_g_ref, ln2_b_ref)

    # ---- feed-forward (ReLU, intermediate stays in VMEM) + residual + LN3 ----
    hdn = jnp.maximum(matmul(x_bf, ff1_w_ref, ff1_b_ref), 0.0)   # (Bb*T, d_ff)
    y = matmul(hdn.astype(jnp.bfloat16), ff2_w_ref, ff2_b_ref)
    _, x_bf = layer_norm(x_f32 + y, ln3_g_ref, ln3_b_ref)

    o_ref[...] = x_bf.reshape(Bb, T, D).astype(o_ref.dtype)


def decoder_layer(x, mem_b, lp, *, nhead):
    """x: (B, T, D) bf16, mem_b: (B, S, D) bf16 -> (B, T, D) bf16."""
    B, T, D = x.shape
    S = mem_b.shape[1]
    bb = _pick_batch_block(B, T)
    grid = (B // bb,)

    weights = [
        lp["sa_wqkv"], lp["sa_bqkv"], lp["sa_wo"], lp["sa_bo"],
        lp["ln1_g"], lp["ln1_b"],
        lp["ca_wq"], lp["ca_bq"], lp["ca_wkv"], lp["ca_bkv"],
        lp["ca_wo"], lp["ca_bo"],
        lp["ln2_g"], lp["ln2_b"],
        lp["ff1_w"], lp["ff1_b"], lp["ff2_w"], lp["ff2_b"],
        lp["ln3_g"], lp["ln3_b"],
    ]
    weight_bytes = sum(int(a.size) * a.dtype.itemsize for a in weights)

    # Grid-constant weights never change between steps; if double-buffering
    # them would eat more than half of physical VMEM (the v7x 64 MiB case),
    # request a single buffer.  At small sizes keep the default buffering.
    single_buffer_weights = 2 * weight_bytes > _vmem_capacity_bytes() // 2
    w_pipeline = pl.Buffered(1) if single_buffer_weights else None

    def rep(a):  # replicated weight / bias / LN-param spec (DMA'd once)
        if w_pipeline is not None:
            return pl.BlockSpec(a.shape, lambda i: (0, 0),
                                pipeline_mode=w_pipeline)
        return pl.BlockSpec(a.shape, lambda i: (0, 0))

    in_specs = [
        pl.BlockSpec((bb, T, D), lambda i: (i, 0, 0)),
        pl.BlockSpec((bb, S, D), lambda i: (i, 0, 0)),
    ] + [rep(a) for a in weights]

    # VMEM budget from actual block sizes: weights + double-buffered bf16
    # activations/outputs + dominant f32 transients of the fused body.
    d_ff = lp["ff1_w"].shape[1]
    act_bytes = 2 * (bb * T * D + bb * S * D) * 2
    out_bytes = 2 * bb * T * D * 2
    transient = 4 * bb * (T * 3 * D + nhead * T * max(T, S) + T * d_ff)
    w_bufs = 1 if single_buffer_weights else 2
    need = w_bufs * weight_bytes + act_bytes + out_bytes + transient

    return pl.pallas_call(
        functools.partial(_decoder_layer_kernel, nhead=nhead),
        out_shape=jax.ShapeDtypeStruct((B, T, D), jnp.bfloat16),
        grid=grid,
        in_specs=in_specs,
        out_specs=pl.BlockSpec((bb, T, D), lambda i: (i, 0, 0)),
        compiler_params=pltpu.CompilerParams(
            dimension_semantics=("parallel",),
            vmem_limit_bytes=_vmem_limit(need)),
    )(x, mem_b, *weights)


# ---------------------------- logits projection -----------------------------

def _logits_kernel(x_ref, w_ref, b_ref, o_ref):
    o_ref[...] = jax.lax.dot_general(
        x_ref[...], w_ref[...], (((1,), (0,)), ((), ())),
        preferred_element_type=jnp.float32) + b_ref[...]


def logits_proj(x2d, w, b):
    """x2d: (B*T, D) bf16, w: (D, V) bf16, b: (1, V) f32 -> (B*T, V) f32.

    Tiled over (token rows, vocab) with bounded lane-dense tiles (tm <= 256,
    tn <= 512).  Trailing partial tiles are handled by Pallas block padding —
    no full-(D, V) weight-tile fallback.
    """
    M, D = x2d.shape
    V = w.shape[1]
    tm = M if M <= 256 else 256
    tn = V if V <= 512 else 512
    grid = (pl.cdiv(M, tm), pl.cdiv(V, tn))

    need = 2 * (tm * D * 2 + D * tn * 2 + tn * 4 + tm * tn * 4)
    return pl.pallas_call(
        _logits_kernel,
        out_shape=jax.ShapeDtypeStruct((M, V), jnp.float32),
        grid=grid,
        in_specs=[
            pl.BlockSpec((tm, D), lambda i, j: (i, 0)),
            pl.BlockSpec((D, tn), lambda i, j: (0, j)),
            pl.BlockSpec((1, tn), lambda i, j: (0, j)),
        ],
        out_specs=pl.BlockSpec((tm, tn), lambda i, j: (i, j)),
        compiler_params=pltpu.CompilerParams(
            dimension_semantics=("parallel", "parallel"),
            vmem_limit_bytes=_vmem_limit(need)),
    )(x2d, w, b)


# ------------------------------ model pieces --------------------------------

def positional_encoding(max_len, d_model):
    pos = jnp.arange(max_len, dtype=jnp.float32)[:, None]
    div = jnp.exp(jnp.arange(0, d_model, 2, dtype=jnp.float32)
                  * (-math.log(10000.0) / d_model))
    pe = jnp.zeros((max_len, d_model), jnp.float32)
    pe = pe.at[:, 0::2].set(jnp.sin(pos * div))
    pe = pe.at[:, 1::2].set(jnp.cos(pos * div))
    return pe


def init_params(key, vocab_size, d_model, num_layers, d_ff):
    # NOTE: parameter-for-parameter parity with a trained PyTorch checkpoint
    # would require splitting nn.MultiheadAttention's packed in_proj_weight;
    # here we init directly in the packed layout (same math).  Weights are
    # stored bf16 (MXU operands); biases / LN params stay f32.
    keys = iter(jax.random.split(key, 4 + num_layers * 8))

    def w(shape, scale=0.02):
        return (scale * jax.random.normal(next(keys), shape, jnp.float32)
                ).astype(jnp.bfloat16)

    def zeros2(m):
        return jnp.zeros((1, m), jnp.float32)

    def ones2(m):
        return jnp.ones((1, m), jnp.float32)

    layers = []
    for _ in range(num_layers):
        layers.append({
            "sa_wqkv": w((d_model, 3 * d_model)), "sa_bqkv": zeros2(3 * d_model),
            "sa_wo": w((d_model, d_model)),       "sa_bo": zeros2(d_model),
            "ln1_g": ones2(d_model),              "ln1_b": zeros2(d_model),
            "ca_wq": w((d_model, d_model)),       "ca_bq": zeros2(d_model),
            "ca_wkv": w((d_model, 2 * d_model)),  "ca_bkv": zeros2(2 * d_model),
            "ca_wo": w((d_model, d_model)),       "ca_bo": zeros2(d_model),
            "ln2_g": ones2(d_model),              "ln2_b": zeros2(d_model),
            "ff1_w": w((d_model, d_ff)),          "ff1_b": zeros2(d_ff),
            "ff2_w": w((d_ff, d_model)),          "ff2_b": zeros2(d_model),
            "ln3_g": ones2(d_model),              "ln3_b": zeros2(d_model),
        })
    return {
        "embed": 0.02 * jax.random.normal(next(keys), (vocab_size, d_model),
                                          jnp.float32),
        "fc_w": w((d_model, vocab_size)),
        "fc_b": zeros2(vocab_size),
        "layers": layers,
    }


@functools.partial(jax.jit, static_argnames=("d_model", "nhead"))
def simple_decoder_llm_forward(tgt, mem, pe, params, *, d_model, nhead):
    """tgt: (B, T) int32, mem: (S, B, D) f32 -> logits (B, T, V) f32."""
    B, T = tgt.shape
    V = params["fc_w"].shape[1]
    mem_b = jnp.transpose(mem, (1, 0, 2)).astype(jnp.bfloat16)   # (B, S, D)

    # embedding gather * sqrt(d_model) + positional encoding (plain JAX glue)
    x = params["embed"][tgt] * math.sqrt(d_model) + pe[None, :T, :]
    x = x.astype(jnp.bfloat16)          # activations cross HBM as bf16

    for lp in params["layers"]:
        x = decoder_layer(x, mem_b, lp, nhead=nhead)

    logits = logits_proj(x.reshape(B * T, d_model),
                         params["fc_w"], params["fc_b"])
    return logits.reshape(B, T, V)


# ---------------------------------- main -------------------------------------

if __name__ == "__main__":
    vocab_size = 64
    d_model = 32
    nhead = 4
    num_layers = 2
    d_ff = 64          # shrunk feed-forward width (PyTorch default is 2048)
    max_len = 50
    B, T, S = 2, 8, 8

    key = jax.random.PRNGKey(0)
    kp, kt, km = jax.random.split(key, 3)

    params = init_params(kp, vocab_size, d_model, num_layers, d_ff)
    tgt = jax.random.randint(kt, (B, T), 0, vocab_size, dtype=jnp.int32)
    mem = jax.random.normal(km, (S, B, d_model), jnp.float32)

    # Hoisted positional-encoding table (causal mask is generated in-kernel).
    pe = positional_encoding(max_len, d_model)

    out = simple_decoder_llm_forward(tgt, mem, pe, params,
                                     d_model=d_model, nhead=nhead)
    out = jax.block_until_ready(out)
    assert out.shape == (B, T, vocab_size)
    assert bool(jnp.all(jnp.isfinite(out)))
    print("KERNEL_OK")
</pallas_src>

<mosaic_0001>
module attributes {stable_mosaic.version = 11 : i64} {
  func.func @_logits_kernel(%arg0: i32, %arg1: i32, %arg2: memref<16x32xbf16, #tpu.memory_space<vmem>>, %arg3: memref<32x64xbf16, #tpu.memory_space<vmem>>, %arg4: memref<1x64xf32, #tpu.memory_space<vmem>>, %arg5: memref<16x64xf32, #tpu.memory_space<vmem>>) attributes {dimension_semantics = [#tpu.dimension_semantics<parallel>, #tpu.dimension_semantics<parallel>], iteration_bounds = array<i64: 1, 1>, scalar_prefetch = 0 : i64, scratch_operands = 0 : i64, tpu.core_type = #tpu.core_type<tc>, window_params = [{transform_indices = @transform_0, window_bounds = array<i64: 16, 32>}, {transform_indices = @transform_1, window_bounds = array<i64: 32, 64>}, {transform_indices = @transform_2, window_bounds = array<i64: 1, 64>}, {transform_indices = @transform_3, window_bounds = array<i64: 16, 64>}]} {
    %c0 = arith.constant 0 : index
    %c0_0 = arith.constant 0 : index
    %0 = vector.load %arg2[%c0, %c0_0] : memref<16x32xbf16, #tpu.memory_space<vmem>>, vector<16x32xbf16>
    %c0_1 = arith.constant 0 : index
    %c0_2 = arith.constant 0 : index
    %1 = vector.load %arg3[%c0_1, %c0_2] : memref<32x64xbf16, #tpu.memory_space<vmem>>, vector<32x64xbf16>
    %cst = arith.constant dense<0.000000e+00> : vector<16x64xf32>
    %2 = tpu.matmul %0, %1, %cst {dimension_numbers = #tpu.dot_dimension_numbers<[1], [0], [0], [1], [0, 0, 1, 1], [], []>} : vector<16x32xbf16>, vector<32x64xbf16>, vector<16x64xf32> -> vector<16x64xf32>
    %c0_3 = arith.constant 0 : index
    %c0_4 = arith.constant 0 : index
    %3 = vector.load %arg4[%c0_3, %c0_4] : memref<1x64xf32, #tpu.memory_space<vmem>>, vector<1x64xf32>
    %4 = vector.broadcast %3 : vector<1x64xf32> to vector<16x64xf32>
    %5 = arith.addf %2, %4 : vector<16x64xf32>
    %c0_5 = arith.constant 0 : index
    %c0_6 = arith.constant 0 : index
    %6 = vector.load %arg5[%c0_5, %c0_6] : memref<16x64xf32, #tpu.memory_space<vmem>>, vector<16x64xf32>
    tpu.vector_store %arg5[%c0_5, %c0_6], %5 {strides = array<i32>} : memref<16x64xf32, #tpu.memory_space<vmem>>, vector<16x64xf32>,
    return
  }
  func.func @transform_0(%arg0: i32, %arg1: i32) -> (i32, i32) {
    %c0_i32 = arith.constant 0 : i32
    %c0_i32_0 = arith.constant 0 : i32
    return %arg0, %c0_i32 : i32, i32
  }
  func.func @transform_1(%arg0: i32, %arg1: i32) -> (i32, i32) {
    %c0_i32 = arith.constant 0 : i32
    %c0_i32_0 = arith.constant 0 : i32
    return %c0_i32, %arg1 : i32, i32
  }
  func.func @transform_2(%arg0: i32, %arg1: i32) -> (i32, i32) {
    %c0_i32 = arith.constant 0 : i32
    %c0_i32_0 = arith.constant 0 : i32
    return %c0_i32, %arg1 : i32, i32
  }
  func.func @transform_3(%arg0: i32, %arg1: i32) -> (i32, i32) {
    %c0_i32 = arith.constant 0 : i32
    return %arg0, %arg1 : i32, i32
  }
}

module attributes {stable_mosaic.version = 11 : i64} {
  func.func @_decoder_layer_kernel(%arg0: i32, %arg1: memref<2x8x32xbf16, #tpu.memory_space<vmem>>, %arg2: memref<2x8x32xbf16, #tpu.memory_space<vmem>>, %arg3: memref<32x96xbf16, #tpu.memory_space<vmem>>, %arg4: memref<1x96xf32, #tpu.memory_space<vmem>>, %arg5: memref<32x32xbf16, #tpu.memory_space<vmem>>, %arg6: memref<1x32xf32, #tpu.memory_space<vmem>>, %arg7: memref<1x32xf32, #tpu.memory_space<vmem>>, %arg8: memref<1x32xf32, #tpu.memory_space<vmem>>, %arg9: memref<32x32xbf16, #tpu.memory_space<vmem>>, %arg10: memref<1x32xf32, #tpu.memory_space<vmem>>, %arg11: memref<32x64xbf16, #tpu.memory_space<vmem>>, %arg12: memref<1x64xf32, #tpu.memory_space<vmem>>, %arg13: memref<32x32xbf16, #tpu.memory_space<vmem>>, %arg14: memref<1x32xf32, #tpu.memory_space<vmem>>, %arg15: memref<1x32xf32, #tpu.memory_space<vmem>>, %arg16: memref<1x32xf32, #tpu.memory_space<vmem>>, %arg17: memref<32x64xbf16, #tpu.memory_space<vmem>>, %arg18: memref<1x64xf32, #tpu.memory_space<vmem>>, %arg19: memref<64x32xbf16, #tpu.memory_space<vmem>>, %arg20: memref<1x32xf32, #tpu.memory_space<vmem>>, %arg21: memref<1x32xf32, #tpu.memory_space<vmem>>, %arg22: memref<1x32xf32, #tpu.memory_space<vmem>>, %arg23: memref<2x8x32xbf16, #tpu.memory_space<vmem>>) attributes {dimension_semantics = [#tpu.dimension_semantics<parallel>], iteration_bounds = array<i64: 1>, scalar_prefetch = 0 : i64, scratch_operands = 0 : i64, tpu.core_type = #tpu.core_type<tc>, window_params = [{transform_indices = @transform_0, window_bounds = array<i64: 2, 8, 32>}, {transform_indices = @transform_1, window_bounds = array<i64: 2, 8, 32>}, {pipeline_mode = #tpu.pipeline_mode<synchronous>, transform_indices = @transform_2, window_bounds = array<i64: 32, 96>}, {pipeline_mode = #tpu.pipeline_mode<synchronous>, transform_indices = @transform_3, window_bounds = array<i64: 1, 96>}, {pipeline_mode = #tpu.pipeline_mode<synchronous>, transform_indices = @transform_4, window_bounds = array<i64: 32, 32>}, {pipeline_mode = #tpu.pipeline_mode<synchronous>, transform_indices = @transform_5, window_bounds = array<i64: 1, 32>}, {pipeline_mode = #tpu.pipeline_mode<synchronous>, transform_indices = @transform_6, window_bounds = array<i64: 1, 32>}, {pipeline_mode = #tpu.pipeline_mode<synchronous>, transform_indices = @transform_7, window_bounds = array<i64: 1, 32>}, {pipeline_mode = #tpu.pipeline_mode<synchronous>, transform_indices = @transform_8, window_bounds = array<i64: 32, 32>}, {pipeline_mode = #tpu.pipeline_mode<synchronous>, transform_indices = @transform_9, window_bounds = array<i64: 1, 32>}, {pipeline_mode = #tpu.pipeline_mode<synchronous>, transform_indices = @transform_10, window_bounds = array<i64: 32, 64>}, {pipeline_mode = #tpu.pipeline_mode<synchronous>, transform_indices = @transform_11, window_bounds = array<i64: 1, 64>}, {pipeline_mode = #tpu.pipeline_mode<synchronous>, transform_indices = @transform_12, window_bounds = array<i64: 32, 32>}, {pipeline_mode = #tpu.pipeline_mode<synchronous>, transform_indices = @transform_13, window_bounds = array<i64: 1, 32>}, {pipeline_mode = #tpu.pipeline_mode<synchronous>, transform_indices = @transform_14, window_bounds = array<i64: 1, 32>}, {pipeline_mode = #tpu.pipeline_mode<synchronous>, transform_indices = @transform_15, window_bounds = array<i64: 1, 32>}, {pipeline_mode = #tpu.pipeline_mode<synchronous>, transform_indices = @transform_16, window_bounds = array<i64: 32, 64>}, {pipeline_mode = #tpu.pipeline_mode<synchronous>, transform_indices = @transform_17, window_bounds = array<i64: 1, 64>}, {pipeline_mode = #tpu.pipeline_mode<synchronous>, transform_indices = @transform_18, window_bounds = array<i64: 64, 32>}, {pipeline_mode = #tpu.pipeline_mode<synchronous>, transform_indices = @transform_19, window_bounds = array<i64: 1, 32>}, {pipeline_mode = #tpu.pipeline_mode<synchronous>, transform_indices = @transform_20, window_bounds = array<i64: 1, 32>}, {pipeline_mode = #tpu.pipeline_mode<synchronous>, transform_indices = @transform_21, window_bounds = array<i64: 1, 32>}, {transform_indices = @transform_22, window_bounds = array<i64: 2, 8, 32>}]} {
    %c0 = arith.constant 0 : index
    %c0_0 = arith.constant 0 : index
    %c0_1 = arith.constant 0 : index
    %0 = vector.load %arg1[%c0, %c0_0, %c0_1] : memref<2x8x32xbf16, #tpu.memory_space<vmem>>, vector<2x8x32xbf16>
    %1 = vector.shape_cast %0 : vector<2x8x32xbf16> to vector<16x32xbf16>
    %2 = arith.extf %1 : vector<16x32xbf16> to vector<16x32xf32>
    %c0_2 = arith.constant 0 : index
    %c0_3 = arith.constant 0 : index
    %c0_4 = arith.constant 0 : index
    %3 = vector.load %arg2[%c0_2, %c0_3, %c0_4] : memref<2x8x32xbf16, #tpu.memory_space<vmem>>, vector<2x8x32xbf16>
    %4 = vector.shape_cast %3 : vector<2x8x32xbf16> to vector<16x32xbf16>
    %5 = tpu.iota {dimensions = array<i32: 0>} : vector<8x8xi32>
    %6 = tpu.iota {dimensions = array<i32: 1>} : vector<8x8xi32>
    %7 = arith.cmpi sle, %6, %5 : vector<8x8xi32>
    %c0_5 = arith.constant 0 : index
    %c0_6 = arith.constant 0 : index
    %8 = vector.load %arg3[%c0_5, %c0_6] : memref<32x96xbf16, #tpu.memory_space<vmem>>, vector<32x96xbf16>
    %cst = arith.constant dense<0.000000e+00> : vector<16x96xf32>
    %9 = tpu.matmul %1, %8, %cst {dimension_numbers = #tpu.dot_dimension_numbers<[1], [0], [0], [1], [0, 0, 1, 1], [], []>} : vector<16x32xbf16>, vector<32x96xbf16>, vector<16x96xf32> -> vector<16x96xf32>
    %c0_7 = arith.constant 0 : index
    %c0_8 = arith.constant 0 : index
    %10 = vector.load %arg4[%c0_7, %c0_8] : memref<1x96xf32, #tpu.memory_space<vmem>>, vector<1x96xf32>
    %11 = vector.broadcast %10 : vector<1x96xf32> to vector<16x96xf32>
    %12 = arith.addf %9, %11 : vector<16x96xf32>
    %13 = vector.extract_strided_slice %12 {offsets = [0, 0], sizes = [16, 32], strides = [1, 1]} : vector<16x96xf32> to vector<16x32xf32>
    %14 = vector.extract_strided_slice %12 {offsets = [0, 32], sizes = [16, 32], strides = [1, 1]} : vector<16x96xf32> to vector<16x32xf32>
    %15 = arith.truncf %14 : vector<16x32xf32> to vector<16x32xbf16>
    %16 = vector.extract_strided_slice %12 {offsets = [0, 64], sizes = [16, 32], strides = [1, 1]} : vector<16x96xf32> to vector<16x32xf32>
    %17 = arith.truncf %16 : vector<16x32xf32> to vector<16x32xbf16>
    %cst_9 = arith.constant 0.353553385 : f32
    %18 = vector.broadcast %cst_9 : f32 to vector<16x32xf32>
    %19 = arith.mulf %13, %18 : vector<16x32xf32>
    %20 = arith.truncf %19 : vector<16x32xf32> to vector<16x32xbf16>
    %21 = vector.shape_cast %20 : vector<16x32xbf16> to vector<2x8x4x8xbf16>
    %22 = tpu.transpose %21, [0, 2, 1, 3] : vector<2x8x4x8xbf16> -> vector<2x4x8x8xbf16>
    %23 = vector.shape_cast %22 : vector<2x4x8x8xbf16> to vector<8x8x8xbf16>
    %24 = vector.shape_cast %15 : vector<16x32xbf16> to vector<2x8x4x8xbf16>
    %25 = tpu.transpose %24, [0, 2, 1, 3] : vector<2x8x4x8xbf16> -> vector<2x4x8x8xbf16>
    %26 = vector.shape_cast %25 : vector<2x4x8x8xbf16> to vector<8x8x8xbf16>
    %27 = vector.shape_cast %17 : vector<16x32xbf16> to vector<2x8x4x8xbf16>
    %28 = tpu.transpose %27, [0, 2, 1, 3] : vector<2x8x4x8xbf16> -> vector<2x4x8x8xbf16>
    %29 = vector.shape_cast %28 : vector<2x4x8x8xbf16> to vector<8x8x8xbf16>
    "tpu.trace_start"() <{level = 10 : i32, message = "bqd,bkd->bqk"}> : () -> ()
    %cst_10 = arith.constant dense<0.000000e+00> : vector<8x8x8xf32>
    %30 = tpu.matmul %23, %26, %cst_10 {dimension_numbers = #tpu.dot_dimension_numbers<[2], [2], [1], [1], [0, 0, 0, 1, 1, 1], [0], [0]>} : vector<8x8x8xbf16>, vector<8x8x8xbf16>, vector<8x8x8xf32> -> vector<8x8x8xf32>
    "tpu.trace_stop"() : () -> ()
    %31 = vector.shape_cast %7 : vector<8x8xi1> to vector<1x8x8xi1>
    %cst_11 = arith.constant -1.000000e+30 : f32
    %32 = vector.shape_cast %31 : vector<1x8x8xi1> to vector<1x8x8xi1>
    %33 = vector.broadcast %32 : vector<1x8x8xi1> to vector<8x8x8xi1>
    %34 = vector.broadcast %cst_11 : f32 to vector<8x8x8xf32>
    %35 = arith.select %33, %30, %34 : vector<8x8x8xi1>, vector<8x8x8xf32>
    %cst_12 = arith.constant dense<0xFF800000> : vector<8x8xf32>
    %36 = vector.multi_reduction <maximumf>, %35, %cst_12 [2] : vector<8x8x8xf32> to vector<8x8xf32>
    %37 = vector.shape_cast %36 : vector<8x8xf32> to vector<8x8x1xf32>
    %38 = vector.broadcast %37 : vector<8x8x1xf32> to vector<8x8x8xf32>
    %39 = arith.subf %35, %38 : vector<8x8x8xf32>
    %40 = math.exp %39 : vector<8x8x8xf32>
    %cst_13 = arith.constant dense<0.000000e+00> : vector<8x8xf32>
    %41 = vector.multi_reduction <add>, %40, %cst_13 [2] : vector<8x8x8xf32> to vector<8x8xf32>
    %42 = vector.shape_cast %41 : vector<8x8xf32> to vector<8x8x1xf32>
    %43 = tpu.reciprocal %42 {approx = true} : vector<8x8x1xf32> -> vector<8x8x1xf32>
    %44 = vector.broadcast %43 : vector<8x8x1xf32> to vector<8x8x8xf32>
    %45 = arith.mulf %40, %44 : vector<8x8x8xf32>
    %46 = arith.truncf %45 : vector<8x8x8xf32> to vector<8x8x8xbf16>
    "tpu.trace_start"() <{level = 10 : i32, message = "bqk,bkd->bqd"}> : () -> ()
    %cst_14 = arith.constant dense<0.000000e+00> : vector<8x8x8xf32>
    %47 = tpu.matmul %46, %29, %cst_14 {dimension_numbers = #tpu.dot_dimension_numbers<[2], [1], [1], [2], [0, 0, 0, 1, 1, 2], [0], [0]>} : vector<8x8x8xbf16>, vector<8x8x8xbf16>, vector<8x8x8xf32> -> vector<8x8x8xf32>
    "tpu.trace_stop"() : () -> ()
    %48 = vector.shape_cast %47 : vector<8x8x8xf32> to vector<2x4x8x8xf32>
    %49 = tpu.transpose %48, [0, 2, 1, 3] : vector<2x4x8x8xf32> -> vector<2x8x4x8xf32>
    %50 = vector.shape_cast %49 : vector<2x8x4x8xf32> to vector<16x32xf32>
    %51 = arith.truncf %50 : vector<16x32xf32> to vector<16x32xbf16>
    %c0_15 = arith.constant 0 : index
    %c0_16 = arith.constant 0 : index
    %52 = vector.load %arg5[%c0_15, %c0_16] : memref<32x32xbf16, #tpu.memory_space<vmem>>, vector<32x32xbf16>
    %cst_17 = arith.constant dense<0.000000e+00> : vector<16x32xf32>
    %53 = tpu.matmul %51, %52, %cst_17 {dimension_numbers = #tpu.dot_dimension_numbers<[1], [0], [0], [1], [0, 0, 1, 1], [], []>} : vector<16x32xbf16>, vector<32x32xbf16>, vector<16x32xf32> -> vector<16x32xf32>
    %c0_18 = arith.constant 0 : index
    %c0_19 = arith.constant 0 : index
    %54 = vector.load %arg6[%c0_18, %c0_19] : memref<1x32xf32, #tpu.memory_space<vmem>>, vector<1x32xf32>
    %55 = vector.broadcast %54 : vector<1x32xf32> to vector<16x32xf32>
    %56 = arith.addf %53, %55 : vector<16x32xf32>
    %57 = arith.addf %2, %56 : vector<16x32xf32>
    %cst_20 = arith.constant dense<0.000000e+00> : vector<16xf32>
    %58 = vector.multi_reduction <add>, %57, %cst_20 [1] : vector<16x32xf32> to vector<16xf32>
    %59 = vector.shape_cast %58 : vector<16xf32> to vector<16x1xf32>
    %cst_21 = arith.constant 3.200000e+01 : f32
    %60 = vector.broadcast %cst_21 : f32 to vector<16x1xf32>
    %61 = arith.divf %59, %60 : vector<16x1xf32>
    %62 = vector.broadcast %61 : vector<16x1xf32> to vector<16x32xf32>
    %63 = arith.subf %57, %62 : vector<16x32xf32>
    %64 = arith.mulf %63, %63 : vector<16x32xf32>
    %cst_22 = arith.constant dense<0.000000e+00> : vector<16xf32>
    %65 = vector.multi_reduction <add>, %64, %cst_22 [1] : vector<16x32xf32> to vector<16xf32>
    %66 = vector.shape_cast %65 : vector<16xf32> to vector<16x1xf32>
    %cst_23 = arith.constant 3.200000e+01 : f32
    %67 = vector.broadcast %cst_23 : f32 to vector<16x1xf32>
    %68 = arith.divf %66, %67 : vector<16x1xf32>
    %69 = vector.broadcast %61 : vector<16x1xf32> to vector<16x32xf32>
    %70 = arith.subf %57, %69 : vector<16x32xf32>
    %cst_24 = arith.constant 9.99999974E-6 : f32
    %71 = vector.broadcast %cst_24 : f32 to vector<16x1xf32>
    %72 = arith.addf %68, %71 : vector<16x1xf32>
    %73 = math.rsqrt %72 : vector<16x1xf32>
    %74 = vector.broadcast %73 : vector<16x1xf32> to vector<16x32xf32>
    %75 = arith.mulf %70, %74 : vector<16x32xf32>
    %c0_25 = arith.constant 0 : index
    %c0_26 = arith.constant 0 : index
    %76 = vector.load %arg7[%c0_25, %c0_26] : memref<1x32xf32, #tpu.memory_space<vmem>>, vector<1x32xf32>
    %77 = vector.broadcast %76 : vector<1x32xf32> to vector<16x32xf32>
    %78 = arith.mulf %75, %77 : vector<16x32xf32>
    %c0_27 = arith.constant 0 : index
    %c0_28 = arith.constant 0 : index
    %79 = vector.load %arg8[%c0_27, %c0_28] : memref<1x32xf32, #tpu.memory_space<vmem>>, vector<1x32xf32>
    %80 = vector.broadcast %79 : vector<1x32xf32> to vector<16x32xf32>
    %81 = arith.addf %78, %80 : vector<16x32xf32>
    %82 = arith.truncf %81 : vector<16x32xf32> to vector<16x32xbf16>
    %c0_29 = arith.constant 0 : index
    %c0_30 = arith.constant 0 : index
    %83 = vector.load %arg9[%c0_29, %c0_30] : memref<32x32xbf16, #tpu.memory_space<vmem>>, vector<32x32xbf16>
    %cst_31 = arith.constant dense<0.000000e+00> : vector<16x32xf32>
    %84 = tpu.matmul %82, %83, %cst_31 {dimension_numbers = #tpu.dot_dimension_numbers<[1], [0], [0], [1], [0, 0, 1, 1], [], []>} : vector<16x32xbf16>, vector<32x32xbf16>, vector<16x32xf32> -> vector<16x32xf32>
    %c0_32 = arith.constant 0 : index
    %c0_33 = arith.constant 0 : index
    %85 = vector.load %arg10[%c0_32, %c0_33] : memref<1x32xf32, #tpu.memory_space<vmem>>, vector<1x32xf32>
    %86 = vector.broadcast %85 : vector<1x32xf32> to vector<16x32xf32>
    %87 = arith.addf %84, %86 : vector<16x32xf32>
    %c0_34 = arith.constant 0 : index
    %c0_35 = arith.constant 0 : index
    %88 = vector.load %arg11[%c0_34, %c0_35] : memref<32x64xbf16, #tpu.memory_space<vmem>>, vector<32x64xbf16>
    %cst_36 = arith.constant dense<0.000000e+00> : vector<16x64xf32>
    %89 = tpu.matmul %4, %88, %cst_36 {dimension_numbers = #tpu.dot_dimension_numbers<[1], [0], [0], [1], [0, 0, 1, 1], [], []>} : vector<16x32xbf16>, vector<32x64xbf16>, vector<16x64xf32> -> vector<16x64xf32>
    %c0_37 = arith.constant 0 : index
    %c0_38 = arith.constant 0 : index
    %90 = vector.load %arg12[%c0_37, %c0_38] : memref<1x64xf32, #tpu.memory_space<vmem>>, vector<1x64xf32>
    %91 = vector.broadcast %90 : vector<1x64xf32> to vector<16x64xf32>
    %92 = arith.addf %89, %91 : vector<16x64xf32>
    %93 = vector.extract_strided_slice %92 {offsets = [0, 0], sizes = [16, 32], strides = [1, 1]} : vector<16x64xf32> to vector<16x32xf32>
    %94 = arith.truncf %93 : vector<16x32xf32> to vector<16x32xbf16>
    %95 = vector.extract_strided_slice %92 {offsets = [0, 32], sizes = [16, 32], strides = [1, 1]} : vector<16x64xf32> to vector<16x32xf32>
    %96 = arith.truncf %95 : vector<16x32xf32> to vector<16x32xbf16>
    %cst_39 = arith.constant 0.353553385 : f32
    %97 = vector.broadcast %cst_39 : f32 to vector<16x32xf32>
    %98 = arith.mulf %87, %97 : vector<16x32xf32>
    %99 = arith.truncf %98 : vector<16x32xf32> to vector<16x32xbf16>
    %100 = vector.shape_cast %99 : vector<16x32xbf16> to vector<2x8x4x8xbf16>
    %101 = tpu.transpose %100, [0, 2, 1, 3] : vector<2x8x4x8xbf16> -> vector<2x4x8x8xbf16>
    %102 = vector.shape_cast %101 : vector<2x4x8x8xbf16> to vector<8x8x8xbf16>
    %103 = vector.shape_cast %94 : vector<16x32xbf16> to vector<2x8x4x8xbf16>
    %104 = tpu.transpose %103, [0, 2, 1, 3] : vector<2x8x4x8xbf16> -> vector<2x4x8x8xbf16>
    %105 = vector.shape_cast %104 : vector<2x4x8x8xbf16> to vector<8x8x8xbf16>
    %106 = vector.shape_cast %96 : vector<16x32xbf16> to vector<2x8x4x8xbf16>
    %107 = tpu.transpose %106, [0, 2, 1, 3] : vector<2x8x4x8xbf16> -> vector<2x4x8x8xbf16>
    %108 = vector.shape_cast %107 : vector<2x4x8x8xbf16> to vector<8x8x8xbf16>
    "tpu.trace_start"() <{level = 10 : i32, message = "bqd,bkd->bqk"}> : () -> ()
    %cst_40 = arith.constant dense<0.000000e+00> : vector<8x8x8xf32>
    %109 = tpu.matmul %102, %105, %cst_40 {dimension_numbers = #tpu.dot_dimension_numbers<[2], [2], [1], [1], [0, 0, 0, 1, 1, 1], [0], [0]>} : vector<8x8x8xbf16>, vector<8x8x8xbf16>, vector<8x8x8xf32> -> vector<8x8x8xf32>
    "tpu.trace_stop"() : () -> ()
    %cst_41 = arith.constant dense<0xFF800000> : vector<8x8xf32>
    %110 = vector.multi_reduction <maximumf>, %109, %cst_41 [2] : vector<8x8x8xf32> to vector<8x8xf32>
    %111 = vector.shape_cast %110 : vector<8x8xf32> to vector<8x8x1xf32>
    %112 = vector.broadcast %111 : vector<8x8x1xf32> to vector<8x8x8xf32>
    %113 = arith.subf %109, %112 : vector<8x8x8xf32>
    %114 = math.exp %113 : vector<8x8x8xf32>
    %cst_42 = arith.constant dense<0.000000e+00> : vector<8x8xf32>
    %115 = vector.multi_reduction <add>, %114, %cst_42 [2] : vector<8x8x8xf32> to vector<8x8xf32>
    %116 = vector.shape_cast %115 : vector<8x8xf32> to vector<8x8x1xf32>
    %117 = tpu.reciprocal %116 {approx = true} : vector<8x8x1xf32> -> vector<8x8x1xf32>
    %118 = vector.broadcast %117 : vector<8x8x1xf32> to vector<8x8x8xf32>
    %119 = arith.mulf %114, %118 : vector<8x8x8xf32>
    %120 = arith.truncf %119 : vector<8x8x8xf32> to vector<8x8x8xbf16>
    "tpu.trace_start"() <{level = 10 : i32, message = "bqk,bkd->bqd"}> : () -> ()
    %cst_43 = arith.constant dense<0.000000e+00> : vector<8x8x8xf32>
    %121 = tpu.matmul %120, %108, %cst_43 {dimension_numbers = #tpu.dot_dimension_numbers<[2], [1], [1], [2], [0, 0, 0, 1, 1, 2], [0], [0]>} : vector<8x8x8xbf16>, vector<8x8x8xbf16>, vector<8x8x8xf32> -> vector<8x8x8xf32>
    "tpu.trace_stop"() : () -> ()
    %122 = vector.shape_cast %121 : vector<8x8x8xf32> to vector<2x4x8x8xf32>
    %123 = tpu.transpose %122, [0, 2, 1, 3] : vector<2x4x8x8xf32> -> vector<2x8x4x8xf32>
    %124 = vector.shape_cast %123 : vector<2x8x4x8xf32> to vector<16x32xf32>
    %125 = arith.truncf %124 : vector<16x32xf32> to vector<16x32xbf16>
    %c0_44 = arith.constant 0 : index
    %c0_45 = arith.constant 0 : index
    %126 = vector.load %arg13[%c0_44, %c0_45] : memref<32x32xbf16, #tpu.memory_space<vmem>>, vector<32x32xbf16>
    %cst_46 = arith.constant dense<0.000000e+00> : vector<16x32xf32>
    %127 = tpu.matmul %125, %126, %cst_46 {dimension_numbers = #tpu.dot_dimension_numbers<[1], [0], [0], [1], [0, 0, 1, 1], [], []>} : vector<16x32xbf16>, vector<32x32xbf16>, vector<16x32xf32> -> vector<16x32xf32>
    %c0_47 = arith.constant 0 : index
    %c0_48 = arith.constant 0 : index
    %128 = vector.load %arg14[%c0_47, %c0_48] : memref<1x32xf32, #tpu.memory_space<vmem>>, vector<1x32xf32>
    %129 = vector.broadcast %128 : vector<1x32xf32> to vector<16x32xf32>
    %130 = arith.addf %127, %129 : vector<16x32xf32>
    %131 = arith.addf %81, %130 : vector<16x32xf32>
    %cst_49 = arith.constant dense<0.000000e+00> : vector<16xf32>
    %132 = vector.multi_reduction <add>, %131, %cst_49 [1] : vector<16x32xf32> to vector<16xf32>
    %133 = vector.shape_cast %132 : vector<16xf32> to vector<16x1xf32>
    %cst_50 = arith.constant 3.200000e+01 : f32
    %134 = vector.broadcast %cst_50 : f32 to vector<16x1xf32>
    %135 = arith.divf %133, %134 : vector<16x1xf32>
    %136 = vector.broadcast %135 : vector<16x1xf32> to vector<16x32xf32>
    %137 = arith.subf %131, %136 : vector<16x32xf32>
    %138 = arith.mulf %137, %137 : vector<16x32xf32>
    %cst_51 = arith.constant dense<0.000000e+00> : vector<16xf32>
    %139 = vector.multi_reduction <add>, %138, %cst_51 [1] : vector<16x32xf32> to vector<16xf32>
    %140 = vector.shape_cast %139 : vector<16xf32> to vector<16x1xf32>
    %cst_52 = arith.constant 3.200000e+01 : f32
    %141 = vector.broadcast %cst_52 : f32 to vector<16x1xf32>
    %142 = arith.divf %140, %141 : vector<16x1xf32>
    %143 = vector.broadcast %135 : vector<16x1xf32> to vector<16x32xf32>
    %144 = arith.subf %131, %143 : vector<16x32xf32>
    %cst_53 = arith.constant 9.99999974E-6 : f32
    %145 = vector.broadcast %cst_53 : f32 to vector<16x1xf32>
    %146 = arith.addf %142, %145 : vector<16x1xf32>
    %147 = math.rsqrt %146 : vector<16x1xf32>
    %148 = vector.broadcast %147 : vector<16x1xf32> to vector<16x32xf32>
    %149 = arith.mulf %144, %148 : vector<16x32xf32>
    %c0_54 = arith.constant 0 : index
    %c0_55 = arith.constant 0 : index
    %150 = vector.load %arg15[%c0_54, %c0_55] : memref<1x32xf32, #tpu.memory_space<vmem>>, vector<1x32xf32>
    %151 = vector.broadcast %150 : vector<1x32xf32> to vector<16x32xf32>
    %152 = arith.mulf %149, %151 : vector<16x32xf32>
    %c0_56 = arith.constant 0 : index
    %c0_57 = arith.constant 0 : index
    %153 = vector.load %arg16[%c0_56, %c0_57] : memref<1x32xf32, #tpu.memory_space<vmem>>, vector<1x32xf32>
    %154 = vector.broadcast %153 : vector<1x32xf32> to vector<16x32xf32>
    %155 = arith.addf %152, %154 : vector<16x32xf32>
    %156 = arith.truncf %155 : vector<16x32xf32> to vector<16x32xbf16>
    %c0_58 = arith.constant 0 : index
    %c0_59 = arith.constant 0 : index
    %157 = vector.load %arg17[%c0_58, %c0_59] : memref<32x64xbf16, #tpu.memory_space<vmem>>, vector<32x64xbf16>
    %cst_60 = arith.constant dense<0.000000e+00> : vector<16x64xf32>
    %158 = tpu.matmul %156, %157, %cst_60 {dimension_numbers = #tpu.dot_dimension_numbers<[1], [0], [0], [1], [0, 0, 1, 1], [], []>} : vector<16x32xbf16>, vector<32x64xbf16>, vector<16x64xf32> -> vector<16x64xf32>
    %c0_61 = arith.constant 0 : index
    %c0_62 = arith.constant 0 : index
    %159 = vector.load %arg18[%c0_61, %c0_62] : memref<1x64xf32, #tpu.memory_space<vmem>>, vector<1x64xf32>
    %160 = vector.broadcast %159 : vector<1x64xf32> to vector<16x64xf32>
    %161 = arith.addf %158, %160 : vector<16x64xf32>
    %cst_63 = arith.constant 0.000000e+00 : f32
    %162 = vector.broadcast %cst_63 : f32 to vector<16x64xf32>
    %163 = arith.maximumf %161, %162 : vector<16x64xf32>
    %164 = arith.truncf %163 : vector<16x64xf32> to vector<16x64xbf16>
    %c0_64 = arith.constant 0 : index
    %c0_65 = arith.constant 0 : index
    %165 = vector.load %arg19[%c0_64, %c0_65] : memref<64x32xbf16, #tpu.memory_space<vmem>>, vector<64x32xbf16>
    %cst_66 = arith.constant dense<0.000000e+00> : vector<16x32xf32>
    %166 = tpu.matmul %164, %165, %cst_66 {dimension_numbers = #tpu.dot_dimension_numbers<[1], [0], [0], [1], [0, 0, 1, 1], [], []>} : vector<16x64xbf16>, vector<64x32xbf16>, vector<16x32xf32> -> vector<16x32xf32>
    %c0_67 = arith.constant 0 : index
    %c0_68 = arith.constant 0 : index
    %167 = vector.load %arg20[%c0_67, %c0_68] : memref<1x32xf32, #tpu.memory_space<vmem>>, vector<1x32xf32>
    %168 = vector.broadcast %167 : vector<1x32xf32> to vector<16x32xf32>
    %169 = arith.addf %166, %168 : vector<16x32xf32>
    %170 = arith.addf %155, %169 : vector<16x32xf32>
    %cst_69 = arith.constant dense<0.000000e+00> : vector<16xf32>
    %171 = vector.multi_reduction <add>, %170, %cst_69 [1] : vector<16x32xf32> to vector<16xf32>
    %172 = vector.shape_cast %171 : vector<16xf32> to vector<16x1xf32>
    %cst_70 = arith.constant 3.200000e+01 : f32
    %173 = vector.broadcast %cst_70 : f32 to vector<16x1xf32>
    %174 = arith.divf %172, %173 : vector<16x1xf32>
    %175 = vector.broadcast %174 : vector<16x1xf32> to vector<16x32xf32>
    %176 = arith.subf %170, %175 : vector<16x32xf32>
    %177 = arith.mulf %176, %176 : vector<16x32xf32>
    %cst_71 = arith.constant dense<0.000000e+00> : vector<16xf32>
    %178 = vector.multi_reduction <add>, %177, %cst_71 [1] : vector<16x32xf32> to vector<16xf32>
    %179 = vector.shape_cast %178 : vector<16xf32> to vector<16x1xf32>
    %cst_72 = arith.constant 3.200000e+01 : f32
    %180 = vector.broadcast %cst_72 : f32 to vector<16x1xf32>
    %181 = arith.divf %179, %180 : vector<16x1xf32>
    %182 = vector.broadcast %174 : vector<16x1xf32> to vector<16x32xf32>
    %183 = arith.subf %170, %182 : vector<16x32xf32>
    %cst_73 = arith.constant 9.99999974E-6 : f32
    %184 = vector.broadcast %cst_73 : f32 to vector<16x1xf32>
    %185 = arith.addf %181, %184 : vector<16x1xf32>
    %186 = math.rsqrt %185 : vector<16x1xf32>
    %187 = vector.broadcast %186 : vector<16x1xf32> to vector<16x32xf32>
    %188 = arith.mulf %183, %187 : vector<16x32xf32>
    %c0_74 = arith.constant 0 : index
    %c0_75 = arith.constant 0 : index
    %189 = vector.load %arg21[%c0_74, %c0_75] : memref<1x32xf32, #tpu.memory_space<vmem>>, vector<1x32xf32>
    %190 = vector.broadcast %189 : vector<1x32xf32> to vector<16x32xf32>
    %191 = arith.mulf %188, %190 : vector<16x32xf32>
    %c0_76 = arith.constant 0 : index
    %c0_77 = arith.constant 0 : index
    %192 = vector.load %arg22[%c0_76, %c0_77] : memref<1x32xf32, #tpu.memory_space<vmem>>, vector<1x32xf32>
    %193 = vector.broadcast %192 : vector<1x32xf32> to vector<16x32xf32>
    %194 = arith.addf %191, %193 : vector<16x32xf32>
    %195 = arith.truncf %194 : vector<16x32xf32> to vector<16x32xbf16>
    %196 = vector.shape_cast %195 : vector<16x32xbf16> to vector<2x8x32xbf16>
    %c0_78 = arith.constant 0 : index
    %c0_79 = arith.constant 0 : index
    %c0_80 = arith.constant 0 : index
    %197 = vector.load %arg23[%c0_78, %c0_79, %c0_80] : memref<2x8x32xbf16, #tpu.memory_space<vmem>>, vector<2x8x32xbf16>
    tpu.vector_store %arg23[%c0_78, %c0_79, %c0_80], %196 {strides = array<i32>} : memref<2x8x32xbf16, #tpu.memory_space<vmem>>, vector<2x8x32xbf16>,
    return
  }
  func.func @transform_0(%arg0: i32) -> (i32, i32, i32) {
    %c0_i32 = arith.constant 0 : i32
    %c0_i32_0 = arith.constant 0 : i32
    %c0_i32_1 = arith.constant 0 : i32
    return %arg0, %c0_i32, %c0_i32_0 : i32, i32, i32
  }
  func.func @transform_1(%arg0: i32) -> (i32, i32, i32) {
    %c0_i32 = arith.constant 0 : i32
    %c0_i32_0 = arith.constant 0 : i32
    %c0_i32_1 = arith.constant 0 : i32
    return %arg0, %c0_i32, %c0_i32_0 : i32, i32, i32
  }
  func.func @transform_2(%arg0: i32) -> (i32, i32) {
    %c0_i32 = arith.constant 0 : i32
    %c0_i32_0 = arith.constant 0 : i32
    %c0_i32_1 = arith.constant 0 : i32
    return %c0_i32, %c0_i32_0 : i32, i32
  }
  func.func @transform_3(%arg0: i32) -> (i32, i32) {
    %c0_i32 = arith.constant 0 : i32
    %c0_i32_0 = arith.constant 0 : i32
    %c0_i32_1 = arith.constant 0 : i32
    return %c0_i32, %c0_i32_0 : i32, i32
  }
  func.func @transform_4(%arg0: i32) -> (i32, i32) {
    %c0_i32 = arith.constant 0 : i32
    %c0_i32_0 = arith.constant 0 : i32
    %c0_i32_1 = arith.constant 0 : i32
    return %c0_i32, %c0_i32_0 : i32, i32
  }
  func.func @transform_5(%arg0: i32) -> (i32, i32) {
    %c0_i32 = arith.constant 0 : i32
    %c0_i32_0 = arith.constant 0 : i32
    %c0_i32_1 = arith.constant 0 : i32
    return %c0_i32, %c0_i32_0 : i32, i32
  }
  func.func @transform_6(%arg0: i32) -> (i32, i32) {
    %c0_i32 = arith.constant 0 : i32
    %c0_i32_0 = arith.constant 0 : i32
    %c0_i32_1 = arith.constant 0 : i32
    return %c0_i32, %c0_i32_0 : i32, i32
  }
  func.func @transform_7(%arg0: i32) -> (i32, i32) {
    %c0_i32 = arith.constant 0 : i32
    %c0_i32_0 = arith.constant 0 : i32
    %c0_i32_1 = arith.constant 0 : i32
    return %c0_i32, %c0_i32_0 : i32, i32
  }
  func.func @transform_8(%arg0: i32) -> (i32, i32) {
    %c0_i32 = arith.constant 0 : i32
    %c0_i32_0 = arith.constant 0 : i32
    %c0_i32_1 = arith.constant 0 : i32
    return %c0_i32, %c0_i32_0 : i32, i32
  }
  func.func @transform_9(%arg0: i32) -> (i32, i32) {
    %c0_i32 = arith.constant 0 : i32
    %c0_i32_0 = arith.constant 0 : i32
    %c0_i32_1 = arith.constant 0 : i32
    return %c0_i32, %c0_i32_0 : i32, i32
  }
  func.func @transform_10(%arg0: i32) -> (i32, i32) {
    %c0_i32 = arith.constant 0 : i32
    %c0_i32_0 = arith.constant 0 : i32
    %c0_i32_1 = arith.constant 0 : i32
    return %c0_i32, %c0_i32_0 : i32, i32
  }
  func.func @transform_11(%arg0: i32) -> (i32, i32) {
    %c0_i32 = arith.constant 0 : i32
    %c0_i32_0 = arith.constant 0 : i32
    %c0_i32_1 = arith.constant 0 : i32
    return %c0_i32, %c0_i32_0 : i32, i32
  }
  func.func @transform_12(%arg0: i32) -> (i32, i32) {
    %c0_i32 = arith.constant 0 : i32
    %c0_i32_0 = arith.constant 0 : i32
    %c0_i32_1 = arith.constant 0 : i32
    return %c0_i32, %c0_i32_0 : i32, i32
  }
  func.func @transform_13(%arg0: i32) -> (i32, i32) {
    %c0_i32 = arith.constant 0 : i32
    %c0_i32_0 = arith.constant 0 : i32
    %c0_i32_1 = arith.constant 0 : i32
    return %c0_i32, %c0_i32_0 : i32, i32
  }
  func.func @transform_14(%arg0: i32) -> (i32, i32) {
    %c0_i32 = arith.constant 0 : i32
    %c0_i32_0 = arith.constant 0 : i32
    %c0_i32_1 = arith.constant 0 : i32
    return %c0_i32, %c0_i32_0 : i32, i32
  }
  func.func @transform_15(%arg0: i32) -> (i32, i32) {
    %c0_i32 = arith.constant 0 : i32
    %c0_i32_0 = arith.constant 0 : i32
    %c0_i32_1 = arith.constant 0 : i32
    return %c0_i32, %c0_i32_0 : i32, i32
  }
  func.func @transform_16(%arg0: i32) -> (i32, i32) {
    %c0_i32 = arith.constant 0 : i32
    %c0_i32_0 = arith.constant 0 : i32
    %c0_i32_1 = arith.constant 0 : i32
    return %c0_i32, %c0_i32_0 : i32, i32
  }
  func.func @transform_17(%arg0: i32) -> (i32, i32) {
    %c0_i32 = arith.constant 0 : i32
    %c0_i32_0 = arith.constant 0 : i32
    %c0_i32_1 = arith.constant 0 : i32
    return %c0_i32, %c0_i32_0 : i32, i32
  }
  func.func @transform_18(%arg0: i32) -> (i32, i32) {
    %c0_i32 = arith.constant 0 : i32
    %c0_i32_0 = arith.constant 0 : i32
    %c0_i32_1 = arith.constant 0 : i32
    return %c0_i32, %c0_i32_0 : i32, i32
  }
  func.func @transform_19(%arg0: i32) -> (i32, i32) {
    %c0_i32 = arith.constant 0 : i32
    %c0_i32_0 = arith.constant 0 : i32
    %c0_i32_1 = arith.constant 0 : i32
    return %c0_i32, %c0_i32_0 : i32, i32
  }
  func.func @transform_20(%arg0: i32) -> (i32, i32) {
    %c0_i32 = arith.constant 0 : i32
    %c0_i32_0 = arith.constant 0 : i32
    %c0_i32_1 = arith.constant 0 : i32
    return %c0_i32, %c0_i32_0 : i32, i32
  }
  func.func @transform_21(%arg0: i32) -> (i32, i32) {
    %c0_i32 = arith.constant 0 : i32
    %c0_i32_0 = arith.constant 0 : i32
    %c0_i32_1 = arith.constant 0 : i32
    return %c0_i32, %c0_i32_0 : i32, i32
  }
  func.func @transform_22(%arg0: i32) -> (i32, i32, i32) {
    %c0_i32 = arith.constant 0 : i32
    %c0_i32_0 = arith.constant 0 : i32
    %c0_i32_1 = arith.constant 0 : i32
    return %arg0, %c0_i32, %c0_i32_0 : i32, i32, i32
  }
}

module attributes {stable_mosaic.version = 11 : i64} {
  func.func @_decoder_layer_kernel(%arg0: i32, %arg1: memref<2x8x32xbf16, #tpu.memory_space<vmem>>, %arg2: memref<2x8x32xbf16, #tpu.memory_space<vmem>>, %arg3: memref<32x96xbf16, #tpu.memory_space<vmem>>, %arg4: memref<1x96xf32, #tpu.memory_space<vmem>>, %arg5: memref<32x32xbf16, #tpu.memory_space<vmem>>, %arg6: memref<1x32xf32, #tpu.memory_space<vmem>>, %arg7: memref<1x32xf32, #tpu.memory_space<vmem>>, %arg8: memref<1x32xf32, #tpu.memory_space<vmem>>, %arg9: memref<32x32xbf16, #tpu.memory_space<vmem>>, %arg10: memref<1x32xf32, #tpu.memory_space<vmem>>, %arg11: memref<32x64xbf16, #tpu.memory_space<vmem>>, %arg12: memref<1x64xf32, #tpu.memory_space<vmem>>, %arg13: memref<32x32xbf16, #tpu.memory_space<vmem>>, %arg14: memref<1x32xf32, #tpu.memory_space<vmem>>, %arg15: memref<1x32xf32, #tpu.memory_space<vmem>>, %arg16: memref<1x32xf32, #tpu.memory_space<vmem>>, %arg17: memref<32x64xbf16, #tpu.memory_space<vmem>>, %arg18: memref<1x64xf32, #tpu.memory_space<vmem>>, %arg19: memref<64x32xbf16, #tpu.memory_space<vmem>>, %arg20: memref<1x32xf32, #tpu.memory_space<vmem>>, %arg21: memref<1x32xf32, #tpu.memory_space<vmem>>, %arg22: memref<1x32xf32, #tpu.memory_space<vmem>>, %arg23: memref<2x8x32xbf16, #tpu.memory_space<vmem>>) attributes {dimension_semantics = [#tpu.dimension_semantics<parallel>], iteration_bounds = array<i64: 1>, scalar_prefetch = 0 : i64, scratch_operands = 0 : i64, tpu.core_type = #tpu.core_type<tc>, window_params = [{transform_indices = @transform_0, window_bounds = array<i64: 2, 8, 32>}, {transform_indices = @transform_1, window_bounds = array<i64: 2, 8, 32>}, {pipeline_mode = #tpu.pipeline_mode<synchronous>, transform_indices = @transform_2, window_bounds = array<i64: 32, 96>}, {pipeline_mode = #tpu.pipeline_mode<synchronous>, transform_indices = @transform_3, window_bounds = array<i64: 1, 96>}, {pipeline_mode = #tpu.pipeline_mode<synchronous>, transform_indices = @transform_4, window_bounds = array<i64: 32, 32>}, {pipeline_mode = #tpu.pipeline_mode<synchronous>, transform_indices = @transform_5, window_bounds = array<i64: 1, 32>}, {pipeline_mode = #tpu.pipeline_mode<synchronous>, transform_indices = @transform_6, window_bounds = array<i64: 1, 32>}, {pipeline_mode = #tpu.pipeline_mode<synchronous>, transform_indices = @transform_7, window_bounds = array<i64: 1, 32>}, {pipeline_mode = #tpu.pipeline_mode<synchronous>, transform_indices = @transform_8, window_bounds = array<i64: 32, 32>}, {pipeline_mode = #tpu.pipeline_mode<synchronous>, transform_indices = @transform_9, window_bounds = array<i64: 1, 32>}, {pipeline_mode = #tpu.pipeline_mode<synchronous>, transform_indices = @transform_10, window_bounds = array<i64: 32, 64>}, {pipeline_mode = #tpu.pipeline_mode<synchronous>, transform_indices = @transform_11, window_bounds = array<i64: 1, 64>}, {pipeline_mode = #tpu.pipeline_mode<synchronous>, transform_indices = @transform_12, window_bounds = array<i64: 32, 32>}, {pipeline_mode = #tpu.pipeline_mode<synchronous>, transform_indices = @transform_13, window_bounds = array<i64: 1, 32>}, {pipeline_mode = #tpu.pipeline_mode<synchronous>, transform_indices = @transform_14, window_bounds = array<i64: 1, 32>}, {pipeline_mode = #tpu.pipeline_mode<synchronous>, transform_indices = @transform_15, window_bounds = array<i64: 1, 32>}, {pipeline_mode = #tpu.pipeline_mode<synchronous>, transform_indices = @transform_16, window_bounds = array<i64: 32, 64>}, {pipeline_mode = #tpu.pipeline_mode<synchronous>, transform_indices = @transform_17, window_bounds = array<i64: 1, 64>}, {pipeline_mode = #tpu.pipeline_mode<synchronous>, transform_indices = @transform_18, window_bounds = array<i64: 64, 32>}, {pipeline_mode = #tpu.pipeline_mode<synchronous>, transform_indices = @transform_19, window_bounds = array<i64: 1, 32>}, {pipeline_mode = #tpu.pipeline_mode<synchronous>, transform_indices = @transform_20, window_bounds = array<i64: 1, 32>}, {pipeline_mode = #tpu.pipeline_mode<synchronous>, transform_indices = @transform_21, window_bounds = array<i64: 1, 32>}, {transform_indices = @transform_22, window_bounds = array<i64: 2, 8, 32>}]} {
    %c0 = arith.constant 0 : index
    %c0_0 = arith.constant 0 : index
    %c0_1 = arith.constant 0 : index
    %0 = vector.load %arg1[%c0, %c0_0, %c0_1] : memref<2x8x32xbf16, #tpu.memory_space<vmem>>, vector<2x8x32xbf16>
    %1 = vector.shape_cast %0 : vector<2x8x32xbf16> to vector<16x32xbf16>
    %2 = arith.extf %1 : vector<16x32xbf16> to vector<16x32xf32>
    %c0_2 = arith.constant 0 : index
    %c0_3 = arith.constant 0 : index
    %c0_4 = arith.constant 0 : index
    %3 = vector.load %arg2[%c0_2, %c0_3, %c0_4] : memref<2x8x32xbf16, #tpu.memory_space<vmem>>, vector<2x8x32xbf16>
    %4 = vector.shape_cast %3 : vector<2x8x32xbf16> to vector<16x32xbf16>
    %5 = tpu.iota {dimensions = array<i32: 0>} : vector<8x8xi32>
    %6 = tpu.iota {dimensions = array<i32: 1>} : vector<8x8xi32>
    %7 = arith.cmpi sle, %6, %5 : vector<8x8xi32>
    %c0_5 = arith.constant 0 : index
    %c0_6 = arith.constant 0 : index
    %8 = vector.load %arg3[%c0_5, %c0_6] : memref<32x96xbf16, #tpu.memory_space<vmem>>, vector<32x96xbf16>
    %cst = arith.constant dense<0.000000e+00> : vector<16x96xf32>
    %9 = tpu.matmul %1, %8, %cst {dimension_numbers = #tpu.dot_dimension_numbers<[1], [0], [0], [1], [0, 0, 1, 1], [], []>} : vector<16x32xbf16>, vector<32x96xbf16>, vector<16x96xf32> -> vector<16x96xf32>
    %c0_7 = arith.constant 0 : index
    %c0_8 = arith.constant 0 : index
    %10 = vector.load %arg4[%c0_7, %c0_8] : memref<1x96xf32, #tpu.memory_space<vmem>>, vector<1x96xf32>
    %11 = vector.broadcast %10 : vector<1x96xf32> to vector<16x96xf32>
    %12 = arith.addf %9, %11 : vector<16x96xf32>
    %13 = vector.extract_strided_slice %12 {offsets = [0, 0], sizes = [16, 32], strides = [1, 1]} : vector<16x96xf32> to vector<16x32xf32>
    %14 = vector.extract_strided_slice %12 {offsets = [0, 32], sizes = [16, 32], strides = [1, 1]} : vector<16x96xf32> to vector<16x32xf32>
    %15 = arith.truncf %14 : vector<16x32xf32> to vector<16x32xbf16>
    %16 = vector.extract_strided_slice %12 {offsets = [0, 64], sizes = [16, 32], strides = [1, 1]} : vector<16x96xf32> to vector<16x32xf32>
    %17 = arith.truncf %16 : vector<16x32xf32> to vector<16x32xbf16>
    %cst_9 = arith.constant 0.353553385 : f32
    %18 = vector.broadcast %cst_9 : f32 to vector<16x32xf32>
    %19 = arith.mulf %13, %18 : vector<16x32xf32>
    %20 = arith.truncf %19 : vector<16x32xf32> to vector<16x32xbf16>
    %21 = vector.shape_cast %20 : vector<16x32xbf16> to vector<2x8x4x8xbf16>
    %22 = tpu.transpose %21, [0, 2, 1, 3] : vector<2x8x4x8xbf16> -> vector<2x4x8x8xbf16>
    %23 = vector.shape_cast %22 : vector<2x4x8x8xbf16> to vector<8x8x8xbf16>
    %24 = vector.shape_cast %15 : vector<16x32xbf16> to vector<2x8x4x8xbf16>
    %25 = tpu.transpose %24, [0, 2, 1, 3] : vector<2x8x4x8xbf16> -> vector<2x4x8x8xbf16>
    %26 = vector.shape_cast %25 : vector<2x4x8x8xbf16> to vector<8x8x8xbf16>
    %27 = vector.shape_cast %17 : vector<16x32xbf16> to vector<2x8x4x8xbf16>
    %28 = tpu.transpose %27, [0, 2, 1, 3] : vector<2x8x4x8xbf16> -> vector<2x4x8x8xbf16>
    %29 = vector.shape_cast %28 : vector<2x4x8x8xbf16> to vector<8x8x8xbf16>
    "tpu.trace_start"() <{level = 10 : i32, message = "bqd,bkd->bqk"}> : () -> ()
    %cst_10 = arith.constant dense<0.000000e+00> : vector<8x8x8xf32>
    %30 = tpu.matmul %23, %26, %cst_10 {dimension_numbers = #tpu.dot_dimension_numbers<[2], [2], [1], [1], [0, 0, 0, 1, 1, 1], [0], [0]>} : vector<8x8x8xbf16>, vector<8x8x8xbf16>, vector<8x8x8xf32> -> vector<8x8x8xf32>
    "tpu.trace_stop"() : () -> ()
    %31 = vector.shape_cast %7 : vector<8x8xi1> to vector<1x8x8xi1>
    %cst_11 = arith.constant -1.000000e+30 : f32
    %32 = vector.shape_cast %31 : vector<1x8x8xi1> to vector<1x8x8xi1>
    %33 = vector.broadcast %32 : vector<1x8x8xi1> to vector<8x8x8xi1>
    %34 = vector.broadcast %cst_11 : f32 to vector<8x8x8xf32>
    %35 = arith.select %33, %30, %34 : vector<8x8x8xi1>, vector<8x8x8xf32>
    %cst_12 = arith.constant dense<0xFF800000> : vector<8x8xf32>
    %36 = vector.multi_reduction <maximumf>, %35, %cst_12 [2] : vector<8x8x8xf32> to vector<8x8xf32>
    %37 = vector.shape_cast %36 : vector<8x8xf32> to vector<8x8x1xf32>
    %38 = vector.broadcast %37 : vector<8x8x1xf32> to vector<8x8x8xf32>
    %39 = arith.subf %35, %38 : vector<8x8x8xf32>
    %40 = math.exp %39 : vector<8x8x8xf32>
    %cst_13 = arith.constant dense<0.000000e+00> : vector<8x8xf32>
    %41 = vector.multi_reduction <add>, %40, %cst_13 [2] : vector<8x8x8xf32> to vector<8x8xf32>
    %42 = vector.shape_cast %41 : vector<8x8xf32> to vector<8x8x1xf32>
    %43 = tpu.reciprocal %42 {approx = true} : vector<8x8x1xf32> -> vector<8x8x1xf32>
    %44 = vector.broadcast %43 : vector<8x8x1xf32> to vector<8x8x8xf32>
    %45 = arith.mulf %40, %44 : vector<8x8x8xf32>
    %46 = arith.truncf %45 : vector<8x8x8xf32> to vector<8x8x8xbf16>
    "tpu.trace_start"() <{level = 10 : i32, message = "bqk,bkd->bqd"}> : () -> ()
    %cst_14 = arith.constant dense<0.000000e+00> : vector<8x8x8xf32>
    %47 = tpu.matmul %46, %29, %cst_14 {dimension_numbers = #tpu.dot_dimension_numbers<[2], [1], [1], [2], [0, 0, 0, 1, 1, 2], [0], [0]>} : vector<8x8x8xbf16>, vector<8x8x8xbf16>, vector<8x8x8xf32> -> vector<8x8x8xf32>
    "tpu.trace_stop"() : () -> ()
    %48 = vector.shape_cast %47 : vector<8x8x8xf32> to vector<2x4x8x8xf32>
    %49 = tpu.transpose %48, [0, 2, 1, 3] : vector<2x4x8x8xf32> -> vector<2x8x4x8xf32>
    %50 = vector.shape_cast %49 : vector<2x8x4x8xf32> to vector<16x32xf32>
    %51 = arith.truncf %50 : vector<16x32xf32> to vector<16x32xbf16>
    %c0_15 = arith.constant 0 : index
    %c0_16 = arith.constant 0 : index
    %52 = vector.load %arg5[%c0_15, %c0_16] : memref<32x32xbf16, #tpu.memory_space<vmem>>, vector<32x32xbf16>
    %cst_17 = arith.constant dense<0.000000e+00> : vector<16x32xf32>
    %53 = tpu.matmul %51, %52, %cst_17 {dimension_numbers = #tpu.dot_dimension_numbers<[1], [0], [0], [1], [0, 0, 1, 1], [], []>} : vector<16x32xbf16>, vector<32x32xbf16>, vector<16x32xf32> -> vector<16x32xf32>
    %c0_18 = arith.constant 0 : index
    %c0_19 = arith.constant 0 : index
    %54 = vector.load %arg6[%c0_18, %c0_19] : memref<1x32xf32, #tpu.memory_space<vmem>>, vector<1x32xf32>
    %55 = vector.broadcast %54 : vector<1x32xf32> to vector<16x32xf32>
    %56 = arith.addf %53, %55 : vector<16x32xf32>
    %57 = arith.addf %2, %56 : vector<16x32xf32>
    %cst_20 = arith.constant dense<0.000000e+00> : vector<16xf32>
    %58 = vector.multi_reduction <add>, %57, %cst_20 [1] : vector<16x32xf32> to vector<16xf32>
    %59 = vector.shape_cast %58 : vector<16xf32> to vector<16x1xf32>
    %cst_21 = arith.constant 3.200000e+01 : f32
    %60 = vector.broadcast %cst_21 : f32 to vector<16x1xf32>
    %61 = arith.divf %59, %60 : vector<16x1xf32>
    %62 = vector.broadcast %61 : vector<16x1xf32> to vector<16x32xf32>
    %63 = arith.subf %57, %62 : vector<16x32xf32>
    %64 = arith.mulf %63, %63 : vector<16x32xf32>
    %cst_22 = arith.constant dense<0.000000e+00> : vector<16xf32>
    %65 = vector.multi_reduction <add>, %64, %cst_22 [1] : vector<16x32xf32> to vector<16xf32>
    %66 = vector.shape_cast %65 : vector<16xf32> to vector<16x1xf32>
    %cst_23 = arith.constant 3.200000e+01 : f32
    %67 = vector.broadcast %cst_23 : f32 to vector<16x1xf32>
    %68 = arith.divf %66, %67 : vector<16x1xf32>
    %69 = vector.broadcast %61 : vector<16x1xf32> to vector<16x32xf32>
    %70 = arith.subf %57, %69 : vector<16x32xf32>
    %cst_24 = arith.constant 9.99999974E-6 : f32
    %71 = vector.broadcast %cst_24 : f32 to vector<16x1xf32>
    %72 = arith.addf %68, %71 : vector<16x1xf32>
    %73 = math.rsqrt %72 : vector<16x1xf32>
    %74 = vector.broadcast %73 : vector<16x1xf32> to vector<16x32xf32>
    %75 = arith.mulf %70, %74 : vector<16x32xf32>
    %c0_25 = arith.constant 0 : index
    %c0_26 = arith.constant 0 : index
    %76 = vector.load %arg7[%c0_25, %c0_26] : memref<1x32xf32, #tpu.memory_space<vmem>>, vector<1x32xf32>
    %77 = vector.broadcast %76 : vector<1x32xf32> to vector<16x32xf32>
    %78 = arith.mulf %75, %77 : vector<16x32xf32>
    %c0_27 = arith.constant 0 : index
    %c0_28 = arith.constant 0 : index
    %79 = vector.load %arg8[%c0_27, %c0_28] : memref<1x32xf32, #tpu.memory_space<vmem>>, vector<1x32xf32>
    %80 = vector.broadcast %79 : vector<1x32xf32> to vector<16x32xf32>
    %81 = arith.addf %78, %80 : vector<16x32xf32>
    %82 = arith.truncf %81 : vector<16x32xf32> to vector<16x32xbf16>
    %c0_29 = arith.constant 0 : index
    %c0_30 = arith.constant 0 : index
    %83 = vector.load %arg9[%c0_29, %c0_30] : memref<32x32xbf16, #tpu.memory_space<vmem>>, vector<32x32xbf16>
    %cst_31 = arith.constant dense<0.000000e+00> : vector<16x32xf32>
    %84 = tpu.matmul %82, %83, %cst_31 {dimension_numbers = #tpu.dot_dimension_numbers<[1], [0], [0], [1], [0, 0, 1, 1], [], []>} : vector<16x32xbf16>, vector<32x32xbf16>, vector<16x32xf32> -> vector<16x32xf32>
    %c0_32 = arith.constant 0 : index
    %c0_33 = arith.constant 0 : index
    %85 = vector.load %arg10[%c0_32, %c0_33] : memref<1x32xf32, #tpu.memory_space<vmem>>, vector<1x32xf32>
    %86 = vector.broadcast %85 : vector<1x32xf32> to vector<16x32xf32>
    %87 = arith.addf %84, %86 : vector<16x32xf32>
    %c0_34 = arith.constant 0 : index
    %c0_35 = arith.constant 0 : index
    %88 = vector.load %arg11[%c0_34, %c0_35] : memref<32x64xbf16, #tpu.memory_space<vmem>>, vector<32x64xbf16>
    %cst_36 = arith.constant dense<0.000000e+00> : vector<16x64xf32>
    %89 = tpu.matmul %4, %88, %cst_36 {dimension_numbers = #tpu.dot_dimension_numbers<[1], [0], [0], [1], [0, 0, 1, 1], [], []>} : vector<16x32xbf16>, vector<32x64xbf16>, vector<16x64xf32> -> vector<16x64xf32>
    %c0_37 = arith.constant 0 : index
    %c0_38 = arith.constant 0 : index
    %90 = vector.load %arg12[%c0_37, %c0_38] : memref<1x64xf32, #tpu.memory_space<vmem>>, vector<1x64xf32>
    %91 = vector.broadcast %90 : vector<1x64xf32> to vector<16x64xf32>
    %92 = arith.addf %89, %91 : vector<16x64xf32>
    %93 = vector.extract_strided_slice %92 {offsets = [0, 0], sizes = [16, 32], strides = [1, 1]} : vector<16x64xf32> to vector<16x32xf32>
    %94 = arith.truncf %93 : vector<16x32xf32> to vector<16x32xbf16>
    %95 = vector.extract_strided_slice %92 {offsets = [0, 32], sizes = [16, 32], strides = [1, 1]} : vector<16x64xf32> to vector<16x32xf32>
    %96 = arith.truncf %95 : vector<16x32xf32> to vector<16x32xbf16>
    %cst_39 = arith.constant 0.353553385 : f32
    %97 = vector.broadcast %cst_39 : f32 to vector<16x32xf32>
    %98 = arith.mulf %87, %97 : vector<16x32xf32>
    %99 = arith.truncf %98 : vector<16x32xf32> to vector<16x32xbf16>
    %100 = vector.shape_cast %99 : vector<16x32xbf16> to vector<2x8x4x8xbf16>
    %101 = tpu.transpose %100, [0, 2, 1, 3] : vector<2x8x4x8xbf16> -> vector<2x4x8x8xbf16>
    %102 = vector.shape_cast %101 : vector<2x4x8x8xbf16> to vector<8x8x8xbf16>
    %103 = vector.shape_cast %94 : vector<16x32xbf16> to vector<2x8x4x8xbf16>
    %104 = tpu.transpose %103, [0, 2, 1, 3] : vector<2x8x4x8xbf16> -> vector<2x4x8x8xbf16>
    %105 = vector.shape_cast %104 : vector<2x4x8x8xbf16> to vector<8x8x8xbf16>
    %106 = vector.shape_cast %96 : vector<16x32xbf16> to vector<2x8x4x8xbf16>
    %107 = tpu.transpose %106, [0, 2, 1, 3] : vector<2x8x4x8xbf16> -> vector<2x4x8x8xbf16>
    %108 = vector.shape_cast %107 : vector<2x4x8x8xbf16> to vector<8x8x8xbf16>
    "tpu.trace_start"() <{level = 10 : i32, message = "bqd,bkd->bqk"}> : () -> ()
    %cst_40 = arith.constant dense<0.000000e+00> : vector<8x8x8xf32>
    %109 = tpu.matmul %102, %105, %cst_40 {dimension_numbers = #tpu.dot_dimension_numbers<[2], [2], [1], [1], [0, 0, 0, 1, 1, 1], [0], [0]>} : vector<8x8x8xbf16>, vector<8x8x8xbf16>, vector<8x8x8xf32> -> vector<8x8x8xf32>
    "tpu.trace_stop"() : () -> ()
    %cst_41 = arith.constant dense<0xFF800000> : vector<8x8xf32>
    %110 = vector.multi_reduction <maximumf>, %109, %cst_41 [2] : vector<8x8x8xf32> to vector<8x8xf32>
    %111 = vector.shape_cast %110 : vector<8x8xf32> to vector<8x8x1xf32>
    %112 = vector.broadcast %111 : vector<8x8x1xf32> to vector<8x8x8xf32>
    %113 = arith.subf %109, %112 : vector<8x8x8xf32>
    %114 = math.exp %113 : vector<8x8x8xf32>
    %cst_42 = arith.constant dense<0.000000e+00> : vector<8x8xf32>
    %115 = vector.multi_reduction <add>, %114, %cst_42 [2] : vector<8x8x8xf32> to vector<8x8xf32>
    %116 = vector.shape_cast %115 : vector<8x8xf32> to vector<8x8x1xf32>
    %117 = tpu.reciprocal %116 {approx = true} : vector<8x8x1xf32> -> vector<8x8x1xf32>
    %118 = vector.broadcast %117 : vector<8x8x1xf32> to vector<8x8x8xf32>
    %119 = arith.mulf %114, %118 : vector<8x8x8xf32>
    %120 = arith.truncf %119 : vector<8x8x8xf32> to vector<8x8x8xbf16>
    "tpu.trace_start"() <{level = 10 : i32, message = "bqk,bkd->bqd"}> : () -> ()
    %cst_43 = arith.constant dense<0.000000e+00> : vector<8x8x8xf32>
    %121 = tpu.matmul %120, %108, %cst_43 {dimension_numbers = #tpu.dot_dimension_numbers<[2], [1], [1], [2], [0, 0, 0, 1, 1, 2], [0], [0]>} : vector<8x8x8xbf16>, vector<8x8x8xbf16>, vector<8x8x8xf32> -> vector<8x8x8xf32>
    "tpu.trace_stop"() : () -> ()
    %122 = vector.shape_cast %121 : vector<8x8x8xf32> to vector<2x4x8x8xf32>
    %123 = tpu.transpose %122, [0, 2, 1, 3] : vector<2x4x8x8xf32> -> vector<2x8x4x8xf32>
    %124 = vector.shape_cast %123 : vector<2x8x4x8xf32> to vector<16x32xf32>
    %125 = arith.truncf %124 : vector<16x32xf32> to vector<16x32xbf16>
    %c0_44 = arith.constant 0 : index
    %c0_45 = arith.constant 0 : index
    %126 = vector.load %arg13[%c0_44, %c0_45] : memref<32x32xbf16, #tpu.memory_space<vmem>>, vector<32x32xbf16>
    %cst_46 = arith.constant dense<0.000000e+00> : vector<16x32xf32>
    %127 = tpu.matmul %125, %126, %cst_46 {dimension_numbers = #tpu.dot_dimension_numbers<[1], [0], [0], [1], [0, 0, 1, 1], [], []>} : vector<16x32xbf16>, vector<32x32xbf16>, vector<16x32xf32> -> vector<16x32xf32>
    %c0_47 = arith.constant 0 : index
    %c0_48 = arith.constant 0 : index
    %128 = vector.load %arg14[%c0_47, %c0_48] : memref<1x32xf32, #tpu.memory_space<vmem>>, vector<1x32xf32>
    %129 = vector.broadcast %128 : vector<1x32xf32> to vector<16x32xf32>
    %130 = arith.addf %127, %129 : vector<16x32xf32>
    %131 = arith.addf %81, %130 : vector<16x32xf32>
    %cst_49 = arith.constant dense<0.000000e+00> : vector<16xf32>
    %132 = vector.multi_reduction <add>, %131, %cst_49 [1] : vector<16x32xf32> to vector<16xf32>
    %133 = vector.shape_cast %132 : vector<16xf32> to vector<16x1xf32>
    %cst_50 = arith.constant 3.200000e+01 : f32
    %134 = vector.broadcast %cst_50 : f32 to vector<16x1xf32>
    %135 = arith.divf %133, %134 : vector<16x1xf32>
    %136 = vector.broadcast %135 : vector<16x1xf32> to vector<16x32xf32>
    %137 = arith.subf %131, %136 : vector<16x32xf32>
    %138 = arith.mulf %137, %137 : vector<16x32xf32>
    %cst_51 = arith.constant dense<0.000000e+00> : vector<16xf32>
    %139 = vector.multi_reduction <add>, %138, %cst_51 [1] : vector<16x32xf32> to vector<16xf32>
    %140 = vector.shape_cast %139 : vector<16xf32> to vector<16x1xf32>
    %cst_52 = arith.constant 3.200000e+01 : f32
    %141 = vector.broadcast %cst_52 : f32 to vector<16x1xf32>
    %142 = arith.divf %140, %141 : vector<16x1xf32>
    %143 = vector.broadcast %135 : vector<16x1xf32> to vector<16x32xf32>
    %144 = arith.subf %131, %143 : vector<16x32xf32>
    %cst_53 = arith.constant 9.99999974E-6 : f32
    %145 = vector.broadcast %cst_53 : f32 to vector<16x1xf32>
    %146 = arith.addf %142, %145 : vector<16x1xf32>
    %147 = math.rsqrt %146 : vector<16x1xf32>
    %148 = vector.broadcast %147 : vector<16x1xf32> to vector<16x32xf32>
    %149 = arith.mulf %144, %148 : vector<16x32xf32>
    %c0_54 = arith.constant 0 : index
    %c0_55 = arith.constant 0 : index
    %150 = vector.load %arg15[%c0_54, %c0_55] : memref<1x32xf32, #tpu.memory_space<vmem>>, vector<1x32xf32>
    %151 = vector.broadcast %150 : vector<1x32xf32> to vector<16x32xf32>
    %152 = arith.mulf %149, %151 : vector<16x32xf32>
    %c0_56 = arith.constant 0 : index
    %c0_57 = arith.constant 0 : index
    %153 = vector.load %arg16[%c0_56, %c0_57] : memref<1x32xf32, #tpu.memory_space<vmem>>, vector<1x32xf32>
    %154 = vector.broadcast %153 : vector<1x32xf32> to vector<16x32xf32>
    %155 = arith.addf %152, %154 : vector<16x32xf32>
    %156 = arith.truncf %155 : vector<16x32xf32> to vector<16x32xbf16>
    %c0_58 = arith.constant 0 : index
    %c0_59 = arith.constant 0 : index
    %157 = vector.load %arg17[%c0_58, %c0_59] : memref<32x64xbf16, #tpu.memory_space<vmem>>, vector<32x64xbf16>
    %cst_60 = arith.constant dense<0.000000e+00> : vector<16x64xf32>
    %158 = tpu.matmul %156, %157, %cst_60 {dimension_numbers = #tpu.dot_dimension_numbers<[1], [0], [0], [1], [0, 0, 1, 1], [], []>} : vector<16x32xbf16>, vector<32x64xbf16>, vector<16x64xf32> -> vector<16x64xf32>
    %c0_61 = arith.constant 0 : index
    %c0_62 = arith.constant 0 : index
    %159 = vector.load %arg18[%c0_61, %c0_62] : memref<1x64xf32, #tpu.memory_space<vmem>>, vector<1x64xf32>
    %160 = vector.broadcast %159 : vector<1x64xf32> to vector<16x64xf32>
    %161 = arith.addf %158, %160 : vector<16x64xf32>
    %cst_63 = arith.constant 0.000000e+00 : f32
    %162 = vector.broadcast %cst_63 : f32 to vector<16x64xf32>
    %163 = arith.maximumf %161, %162 : vector<16x64xf32>
    %164 = arith.truncf %163 : vector<16x64xf32> to vector<16x64xbf16>
    %c0_64 = arith.constant 0 : index
    %c0_65 = arith.constant 0 : index
    %165 = vector.load %arg19[%c0_64, %c0_65] : memref<64x32xbf16, #tpu.memory_space<vmem>>, vector<64x32xbf16>
    %cst_66 = arith.constant dense<0.000000e+00> : vector<16x32xf32>
    %166 = tpu.matmul %164, %165, %cst_66 {dimension_numbers = #tpu.dot_dimension_numbers<[1], [0], [0], [1], [0, 0, 1, 1], [], []>} : vector<16x64xbf16>, vector<64x32xbf16>, vector<16x32xf32> -> vector<16x32xf32>
    %c0_67 = arith.constant 0 : index
    %c0_68 = arith.constant 0 : index
    %167 = vector.load %arg20[%c0_67, %c0_68] : memref<1x32xf32, #tpu.memory_space<vmem>>, vector<1x32xf32>
    %168 = vector.broadcast %167 : vector<1x32xf32> to vector<16x32xf32>
    %169 = arith.addf %166, %168 : vector<16x32xf32>
    %170 = arith.addf %155, %169 : vector<16x32xf32>
    %cst_69 = arith.constant dense<0.000000e+00> : vector<16xf32>
    %171 = vector.multi_reduction <add>, %170, %cst_69 [1] : vector<16x32xf32> to vector<16xf32>
    %172 = vector.shape_cast %171 : vector<16xf32> to vector<16x1xf32>
    %cst_70 = arith.constant 3.200000e+01 : f32
    %173 = vector.broadcast %cst_70 : f32 to vector<16x1xf32>
    %174 = arith.divf %172, %173 : vector<16x1xf32>
    %175 = vector.broadcast %174 : vector<16x1xf32> to vector<16x32xf32>
    %176 = arith.subf %170, %175 : vector<16x32xf32>
    %177 = arith.mulf %176, %176 : vector<16x32xf32>
    %cst_71 = arith.constant dense<0.000000e+00> : vector<16xf32>
    %178 = vector.multi_reduction <add>, %177, %cst_71 [1] : vector<16x32xf32> to vector<16xf32>
    %179 = vector.shape_cast %178 : vector<16xf32> to vector<16x1xf32>
    %cst_72 = arith.constant 3.200000e+01 : f32
    %180 = vector.broadcast %cst_72 : f32 to vector<16x1xf32>
    %181 = arith.divf %179, %180 : vector<16x1xf32>
    %182 = vector.broadcast %174 : vector<16x1xf32> to vector<16x32xf32>
    %183 = arith.subf %170, %182 : vector<16x32xf32>
    %cst_73 = arith.constant 9.99999974E-6 : f32
    %184 = vector.broadcast %cst_73 : f32 to vector<16x1xf32>
    %185 = arith.addf %181, %184 : vector<16x1xf32>
    %186 = math.rsqrt %185 : vector<16x1xf32>
    %187 = vector.broadcast %186 : vector<16x1xf32> to vector<16x32xf32>
    %188 = arith.mulf %183, %187 : vector<16x32xf32>
    %c0_74 = arith.constant 0 : index
    %c0_75 = arith.constant 0 : index
    %189 = vector.load %arg21[%c0_74, %c0_75] : memref<1x32xf32, #tpu.memory_space<vmem>>, vector<1x32xf32>
    %190 = vector.broadcast %189 : vector<1x32xf32> to vector<16x32xf32>
    %191 = arith.mulf %188, %190 : vector<16x32xf32>
    %c0_76 = arith.constant 0 : index
    %c0_77 = arith.constant 0 : index
    %192 = vector.load %arg22[%c0_76, %c0_77] : memref<1x32xf32, #tpu.memory_space<vmem>>, vector<1x32xf32>
    %193 = vector.broadcast %192 : vector<1x32xf32> to vector<16x32xf32>
    %194 = arith.addf %191, %193 : vector<16x32xf32>
    %195 = arith.truncf %194 : vector<16x32xf32> to vector<16x32xbf16>
    %196 = vector.shape_cast %195 : vector<16x32xbf16> to vector<2x8x32xbf16>
    %c0_78 = arith.constant 0 : index
    %c0_79 = arith.constant 0 : index
    %c0_80 = arith.constant 0 : index
    %197 = vector.load %arg23[%c0_78, %c0_79, %c0_80] : memref<2x8x32xbf16, #tpu.memory_space<vmem>>, vector<2x8x32xbf16>
    tpu.vector_store %arg23[%c0_78, %c0_79, %c0_80], %196 {strides = array<i32>} : memref<2x8x32xbf16, #tpu.memory_space<vmem>>, vector<2x8x32xbf16>,
    return
  }
  func.func @transform_0(%arg0: i32) -> (i32, i32, i32) {
    %c0_i32 = arith.constant 0 : i32
    %c0_i32_0 = arith.constant 0 : i32
    %c0_i32_1 = arith.constant 0 : i32
    return %arg0, %c0_i32, %c0_i32_0 : i32, i32, i32
  }
  func.func @transform_1(%arg0: i32) -> (i32, i32, i32) {
    %c0_i32 = arith.constant 0 : i32
    %c0_i32_0 = arith.constant 0 : i32
    %c0_i32_1 = arith.constant 0 : i32
    return %arg0, %c0_i32, %c0_i32_0 : i32, i32, i32
  }
  func.func @transform_2(%arg0: i32) -> (i32, i32) {
    %c0_i32 = arith.constant 0 : i32
    %c0_i32_0 = arith.constant 0 : i32
    %c0_i32_1 = arith.constant 0 : i32
    return %c0_i32, %c0_i32_0 : i32, i32
  }
  func.func @transform_3(%arg0: i32) -> (i32, i32) {
    %c0_i32 = arith.constant 0 : i32
    %c0_i32_0 = arith.constant 0 : i32
    %c0_i32_1 = arith.constant 0 : i32
    return %c0_i32, %c0_i32_0 : i32, i32
  }
  func.func @transform_4(%arg0: i32) -> (i32, i32) {
    %c0_i32 = arith.constant 0 : i32
    %c0_i32_0 = arith.constant 0 : i32
    %c0_i32_1 = arith.constant 0 : i32
    return %c0_i32, %c0_i32_0 : i32, i32
  }
  func.func @transform_5(%arg0: i32) -> (i32, i32) {
    %c0_i32 = arith.constant 0 : i32
    %c0_i32_0 = arith.constant 0 : i32
    %c0_i32_1 = arith.constant 0 : i32
    return %c0_i32, %c0_i32_0 : i32, i32
  }
  func.func @transform_6(%arg0: i32) -> (i32, i32) {
    %c0_i32 = arith.constant 0 : i32
    %c0_i32_0 = arith.constant 0 : i32
    %c0_i32_1 = arith.constant 0 : i32
    return %c0_i32, %c0_i32_0 : i32, i32
  }
  func.func @transform_7(%arg0: i32) -> (i32, i32) {
    %c0_i32 = arith.constant 0 : i32
    %c0_i32_0 = arith.constant 0 : i32
    %c0_i32_1 = arith.constant 0 : i32
    return %c0_i32, %c0_i32_0 : i32, i32
  }
  func.func @transform_8(%arg0: i32) -> (i32, i32) {
    %c0_i32 = arith.constant 0 : i32
    %c0_i32_0 = arith.constant 0 : i32
    %c0_i32_1 = arith.constant 0 : i32
    return %c0_i32, %c0_i32_0 : i32, i32
  }
  func.func @transform_9(%arg0: i32) -> (i32, i32) {
    %c0_i32 = arith.constant 0 : i32
    %c0_i32_0 = arith.constant 0 : i32
    %c0_i32_1 = arith.constant 0 : i32
    return %c0_i32, %c0_i32_0 : i32, i32
  }
  func.func @transform_10(%arg0: i32) -> (i32, i32) {
    %c0_i32 = arith.constant 0 : i32
    %c0_i32_0 = arith.constant 0 : i32
    %c0_i32_1 = arith.constant 0 : i32
    return %c0_i32, %c0_i32_0 : i32, i32
  }
  func.func @transform_11(%arg0: i32) -> (i32, i32) {
    %c0_i32 = arith.constant 0 : i32
    %c0_i32_0 = arith.constant 0 : i32
    %c0_i32_1 = arith.constant 0 : i32
    return %c0_i32, %c0_i32_0 : i32, i32
  }
  func.func @transform_12(%arg0: i32) -> (i32, i32) {
    %c0_i32 = arith.constant 0 : i32
    %c0_i32_0 = arith.constant 0 : i32
    %c0_i32_1 = arith.constant 0 : i32
    return %c0_i32, %c0_i32_0 : i32, i32
  }
  func.func @transform_13(%arg0: i32) -> (i32, i32) {
    %c0_i32 = arith.constant 0 : i32
    %c0_i32_0 = arith.constant 0 : i32
    %c0_i32_1 = arith.constant 0 : i32
    return %c0_i32, %c0_i32_0 : i32, i32
  }
  func.func @transform_14(%arg0: i32) -> (i32, i32) {
    %c0_i32 = arith.constant 0 : i32
    %c0_i32_0 = arith.constant 0 : i32
    %c0_i32_1 = arith.constant 0 : i32
    return %c0_i32, %c0_i32_0 : i32, i32
  }
  func.func @transform_15(%arg0: i32) -> (i32, i32) {
    %c0_i32 = arith.constant 0 : i32
    %c0_i32_0 = arith.constant 0 : i32
    %c0_i32_1 = arith.constant 0 : i32
    return %c0_i32, %c0_i32_0 : i32, i32
  }
  func.func @transform_16(%arg0: i32) -> (i32, i32) {
    %c0_i32 = arith.constant 0 : i32
    %c0_i32_0 = arith.constant 0 : i32
    %c0_i32_1 = arith.constant 0 : i32
    return %c0_i32, %c0_i32_0 : i32, i32
  }
  func.func @transform_17(%arg0: i32) -> (i32, i32) {
    %c0_i32 = arith.constant 0 : i32
    %c0_i32_0 = arith.constant 0 : i32
    %c0_i32_1 = arith.constant 0 : i32
    return %c0_i32, %c0_i32_0 : i32, i32
  }
  func.func @transform_18(%arg0: i32) -> (i32, i32) {
    %c0_i32 = arith.constant 0 : i32
    %c0_i32_0 = arith.constant 0 : i32
    %c0_i32_1 = arith.constant 0 : i32
    return %c0_i32, %c0_i32_0 : i32, i32
  }
  func.func @transform_19(%arg0: i32) -> (i32, i32) {
    %c0_i32 = arith.constant 0 : i32
    %c0_i32_0 = arith.constant 0 : i32
    %c0_i32_1 = arith.constant 0 : i32
    return %c0_i32, %c0_i32_0 : i32, i32
  }
  func.func @transform_20(%arg0: i32) -> (i32, i32) {
    %c0_i32 = arith.constant 0 : i32
    %c0_i32_0 = arith.constant 0 : i32
    %c0_i32_1 = arith.constant 0 : i32
    return %c0_i32, %c0_i32_0 : i32, i32
  }
  func.func @transform_21(%arg0: i32) -> (i32, i32) {
    %c0_i32 = arith.constant 0 : i32
    %c0_i32_0 = arith.constant 0 : i32
    %c0_i32_1 = arith.constant 0 : i32
    return %c0_i32, %c0_i32_0 : i32, i32
  }
  func.func @transform_22(%arg0: i32) -> (i32, i32, i32) {
    %c0_i32 = arith.constant 0 : i32
    %c0_i32_0 = arith.constant 0 : i32
    %c0_i32_1 = arith.constant 0 : i32
    return %arg0, %c0_i32, %c0_i32_0 : i32, i32, i32
  }
}

</mosaic_0001>

<bundles_post_ra>
// kernel: simple_decoder_llm_forward.5
= control target key start
LH: loop header
LB: loop body
LE: loop exit
PB: predicated region body
PF: predicated region fallthrough
CT: control target
= control target key end

     0   :  { %v158_v1 = vmov 0.0   ;;  %vm159_vm0 = vmmov 0   ;;  %s207_s0 = inlined_call_operand.vmem [shape: bf16[16,32], index: 0, kind: input, shape index: {}]   ;;  %s208_s1 = inlined_call_operand.vmem [shape: bf16[32,64], index: 1, kind: input, shape index: {}]   ;;  %s209_s2 = inlined_call_operand.vmem [shape: f32[1,64], index: 2, kind: input, shape index: {}]   ;;  %s210_s3 = inlined_call_operand.hbm [shape: f32[16,64], index: 3, kind: output, shape index: {}]  }
   0x1   :  { %v131_v0 = vld [vmem:[%s208_s1] sm:$0xff]   ;;  %118 = vmatprep.subr.bf16.mxu0 %v158_v1  ;;  %v132_v2 = vld [vmem:[%s208_s1 + $0x8] sm:$0xff]   ;;  %122 = vmatprep.mubr.msk.bf16.mxu0 %vm159_vm0, %v158_v1 }
   0x2   :  { %119 = vmatpush3.bf16.msra.mxu0 %v131_v0 }
   0x3   :  { %120 = vmatprep.subr.bf16.mxu0 %v158_v1 }
   0x4   :  { %8 = vsyncpa [#allocation3], 0  ;;  %v133_v3 = vld [vmem:[%s207_s0] sm:$0xff]   ;;  %vm46_vm1 = vcmask 261120   ;;  %s160_s20 = smov [#allocation2]   ;;  %vm91_vm2 = vcmask 523264  }
   0x5   :  { %v110_v4 = vld [vmem:[%s209_s2] ss:$0 sm:$0xff]  ;;  %s99_s21 = sshll.u32 %s160_s20, 4  ;;  %s100_s21 = int_to_ptr.vmem [resolvable:$true] %s99_s21 }
   0x6   :  { %121 = vmatpush3.bf16.msra.mxu0 %v132_v2  ;;  %s134_s0 = scalar_lea.vmem %s100_s21, 256  ;;  %p139_p1 = scmp.lt.s32.totalorder %s100_s21, %s100_s21 }
   0x7   :  { %p135_p0 = scmp.ne.s32.totalorder %s100_s21, %s134_s0  ;;  %p140_p2 = scmp.lt.s32.totalorder %s134_s0, %s134_s0 }
   0x9   :  { %123 = vmatmul.mubr.msk.bf16.vlgmr.msra.gmra.mrb[0].mxu0 %vm46_vm1, %v133_v3  ;;  %p141_p3 = por %p140_p2, %p139_p1 }
   0xb   :  { %p142_p4 = pnand %p141_p3, %p135_p0 }
  0xdc   :  { %v84_v5 = vpop.f32.mrb[0].mxu0 }
  0xdd   :  { %v85_v6 = vadd.f32 %v110_v4, %v84_v5  ;;  %v124_v7 = vpop.f32.mrb[1].mxu0 }
  0xde   :  { %v87_v8 = vpop.f32.mrb[2].mxu0 }
  0xdf   :  { %92 = vst.msk [vmem:[#allocation2] sm:$0xff] %vm91_vm2, %v85_v6  ;;  %v88_v9 = vadd.f32 %v110_v4, %v87_v8  ;;  %v125_v10 = vpop.f32.mrb[3].mxu0 }
  0xe1   :  { %93 = vst.msk [vmem:[#allocation2 + $0x8] sm:$0xff] %vm91_vm2, %v88_v9 }
  0xe2   :  { %145 = shalt.err (!%p142_p4)
}
  0xe3   :  { %s146_s22 = scalar_lea.hbm %s210_s3, 256 }
  0xe4   :  { %p147_p5 = scmp.ne.s32.totalorder %s210_s3, %s146_s22  ;;  %p150_p6 = scmp.lt.u32.totalorder %s146_s22, %s210_s3 }
  0xe6   :  { %p152_p7 = pnand %p150_p6, %p147_p5 }
  0xe8   :  { %155 = shalt.err (!%p152_p7)
}
  0xe9   :  { %s161_s27 = smov 128   ;;  %s162_s28 = smov 8  }
  0xea   :  { %105 = dma.vmem_to_hbm [thread:$0]  %s100_s21, 256, %s210_s3, [#allocation3], %s161_s27, %s161_s27, %s162_s28  }
  0xeb   :  { %156 = dma.done.wait [#allocation3], 256  }
  0xec   :  { %157 = vsyncadd [#allocation3], 4294967040 }
  0xed   :  { %109 = vsyncpa [#allocation3], 1 }

// kernel: simple_decoder_llm_forward.4
= control target key start
LH: loop header
LB: loop body
LE: loop exit
PB: predicated region body
PF: predicated region fallthrough
CT: control target
= control target key end

     0   :  { %s6399_s0 = inlined_call_operand.vmem [shape: bf16[2,8,32], index: 0, kind: input, shape index: {}]   ;;  %s6400_s1 = inlined_call_operand.vmem [shape: bf16[2,8,32], index: 1, kind: input, shape index: {}]   ;;  %s6401_s2 = inlined_call_operand.vmem [shape: bf16[32,96], index: 2, kind: input, shape index: {}]   ;;  %s6402_s3 = inlined_call_operand.vmem [shape: f32[1,96], index: 3, kind: input, shape index: {}]   ;;  %s6403_s4 = inlined_call_operand.vmem [shape: bf16[32,32], index: 4, kind: input, shape index: {}]   ;;  %s6404_s5 = inlined_call_operand.vmem [shape: f32[1,32], index: 5, kind: input, shape index: {}]   ;;  %s6405_s6 = inlined_call_operand.vmem [shape: f32[1,32], index: 6, kind: input, shape index: {}]   ;;  %s6406_s7 = inlined_call_operand.vmem [shape: f32[1,32], index: 7, kind: input, shape index: {}]   ;;  %s6407_s8 = inlined_call_operand.vmem [shape: bf16[32,32], index: 8, kind: input, shape index: {}]   ;;  %s6408_s9 = inlined_call_operand.vmem [shape: f32[1,32], index: 9, kind: input, shape index: {}]   ;;  %s6409_s10 = inlined_call_operand.vmem [shape: bf16[32,64], index: 10, kind: input, shape index: {}]   ;;  %s6410_s11 = inlined_call_operand.vmem [shape: f32[1,64], index: 11, kind: input, shape index: {}]   ;;  %s6411_s12 = inlined_call_operand.vmem [shape: bf16[32,32], index: 12, kind: input, shape index: {}]   ;;  %s6412_s13 = inlined_call_operand.vmem [shape: f32[1,32], index: 13, kind: input, shape index: {}]   ;;  %s6413_s14 = inlined_call_operand.vmem [shape: f32[1,32], index: 14, kind: input, shape index: {}]   ;;  %s6414_s15 = inlined_call_operand.vmem [shape: f32[1,32], index: 15, kind: input, shape index: {}]   ;;  %s6415_s16 = inlined_call_operand.vmem [shape: bf16[32,64], index: 16, kind: input, shape index: {}]   ;;  %s6416_s17 = inlined_call_operand.vmem [shape: f32[1,64], index: 17, kind: input, shape index: {}]   ;;  %s6417_s18 = inlined_call_operand.vmem [shape: bf16[64,32], index: 18, kind: input, shape index: {}]   ;;  %s6418_s19 = inlined_call_operand.vmem [shape: f32[1,32], index: 19, kind: input, shape index: {}]   ;;  %s6419_s20 = inlined_call_operand.vmem [shape: f32[1,32], index: 20, kind: input, shape index: {}]   ;;  %s6420_s21 = inlined_call_operand.hbm [shape: f32[1,32], index: 21, kind: input, shape index: {}]   ;;  %s6421_s22 = inlined_call_operand.vmem [shape: bf16[2,8,32], index: 22, kind: output, shape index: {}]  }
   0x1   :  { %6425 = sst [smem:[#allocation5_spill]] %s6399_s0 }
   0x2   :  { %6426 = sst [smem:[#allocation6_spill]] %s6400_s1 }
   0x3   :  { %6427 = sst [smem:[#allocation7_spill]] %s6401_s2 }
   0x4   :  { %6428 = sst [smem:[#allocation8_spill]] %s6402_s3 }
   0x5   :  { %6429 = sst [smem:[#allocation9_spill]] %s6403_s4 }
   0x6   :  { %6430 = sst [smem:[#allocation10_spill]] %s6404_s5 }
   0x7   :  { %6431 = sst [smem:[#allocation11_spill]] %s6405_s6 }
   0x8   :  { %27 = vsyncpa [#allocation3], 0  ;;  %s5343_s3 = smov [#allocation2]   ;;  %s5319_s4 = scalar_lea.hbm %s6420_s21, 16 }
   0x9   :  { %s76_s28 = sshll.u32 %s5343_s3, 4  ;;  %p5320_p0 = scmp.ne.s32.totalorder %s6420_s21, %s5319_s4  ;;  %s77_s28 = int_to_ptr.vmem [resolvable:$true] %s76_s28 }
   0xa   :  { %p5323_p1 = scmp.lt.u32.totalorder %s5319_s4, %s6420_s21 }
   0xc   :  { %p5325_p2 = pnand %p5323_p1, %p5320_p0 }
   0xe   :  { %5328 = shalt.err (!%p5325_p2)
}
   0xf   :  { %s5329_s24 = scalar_lea.vmem %s77_s28, 16  ;;  %s5333_s6 = scalar_lea.vmem %s77_s28, 32 }
  0x10   :  { %p5330_p3 = scmp.ne.s32.totalorder %s77_s28, %s5329_s24  ;;  %p5334_p4 = scmp.lt.s32.totalorder %s77_s28, %s77_s28 }
  0x11   :  { %p5335_p5 = scmp.lt.s32.totalorder %s5333_s6, %s5329_s24 }
  0x13   :  { %p5336_p6 = por %p5335_p5, %p5334_p4 }
  0x15   :  { %p5337_p7 = pnand %p5336_p6, %p5330_p3 }
  0x17   :  { %5340 = shalt.err (!%p5337_p7)
}
  0x18   :  { %79 = dma.hbm_to_vmem [thread:$0]  %s6420_s21, 16, %s77_s28, [#allocation3]  }
  0x19   :  { %5341 = dma.done.wait [#allocation3], 16  }
  0x1a   :  { %5342 = vsyncadd [#allocation3], 4294967280  ;;  %v5344_v0 = vmov 0.0   ;;  %vm5345_vm0 = vmmov 0   ;;  %s6432_s3 = sld [smem:[#allocation7_spill]]  ;;  %s6433_s4 = sld [smem:[#allocation5_spill]]  ;;  %v90_v18 = vlaneseq }
  0x1b   :  { %4927 = vmatprep.subr.bf16.mxu1 %v5344_v0  ;;  %4931 = vmatprep.mubr.msk.bf16.mxu1 %vm5345_vm0, %v5344_v0  ;;  %vm123_vm1 = vcmask 261120   ;;  %s6434_s1 = sld [smem:[#allocation8_spill]]  ;;  %s5346_s5 = smov 104   ;;  %v5350_v19 = vmov 1983009808   ;;  %v5352_v27 = vmov 0  }
  0x1c   :  { %4941 = vmatprep.subr.bf16.mxu0 %v5344_v0  ;;  %4943 = vmatprep.mubr.msk.bf16.mxu0 %vm5345_vm0, %v5344_v0  ;;  %s5347_s24 = smov 120   ;;  %s5348_s6 = smov 96   ;;  %v203_v20 = vunpack.c.l.s4 %v5350_v19  ;;  %v5351_v21 = vmov 1934713408   ;;  %v5538_v24 = vshrl.u32 %v90_v18, 7  ;;  %v5542_v28 = vpack.i.b16 %v5352_v27, %v5352_v27 }
  0x1d   :  { %s5349_s25 = smov 112   ;;  %v234_v22 = vunpack.c.l.s4 %v5351_v21  ;;  %vm1024_vm2 = vcmask 64512   ;;  %s5353_s26 = smov 64   ;;  %vm1502_vm4 = vcmask 1043456   ;;  %vm2166_vm5 = vcmask 130048  }
  0x1e   :  { %v204_v25 = vunpack.c.0.s8 %v203_v20  ;;  %s5354_s29 = smov 16   ;;  %s5355_s30 = smov 8   ;;  %vm2169_vm6 = vcmask 195584   ;;  %vm4627_vm7 = vcmask 523264   ;;  %vm4726_vm8 = vcmask 257024  }
  0x1f   :  { %v235_v32 = vunpack.c.0.s8 %v234_v22  ;;  %s5356_s0 = smov 24   ;;  %s6440_s28 = sld [smem:[#allocation11_spill]] }
  0x20   :  { %v5223_v1 = vld [vmem:[%s6432_s3] sm:$0xff]   ;;  %v5224_v2 = vld [vmem:[%s6432_s3 + $0x8] sm:$0xff]   ;;  %v5545_v33 = vsub.s32 %v204_v25, %v5538_v24  ;;  %s6437_s3 = sld [smem:[#allocation9_spill]] }
  0x21   :  { %4928 = vmatpush3.bf16.msra.mxu1 %v5223_v1  ;;  %v84_v3 = vld [vmem:[%s6433_s4] sm:$0xff]   ;;  %v5549_v41 = vsub.s32 %v235_v32, %v5538_v24 }
  0x22   :  { %4929 = vmatprep.subr.bf16.mxu1 %v5344_v0  ;;  %v4734_v4 = vld [vmem:[%s6434_s1] ss:$0 sm:$0xff] }
  0x25   :  { %4930 = vmatpush3.bf16.msra.mxu1 %v5224_v2 }
  0x26   :  { %4935 = vmatprep.subr.bf16.mxu1 %v5344_v0 }
  0x28   :  { %4932 = vmatmul.mubr.msk.bf16.vlgmr.msra.gmra.mrb[0].mxu1 %vm123_vm1, %v84_v3 }
  0x29   :  { %4937 = vmatprep.mubr.msk.bf16.mxu1 %vm5345_vm0, %v5344_v0 }
  0xfb   :  { %v161_v5 = vpop.f32.mrb[0].mxu1 }
  0xfc   :  { %v162_v6 = vadd.f32 %v4734_v4, %v161_v5  ;;  %v4933_v7 = vpop.f32.mrb[1].mxu1 }
  0xfd   :  { %v164_v8 = vpop.f32.mrb[2].mxu1 }
  0xfe   :  { %v165_v9 = vadd.f32 %v4734_v4, %v164_v8  ;;  %v4934_v10 = vpop.f32.mrb[3].mxu1  ;;  %v169_v11 = vmul.f32 0.35355338, %v162_v6 }
 0x100   :  { %v5507_v12 = vpack.c.bf16 %v165_v9, %v162_v6  ;;  %v170_v13 = vmul.f32 0.35355338, %v165_v9 }
 0x102   :  { %v5509_v14 = vpack.c.bf16 %v170_v13, %v169_v11  ;;  %462 = vrot.lane.b32.xlu1 %v5507_v12, %s5346_s5  ;;  %458 = vrot.lane.b32.xlu0 %v5507_v12, %s5347_s24 }
 0x104   :  { %v183_v11 = vshrl.u32 %v5509_v14, 16 }
 0x106   :  { %464 = vrot.lane.b32.xlu1 %v5507_v12, %s5348_s6  ;;  %460 = vrot.lane.b32.xlu0 %v5507_v12, %s5349_s25 }
 0x174   :  { %v5519_v15 = vpop.permute.xlu0 %458  ;;  %v5523_v16 = vpop.permute.xlu1 %462 }
 0x175   :  { %466 = vrot.lane.b32.xlu0 %v5519_v15, %s5348_s6 }
 0x178   :  { %v5525_v17 = vpop.permute.xlu0 %460  ;;  %v465_v23 = vpop.permute.xlu1 %464 }
 0x179   :  { %470 = vrot.lane.b32.xlu0 %v5523_v16, %s5348_s6  ;;  %468 = vrot.lane.b32.xlu1 %v5525_v17, %s5348_s6  ;;  %v476_v31 = vshrl.u32 %v465_v23, 16 }
 0x17d   :  { %175 = vrot.lane.b32.xlu0 %v5509_v14, %s5349_s25  ;;  %173 = vrot.lane.b32.xlu1 %v5509_v14, %s5347_s24 }
 0x181   :  { %177 = vrot.lane.b32.xlu1 %v5509_v14, %s5346_s5 }
 0x1e7   :  { %v467_v26 = vpop.permute.xlu0 %466 }
 0x1e8   :  { %v474_v29 = vpack.i.b16 %v467_v26, %v465_v23  ;;  %v477_v30 = vshrl.u32 %v467_v26, 16 }
 0x1ea   :  { %v478_v36 = vpack.i.b16 %v477_v30, %v476_v31  ;;  %v488_v37 = vcombine.high %v474_v29, %v5542_v28  ;;  %v495_v42 = vrot.slane %v474_v29, %v5545_v33 }
 0x1eb   :  { %v469_v34 = vpop.permute.xlu1 %468  ;;  %v471_v35 = vpop.permute.xlu0 %470 }
 0x1ec   :  { %v484_v38 = vshrl.u32 %v469_v34, 16  ;;  %v482_v39 = vpack.i.b16 %v471_v35, %v469_v34  ;;  %v485_v40 = vshrl.u32 %v471_v35, 16  ;;  %v502_v47 = vrot.slane %v488_v37, %v5545_v33 }
 0x1ed   :  { %v554_v48 = vcombine.high %v478_v36, %v5542_v28  ;;  %v561_v53 = vrot.slane %v478_v36, %v5545_v33 }
 0x1ee   :  { %v486_v43 = vpack.i.b16 %v485_v40, %v484_v38  ;;  %v503_v44 = vcombine.high %v482_v39, %v5542_v28  ;;  %v510_v45 = vrot.slane %v482_v39, %v5545_v33 }
 0x1ef   :  { %v174_v46 = vpop.permute.xlu1 %173  ;;  %v568_v63 = vrot.slane %v554_v48, %v5545_v33  ;;  %v176_v8 = vpop.permute.xlu0 %175 }
 0x1f0   :  { %v517_v49 = vrot.slane %v503_v44, %v5545_v33  ;;  %v518_v50 = vcombine.low %v495_v42, %v510_v45  ;;  %v519_v51 = vcombine.high %v495_v42, %v510_v45  ;;  %v569_v52 = vcombine.high %v486_v43, %v5542_v28 }
 0x1f1   :  { %v576_v54 = vrot.slane %v486_v43, %v5545_v33  ;;  %v181_v55 = vpack.i.b16 %v174_v46, %v5509_v14  ;;  %v184_v3 = vshrl.u32 %v174_v46, 16  ;;  %v191_v26 = vshrl.u32 %v176_v8, 16 }
 0x1f2   :  { %v526_v56 = vrot.slane %v518_v50, %v5549_v41  ;;  %v533_v57 = vrot.slane %v519_v51, %v5549_v41  ;;  %v534_v58 = vcombine.low %v502_v47, %v517_v49  ;;  %v535_v59 = vcombine.high %v502_v47, %v517_v49 }
 0x1f3   :  { %v583_v60 = vrot.slane %v569_v52, %v5545_v33  ;;  %v584_v61 = vcombine.low %v561_v53, %v576_v54  ;;  %v585_v62 = vcombine.high %v561_v53, %v576_v54  ;;  %v201_v13 = vcombine.high %v181_v55, %v5542_v28  ;;  %v178_v23 = vpop.permute.xlu1 %177 }
 0x1f4   :  { %v620_v1 = vcombine.low %v526_v56, %v533_v57  ;;  %v4743_v2 = vcombine.high %v526_v56, %v533_v57  ;;  %v542_v4 = vrot.slane %v534_v58, %v5549_v41  ;;  %v549_v5 = vrot.slane %v535_v59, %v5549_v41 }
 0x1f5   :  { %v592_v6 = vrot.slane %v584_v61, %v5549_v41  ;;  %v599_v7 = vrot.slane %v585_v62, %v5549_v41  ;;  %v600_v19 = vcombine.low %v568_v63, %v583_v60  ;;  %v601_v20 = vcombine.high %v568_v63, %v583_v60 }
 0x1f6   :  { %v627_v9 = vrot.slane %v620_v1, %v5545_v33  ;;  %v635_v10 = vrot.slane %v4743_v2, %v5545_v33  ;;  %v185_v25 = vpack.i.b16 %v184_v3, %v183_v11  ;;  %v670_v31 = vcombine.low %v542_v4, %v549_v5 }
 0x1f7   :  { %v645_v21 = vcombine.low %v592_v6, %v599_v7  ;;  %v4744_v22 = vcombine.high %v592_v6, %v599_v7  ;;  %v4745_v32 = vcombine.high %v542_v4, %v549_v5  ;;  %v208_v34 = vrot.slane %v181_v55, %v5545_v33 }
 0x1f8   :  { %v189_v35 = vpack.i.b16 %v178_v23, %v176_v8  ;;  %v192_v14 = vshrl.u32 %v178_v23, 16  ;;  %v636_v36 = vcombine.low %v627_v9, %v635_v10  ;;  %v608_v37 = vrot.slane %v600_v19, %v5549_v41 }
 0x1f9   :  { %v652_v29 = vrot.slane %v645_v21, %v5545_v33  ;;  %v660_v30 = vrot.slane %v4744_v22, %v5545_v33  ;;  %v615_v38 = vrot.slane %v601_v20, %v5549_v41  ;;  %v215_v39 = vrot.slane %v201_v13, %v5545_v33 }
 0x1fa   :  { %v267_v42 = vcombine.high %v185_v25, %v5542_v28  ;;  %v193_v43 = vpack.i.b16 %v192_v14, %v191_v26  ;;  %v216_v44 = vcombine.high %v189_v35, %v5542_v28  ;;  %v223_v45 = vrot.slane %v189_v35, %v5545_v33 }
 0x1fb   :  { %v661_v40 = vcombine.low %v652_v29, %v660_v30  ;;  %v5583_v46 = vrot.slane %v670_v31, %v5545_v33  ;;  %v5586_v47 = vrot.slane %v4745_v32, %v5545_v33  ;;  %v643_v48 = vrot.slane %v636_v36, %v5549_v41 }
 0x1fc   :  { %v230_v50 = vrot.slane %v216_v44, %v5545_v33  ;;  %v231_v51 = vcombine.low %v208_v34, %v223_v45  ;;  %v232_v52 = vcombine.high %v208_v34, %v223_v45  ;;  %v282_v53 = vcombine.high %v193_v43, %v5542_v28 }
 0x1fd   :  { %v668_v49 = vrot.slane %v661_v40, %v5549_v41  ;;  %v695_v54 = vcombine.low %v608_v37, %v615_v38  ;;  %v274_v55 = vrot.slane %v185_v25, %v5545_v33  ;;  %v289_v56 = vrot.slane %v193_v43, %v5545_v33 }
 0x1fe   :  { %v4746_v58 = vcombine.high %v608_v37, %v615_v38  ;;  %v281_v59 = vrot.slane %v267_v42, %v5545_v33  ;;  %v239_v60 = vrot.slane %v231_v51, %v5549_v41  ;;  %v246_v61 = vrot.slane %v232_v52, %v5549_v41 }
 0x1ff   :  { %v722_v57 = vpack.i.b16 %v668_v49, %v643_v48  ;;  %v296_v62 = vrot.slane %v282_v53, %v5545_v33  ;;  %v297_v63 = vcombine.low %v274_v55, %v289_v56  ;;  %v298_v1 = vcombine.high %v274_v55, %v289_v56 }
 0x200   :  { %v247_v3 = vcombine.low %v215_v39, %v230_v50  ;;  %v333_v4 = vcombine.low %v239_v60, %v246_v61  ;;  %v4739_v5 = vcombine.high %v239_v60, %v246_v61  ;;  %v724_v6 = vshrl.u32 %v668_v49, 16 }
 0x201   :  { %v1029_v2 = vsel %vm1024_vm2, %v722_v57, 0  ;;  %v305_v7 = vrot.slane %v297_v63, %v5549_v41  ;;  %v312_v8 = vrot.slane %v298_v1, %v5549_v41  ;;  %v313_v9 = vcombine.low %v281_v59, %v296_v62 }
 0x202   :  { %4936 = vmatpush3.bf16.xpose.msra.mxu1 %v1029_v2  ;;  %v314_v10 = vcombine.high %v281_v59, %v296_v62  ;;  %v248_v11 = vcombine.high %v215_v39, %v230_v50  ;;  %v340_v13 = vrot.slane %v333_v4, %v5545_v33  ;;  %v348_v19 = vrot.slane %v4739_v5, %v5545_v33 }
 0x203   :  { %4947 = vmatprep.subr.bf16.mxu1 %v5344_v0  ;;  %v723_v20 = vshrl.u32 %v643_v48, 16  ;;  %v358_v21 = vcombine.low %v305_v7, %v312_v8  ;;  %v4740_v22 = vcombine.high %v305_v7, %v312_v8  ;;  %v702_v23 = vrot.slane %v695_v54, %v5545_v33 }
 0x204   :  { %v710_v25 = vrot.slane %v4746_v58, %v5545_v33  ;;  %v321_v26 = vrot.slane %v313_v9, %v5549_v41  ;;  %v328_v29 = vrot.slane %v314_v10, %v5549_v41  ;;  %v349_v30 = vcombine.low %v340_v13, %v348_v19 }
 0x205   :  { %v725_v31 = vpack.i.b16 %v724_v6, %v723_v20  ;;  %v255_v32 = vrot.slane %v247_v3, %v5549_v41  ;;  %v365_v34 = vrot.slane %v358_v21, %v5545_v33  ;;  %v373_v35 = vrot.slane %v4740_v22, %v5545_v33 }
 0x206   :  { %v262_v14 = vrot.slane %v248_v11, %v5549_v41  ;;  %v356_v36 = vrot.slane %v349_v30, %v5549_v41  ;;  %v644_v38 = vcombine.high %v643_v48, %v5352_v27  ;;  %v669_v40 = vcombine.high %v668_v49, %v5352_v27 }
 0x207   :  { %v1075_v37 = vsel %vm1024_vm2, %v725_v31, 0  ;;  %v374_v39 = vcombine.low %v365_v34, %v373_v35  ;;  %v711_v42 = vcombine.low %v702_v23, %v710_v25  ;;  %v408_v43 = vcombine.low %v321_v26, %v328_v29 }
 0x208   :  { %4942 = vmatpush3.bf16.xpose.msra.mxu0 %v1075_v37  ;;  %v4742_v44 = vcombine.high %v321_v26, %v328_v29  ;;  %v686_v45 = vcombine.low %v5583_v46, %v5586_v47  ;;  %v728_v51 = vpack.i.b16 %v669_v40, %v644_v38  ;;  %v729_v52 = vshrl.u32 %v644_v38, 16 }
 0x209   :  { %4953 = vmatprep.subr.bf16.mxu0 %v5344_v0  ;;  %v381_v50 = vrot.slane %v374_v39, %v5549_v41  ;;  %v730_v53 = vshrl.u32 %v669_v40, 16  ;;  %v383_v54 = vcombine.low %v255_v32, %v262_v14  ;;  %v4741_v55 = vcombine.high %v255_v32, %v262_v14 }
 0x20a   :  { %v436_v48 = vshrl.u32 %v356_v36, 16  ;;  %v718_v49 = vrot.slane %v711_v42, %v5549_v41  ;;  %v415_v59 = vrot.slane %v408_v43, %v5545_v33  ;;  %v693_v60 = vrot.slane %v686_v45, %v5549_v41 }
 0x20b   :  { %v435_v56 = vpack.i.b16 %v381_v50, %v356_v36  ;;  %v437_v57 = vshrl.u32 %v381_v50, 16  ;;  %v731_v58 = vpack.i.b16 %v730_v53, %v729_v52  ;;  %v423_v61 = vrot.slane %v4742_v44, %v5545_v33 }
 0x20c   :  { %v1121_v46 = vsel %vm1024_vm2, %v728_v51, 0  ;;  %v382_v62 = vcombine.high %v381_v50, %v5352_v27  ;;  %v390_v63 = vrot.slane %v383_v54, %v5545_v33  ;;  %v398_v1 = vrot.slane %v4741_v55, %v5545_v33 }
 0x20d   :  { %4938 = vmatmul.mubr.msk.bf16.vlgmr.msra.gmra.mrb[4].mxu1 %vm1024_vm2, %v435_v56  ;;  %v438_v47 = vpack.i.b16 %v437_v57, %v436_v48  ;;  %v1167_v2 = vsel %vm1024_vm2, %v731_v58, 0  ;;  %v357_v3 = vcombine.high %v356_v36, %v5352_v27  ;;  %v736_v4 = vshrl.u32 %v718_v49, 16 }
 0x20e   :  { %4948 = vmatpush3.bf16.xpose.msra.mxu1 %v1121_v46  ;;  %4949 = vmatprep.mubr.msk.bf16.mxu1 %vm5345_vm0, %v5344_v0  ;;  %v424_v5 = vcombine.low %v415_v59, %v423_v61  ;;  %v734_v6 = vpack.i.b16 %v718_v49, %v693_v60  ;;  %v443_v7 = vshrl.u32 %v382_v62, 16  ;;  %v735_v8 = vshrl.u32 %v693_v60, 16 }
 0x20f   :  { %4944 = vmatmul.mubr.msk.bf16.vlgmr.msra.gmra.mrb[0].mxu0 %vm1024_vm2, %v438_v47  ;;  %4959 = vmatprep.subr.bf16.mxu1 %v5344_v0  ;;  %v399_v9 = vcombine.low %v390_v63, %v398_v1  ;;  %v441_v10 = vpack.i.b16 %v382_v62, %v357_v3  ;;  %v442_v11 = vshrl.u32 %v357_v3, 16  ;;  %v719_v19 = vcombine.high %v718_v49, %v5352_v27 }
 0x210   :  { %4954 = vmatpush3.bf16.xpose.msra.mxu0 %v1167_v2  ;;  %4955 = vmatprep.mubr.msk.bf16.mxu0 %vm5345_vm0, %v5344_v0  ;;  %v737_v13 = vpack.i.b16 %v736_v4, %v735_v8  ;;  %v1213_v20 = vsel %vm1024_vm2, %v734_v6, 0  ;;  %v431_v22 = vrot.slane %v424_v5, %v5549_v41  ;;  %v694_v23 = vcombine.high %v693_v60, %v5352_v27 }
 0x211   :  { %4965 = vmatprep.subr.bf16.mxu0 %v5344_v0  ;;  %v444_v21 = vpack.i.b16 %v443_v7, %v442_v11  ;;  %v406_v26 = vrot.slane %v399_v9, %v5549_v41  ;;  %v742_v29 = vshrl.u32 %v719_v19, 16  ;;  %v93_v50 = vand.u32 127, %v90_v18 }
 0x212   :  { %v1259_v25 = vsel %vm1024_vm2, %v737_v13, 0  ;;  %v740_v30 = vpack.i.b16 %v719_v19, %v694_v23  ;;  %v449_v31 = vshrl.u32 %v431_v22, 16  ;;  %v741_v32 = vshrl.u32 %v694_v23, 16 }
 0x213   :  { %v447_v34 = vpack.i.b16 %v431_v22, %v406_v26  ;;  %v448_v35 = vshrl.u32 %v406_v26, 16  ;;  %v432_v38 = vcombine.high %v431_v22, %v5352_v27  ;;  %v407_v40 = vcombine.high %v406_v26, %v5352_v27 }
 0x214   :  { %v743_v14 = vpack.i.b16 %v742_v29, %v741_v32  ;;  %v1305_v36 = vsel %vm1024_vm2, %v740_v30, 0  ;;  %vm5672_vm3 = vcmp.le.s32.totalorder %v93_v50, %v5538_v24 }
 0x215   :  { %4950 = vmatmul.mubr.msk.bf16.vlgmr.msra.gmra.mrb[8].mxu1 %vm1024_vm2, %v441_v10  ;;  %v450_v37 = vpack.i.b16 %v449_v31, %v448_v35  ;;  %v455_v42 = vshrl.u32 %v432_v38, 16  ;;  %v453_v43 = vpack.i.b16 %v432_v38, %v407_v40  ;;  %v454_v44 = vshrl.u32 %v407_v40, 16 }
 0x216   :  { %4960 = vmatpush3.bf16.xpose.msra.mxu1 %v1213_v20  ;;  %4961 = vmatprep.mubr.msk.bf16.mxu1 %vm5345_vm0, %v5344_v0  ;;  %v1351_v39 = vsel %vm1024_vm2, %v743_v14, 0 }
 0x217   :  { %4956 = vmatmul.mubr.msk.bf16.vlgmr.msra.gmra.mrb[4].mxu0 %vm1024_vm2, %v444_v21  ;;  %4971 = vmatprep.subr.bf16.mxu1 %v5344_v0  ;;  %v456_v45 = vpack.i.b16 %v455_v42, %v454_v44 }
 0x218   :  { %4966 = vmatpush3.bf16.xpose.msra.mxu0 %v1259_v25  ;;  %4967 = vmatprep.mubr.msk.bf16.mxu0 %vm5345_vm0, %v5344_v0 }
 0x219   :  { %4977 = vmatprep.subr.bf16.mxu0 %v5344_v0 }
 0x21d   :  { %4962 = vmatmul.mubr.msk.bf16.vlgmr.msra.gmra.mrb[12].mxu1 %vm1024_vm2, %v447_v34 }
 0x21e   :  { %4972 = vmatpush3.bf16.xpose.msra.mxu1 %v1305_v36  ;;  %4973 = vmatprep.mubr.msk.bf16.mxu1 %vm5345_vm0, %v5344_v0 }
 0x21f   :  { %4968 = vmatmul.mubr.msk.bf16.vlgmr.msra.gmra.mrb[8].mxu0 %vm1024_vm2, %v450_v37  ;;  %4983 = vmatprep.subr.bf16.mxu1 %v5344_v0 }
 0x220   :  { %4978 = vmatpush3.bf16.xpose.msra.mxu0 %v1351_v39  ;;  %4979 = vmatprep.mubr.msk.bf16.mxu0 %vm5345_vm0, %v5344_v0 }
 0x221   :  { %4989 = vmatprep.subr.bf16.mxu0 %v5344_v0 }
 0x225   :  { %4974 = vmatmul.mubr.msk.bf16.vlgmr.msra.gmra.mrb[16].mxu1 %vm1024_vm2, %v453_v43 }
 0x226   :  { %4985 = vmatprep.mubr.msk.bf16.mxu1 %vm5345_vm0, %v5344_v0 }
 0x227   :  { %4980 = vmatmul.mubr.msk.bf16.vlgmr.msra.gmra.mrb[12].mxu0 %vm1024_vm2, %v456_v45 }
 0x228   :  { %4991 = vmatprep.mubr.msk.bf16.mxu0 %vm5345_vm0, %v5344_v0 }
 0x2e0   :  { %v1065_v52 = vpop.f32.mrb[4].mxu1 }
 0x2e1   :  { %v1395_v53 = vsel %vm5672_vm3, %v1065_v52, -1e+30  ;;  %v4939_v54 = vpop.f32.mrb[5].mxu1 }
 0x2e2   :  { %v1068_v55 = vpop.f32.mrb[6].mxu1  ;;  %v1111_v48 = vpop.f32.mrb[0].mxu0  ;;  %v1403_v56 = vsel %vm1024_vm2, %v1395_v53, -inf }
 0x2e3   :  { %v1396_v57 = vsel %vm5672_vm3, %v1111_v48, -1e+30  ;;  %v4945_v58 = vpop.f32.mrb[1].mxu0  ;;  %1404 = vmax.xlane.f32.xlu0 %v1403_v56  ;;  %v4940_v18 = vpop.f32.mrb[7].mxu1 }
 0x2e4   :  { %v1114_v49 = vpop.f32.mrb[2].mxu0  ;;  %v1406_v24 = vsel %vm1024_vm2, %v1396_v57, -inf }
 0x2e5   :  { %1407 = vmax.xlane.f32.xlu1 %v1406_v24  ;;  %v4946_v59 = vpop.f32.mrb[3].mxu0 }
 0x2e8   :  { %v1157_v60 = vpop.f32.mrb[8].mxu1 }
 0x2e9   :  { %v5684_v61 = vsel %vm5672_vm3, %v1157_v60, -1e+30  ;;  %v4951_v46 = vpop.f32.mrb[9].mxu1 }
 0x2ea   :  { %v1160_v47 = vpop.f32.mrb[10].mxu1  ;;  %v1203_v62 = vpop.f32.mrb[4].mxu0  ;;  %v1409_v63 = vsel %vm1024_vm2, %v5684_v61, -inf }
 0x2eb   :  { %v5690_v1 = vsel %vm5672_vm3, %v1203_v62, -1e+30  ;;  %v4957_v2 = vpop.f32.mrb[5].mxu0  ;;  %1410 = vmax.xlane.f32.xlu0 %v1409_v63  ;;  %v4952_v3 = vpop.f32.mrb[11].mxu1 }
 0x2ec   :  { %v1206_v4 = vpop.f32.mrb[6].mxu0  ;;  %v1412_v6 = vsel %vm1024_vm2, %v5690_v1, -inf }
 0x2ed   :  { %v4958_v5 = vpop.f32.mrb[7].mxu0 }
 0x2ef   :  { %1413 = vmax.xlane.f32.xlu0 %v1412_v6 }
 0x2f0   :  { %v1249_v7 = vpop.f32.mrb[12].mxu1 }
 0x2f1   :  { %v1399_v8 = vsel %vm5672_vm3, %v1249_v7, -1e+30  ;;  %v4963_v9 = vpop.f32.mrb[13].mxu1 }
 0x2f2   :  { %v1252_v10 = vpop.f32.mrb[14].mxu1  ;;  %v1295_v11 = vpop.f32.mrb[8].mxu0  ;;  %v1415_v13 = vsel %vm1024_vm2, %v1399_v8, -inf }
 0x2f3   :  { %v1400_v19 = vsel %vm5672_vm3, %v1295_v11, -1e+30  ;;  %v4969_v20 = vpop.f32.mrb[9].mxu0  ;;  %1416 = vmax.xlane.f32.xlu1 %v1415_v13  ;;  %v4964_v21 = vpop.f32.mrb[15].mxu1 }
 0x2f4   :  { %v1298_v22 = vpop.f32.mrb[10].mxu0  ;;  %v1418_v23 = vsel %vm1024_vm2, %v1400_v19, -inf }
 0x2f5   :  { %v4970_v25 = vpop.f32.mrb[11].mxu0  ;;  %1419 = vmax.xlane.f32.xlu0 %v1418_v23 }
 0x2f8   :  { %v1341_v26 = vpop.f32.mrb[16].mxu1 }
 0x2f9   :  { %v1401_v29 = vsel %vm5672_vm3, %v1341_v26, -1e+30  ;;  %v4975_v30 = vpop.f32.mrb[17].mxu1 }
 0x2fa   :  { %v1344_v31 = vpop.f32.mrb[18].mxu1  ;;  %v1387_v32 = vpop.f32.mrb[12].mxu0  ;;  %v1421_v34 = vsel %vm1024_vm2, %v1401_v29, -inf }
 0x2fb   :  { %v1402_v35 = vsel %vm5672_vm3, %v1387_v32, -1e+30  ;;  %v4981_v14 = vpop.f32.mrb[13].mxu0  ;;  %1422 = vmax.xlane.f32.xlu1 %v1421_v34  ;;  %v4976_v36 = vpop.f32.mrb[19].mxu1 }
 0x2fc   :  { %v1390_v37 = vpop.f32.mrb[14].mxu0  ;;  %v1424_v38 = vsel %vm1024_vm2, %v1402_v35, -inf }
 0x2fd   :  { %v4982_v39 = vpop.f32.mrb[15].mxu0  ;;  %1425 = vmax.xlane.f32.xlu0 %v1424_v38 }
 0x30c   :  { %744 = vrot.lane.b32.xlu1 %v5507_v12, %s5353_s26 }
 0x370   :  { %v1405_v40 = vpop.xlane.xlu0 %1404 }
 0x371   :  { %v1427_v42 = vsub.f32 %v1395_v53, %v1405_v40 }
 0x372   :  { %v1408_v43 = vpop.xlane.xlu1 %1407 }
 0x373   :  { %v1435_v44 = vmul.f32 1.442695, %v1427_v42  ;;  %v1428_v45 = vsub.f32 %v1396_v57, %v1408_v43 }
 0x375   :  { %5242 = vpow2.f32 %v1435_v44  ;;  %v1437_v50 = vmul.f32 1.442695, %v1428_v45 }
 0x377   :  { %5244 = vpow2.f32 %v1437_v50 }
 0x378   :  { %v1411_v12 = vpop.xlane.xlu0 %1410 }
 0x379   :  { %v1429_v56 = vsub.f32 %v5684_v61, %v1411_v12 }
 0x37b   :  { %v1439_v18 = vmul.f32 1.442695, %v1429_v56 }
 0x37c   :  { %v1414_v53 = vpop.xlane.xlu0 %1413 }
 0x37d   :  { %v1430_v57 = vsub.f32 %v5690_v1, %v1414_v53  ;;  %5246 = vpow2.f32 %v1439_v18 }
 0x37f   :  { %v5707_v51 = vpop.eup %5242  ;;  %v1441_v59 = vmul.f32 1.442695, %v1430_v57 }
 0x380   :  { %v1451_v52 = vsel %vm1024_vm2, %v5707_v51, 0.0  ;;  %v1417_v48 = vpop.xlane.xlu1 %1416 }
 0x381   :  { %v5711_v54 = vpop.eup %5244  ;;  %1452 = vadd.xlane.f32.xlu1 %v1451_v52  ;;  %v1431_v49 = vsub.f32 %v1399_v8, %v1417_v48  ;;  %5248 = vpow2.f32 %v1441_v59 }
 0x382   :  { %v1454_v55 = vsel %vm1024_vm2, %v5711_v54, 0.0  ;;  %v1420_v24 = vpop.xlane.xlu0 %1419 }
 0x383   :  { %1455 = vadd.xlane.f32.xlu0 %v1454_v55  ;;  %v1443_v46 = vmul.f32 1.442695, %v1431_v49 }
 0x385   :  { %5250 = vpow2.f32 %v1443_v46 }
 0x387   :  { %v5720_v63 = vpop.eup %5246 }
 0x388   :  { %v1423_v58 = vpop.xlane.xlu1 %1422  ;;  %v1457_v2 = vsel %vm1024_vm2, %v5720_v63, 0.0 }
 0x389   :  { %v1433_v60 = vsub.f32 %v1401_v29, %v1423_v58 }
 0x38a   :  { %v1426_v47 = vpop.xlane.xlu0 %1425 }
 0x38b   :  { %v1434_v62 = vsub.f32 %v1402_v35, %v1426_v47  ;;  %v5722_v1 = vpop.eup %5248 }
 0x38c   :  { %v1460_v4 = vsel %vm1024_vm2, %v5722_v1, 0.0  ;;  %v745_v13 = vpop.permute.xlu1 %744 }
 0x38d   :  { %v1449_v61 = vmul.f32 1.442695, %v1434_v62  ;;  %v756_v29 = vshrl.u32 %v745_v13, 16 }
 0x38f   :  { %v5726_v3 = vpop.eup %5250 }
 0x390   :  { %v1463_v6 = vsel %vm1024_vm2, %v5726_v3, 0.0 }
 0x392   :  { %748 = vrot.lane.b32.xlu1 %v5525_v17, %s5353_s26  ;;  %v1432_v17 = vsub.f32 %v1400_v19, %v1420_v24 }
 0x396   :  { %750 = vrot.lane.b32.xlu1 %v5523_v16, %s5353_s26  ;;  %v1447_v16 = vmul.f32 1.442695, %v1433_v60 }
 0x398   :  { %5252 = vpow2.f32 %v1447_v16 }
 0x399   :  { %746 = vrot.lane.b32.xlu0 %v5519_v15, %s5353_s26  ;;  %v1445_v15 = vmul.f32 1.442695, %v1432_v17  ;;  %s6438_s26 = sld [smem:[#allocation10_spill]] }
 0x39b   :  { %5254 = vpow2.f32 %v1445_v15 }
 0x39c   :  { %5256 = vpow2.f32 %v1449_v61 }
 0x3a2   :  { %v5730_v5 = vpop.eup %5252 }
 0x3a3   :  { %v1469_v8 = vsel %vm1024_vm2, %v5730_v5, 0.0 }
 0x3a5   :  { %v5734_v7 = vpop.eup %5254 }
 0x3a6   :  { %v1466_v9 = vsel %vm1024_vm2, %v5734_v7, 0.0  ;;  %v5740_v10 = vpop.eup %5256 }
 0x3a7   :  { %v1472_v11 = vsel %vm1024_vm2, %v5740_v10, 0.0 }
 0x3b8   :  { %1458 = vadd.xlane.f32.xlu0 %v1457_v2 }
 0x3ba   :  { %1461 = vadd.xlane.f32.xlu1 %v1460_v4 }
 0x3bc   :  { %1464 = vadd.xlane.f32.xlu0 %v1463_v6 }
 0x3be   :  { %1470 = vadd.xlane.f32.xlu1 %v1469_v8 }
 0x3c0   :  { %1467 = vadd.xlane.f32.xlu0 %v1466_v9 }
 0x3c4   :  { %1473 = vadd.xlane.f32.xlu0 %v1472_v11 }
 0x40e   :  { %v1453_v19 = vpop.xlane.xlu1 %1452 }
 0x40f   :  { %5258 = vrcp.f32 %v1453_v19 }
 0x410   :  { %v1456_v20 = vpop.xlane.xlu0 %1455 }
 0x411   :  { %5260 = vrcp.f32 %v1456_v20 }
 0x412   :  { %v749_v21 = vpop.permute.xlu1 %748 }
 0x413   :  { %v764_v31 = vshrl.u32 %v749_v21, 16 }
 0x414   :  { %v747_v22 = vpop.permute.xlu0 %746 }
 0x415   :  { %v757_v23 = vshrl.u32 %v747_v22, 16  ;;  %v5744_v25 = vpack.i.b16 %v747_v22, %v745_v13 }
 0x416   :  { %v751_v26 = vpop.permute.xlu1 %750 }
 0x417   :  { %v5746_v30 = vpack.i.b16 %v751_v26, %v749_v21  ;;  %v765_v32 = vshrl.u32 %v751_v26, 16  ;;  %v5748_v34 = vpack.i.b16 %v757_v23, %v756_v29  ;;  %v775_v35 = vrot.slane %v5744_v25, %v5545_v33 }
 0x418   :  { %v768_v29 = vcombine.high %v5744_v25, %v5542_v28 }
 0x419   :  { %v766_v14 = vpack.i.b16 %v765_v32, %v764_v31  ;;  %v790_v36 = vrot.slane %v5746_v30, %v5545_v33  ;;  %v841_v39 = vrot.slane %v5748_v34, %v5545_v33  ;;  %v5259_v59 = vpop.eup %5258  ;;  %v834_v22 = vcombine.high %v5748_v34, %v5542_v28 }
 0x41a   :  { %v1483_v16 = vmul.f32 %v5259_v59, %v5707_v51  ;;  %v782_v25 = vrot.slane %v768_v29, %v5545_v33 }
 0x41b   :  { %v798_v37 = vcombine.low %v775_v35, %v790_v36  ;;  %v799_v38 = vcombine.high %v775_v35, %v790_v36  ;;  %v856_v40 = vrot.slane %v766_v14, %v5545_v33  ;;  %v5261_v17 = vpop.eup %5260  ;;  %v849_v19 = vcombine.high %v766_v14, %v5542_v28 }
 0x41c   :  { %v1484_v4 = vmul.f32 %v5261_v17, %v5711_v54  ;;  %v1491_v51 = vpack.c.bf16 %v1483_v16, %v1483_v16  ;;  %v783_v54 = vcombine.high %v5746_v30, %v5542_v28  ;;  %v848_v32 = vrot.slane %v834_v22, %v5545_v33 }
 0x41d   :  { %v806_v42 = vrot.slane %v798_v37, %v5549_v41  ;;  %v813_v43 = vrot.slane %v799_v38, %v5549_v41  ;;  %v864_v44 = vcombine.low %v841_v39, %v856_v40  ;;  %v865_v45 = vcombine.high %v841_v39, %v856_v40 }
 0x41e   :  { %v1492_v26 = vpack.c.bf16 %v1484_v4, %v1484_v4  ;;  %v863_v31 = vrot.slane %v849_v19, %v5545_v33  ;;  %v797_v34 = vrot.slane %v783_v54, %v5545_v33 }
 0x41f   :  { %v900_v50 = vcombine.low %v806_v42, %v813_v43  ;;  %v4747_v52 = vcombine.high %v806_v42, %v813_v43  ;;  %v872_v55 = vrot.slane %v864_v44, %v5549_v41  ;;  %v879_v12 = vrot.slane %v865_v45, %v5549_v41 }
 0x420   :  { %v880_v35 = vcombine.low %v848_v32, %v863_v31  ;;  %v881_v14 = vcombine.high %v848_v32, %v863_v31  ;;  %v814_v36 = vcombine.low %v782_v25, %v797_v34  ;;  %v815_v37 = vcombine.high %v782_v25, %v797_v34 }
 0x421   :  { %v907_v53 = vrot.slane %v900_v50, %v5545_v33  ;;  %v915_v48 = vrot.slane %v4747_v52, %v5545_v33  ;;  %v925_v56 = vcombine.low %v872_v55, %v879_v12  ;;  %v4748_v57 = vcombine.high %v872_v55, %v879_v12 }
 0x422   :  { %v888_v38 = vrot.slane %v880_v35, %v5549_v41  ;;  %v895_v39 = vrot.slane %v881_v14, %v5549_v41  ;;  %v822_v40 = vrot.slane %v814_v36, %v5549_v41  ;;  %v829_v42 = vrot.slane %v815_v37, %v5549_v41 }
 0x423   :  { %v916_v58 = vcombine.low %v907_v53, %v915_v48  ;;  %v932_v18 = vrot.slane %v925_v56, %v5545_v33  ;;  %v940_v49 = vrot.slane %v4748_v57, %v5545_v33 }
 0x424   :  { %v975_v43 = vcombine.low %v888_v38, %v895_v39  ;;  %v4750_v44 = vcombine.high %v888_v38, %v895_v39  ;;  %v950_v45 = vcombine.low %v822_v40, %v829_v42  ;;  %v4749_v50 = vcombine.high %v822_v40, %v829_v42 }
 0x425   :  { %v923_v24 = vrot.slane %v916_v58, %v5549_v41  ;;  %v941_v60 = vcombine.low %v932_v18, %v940_v49 }
 0x426   :  { %v982_v52 = vrot.slane %v975_v43, %v5545_v33  ;;  %v990_v55 = vrot.slane %v4750_v44, %v5545_v33  ;;  %v957_v12 = vrot.slane %v950_v45, %v5545_v33  ;;  %v965_v53 = vrot.slane %v4749_v50, %v5545_v33 }
 0x427   :  { %v924_v46 = vcombine.high %v923_v24, %v5352_v27  ;;  %v948_v47 = vrot.slane %v941_v60, %v5549_v41  ;;  %v1003_v62 = vshrl.u32 %v923_v24, 16 }
 0x428   :  { %v991_v57 = vcombine.low %v982_v52, %v990_v55  ;;  %v966_v18 = vcombine.low %v957_v12, %v965_v53 }
 0x429   :  { %v1002_v15 = vpack.i.b16 %v948_v47, %v923_v24  ;;  %v1004_v61 = vshrl.u32 %v948_v47, 16  ;;  %v949_v2 = vcombine.high %v948_v47, %v5352_v27  ;;  %v1009_v6 = vshrl.u32 %v924_v46, 16 }
 0x42a   :  { %v998_v49 = vrot.slane %v991_v57, %v5549_v41  ;;  %v973_v59 = vrot.slane %v966_v18, %v5549_v41 }
 0x42b   :  { %v1504_v8 = vsel %vm1502_vm4, %v1002_v15, 0  ;;  %v1005_v9 = vpack.i.b16 %v1004_v61, %v1003_v62  ;;  %v1008_v11 = vpack.i.b16 %v949_v2, %v924_v46  ;;  %v1010_v13 = vshrl.u32 %v949_v2, 16 }
 0x42c   :  { %4984 = vmatpush3.bf16.msra.mxu1 %v1504_v8  ;;  %v1016_v46 = vshrl.u32 %v998_v49, 16  ;;  %v1014_v15 = vpack.i.b16 %v998_v49, %v973_v59  ;;  %v1015_v62 = vshrl.u32 %v973_v59, 16  ;;  %v999_v8 = vcombine.high %v998_v49, %v5352_v27 }
 0x42d   :  { %v1550_v20 = vsel %vm1502_vm4, %v1005_v9, 0  ;;  %4995 = vmatprep.subr.bf16.mxu1 %v5344_v0  ;;  %v1011_v21 = vpack.i.b16 %v1010_v13, %v1009_v6  ;;  %v1596_v23 = vsel %vm1502_vm4, %v1008_v11, 0 }
 0x42e   :  { %4990 = vmatpush3.bf16.msra.mxu0 %v1550_v20  ;;  %v1017_v6 = vpack.i.b16 %v1016_v46, %v1015_v62  ;;  %v1688_v11 = vsel %vm1502_vm4, %v1014_v15, 0  ;;  %v1022_v20 = vshrl.u32 %v999_v8, 16 }
 0x42f   :  { %4986 = vmatmul.mubr.msk.bf16.vlgmr.msra.gmra.mrb[20].mxu1 %vm1024_vm2, %v1491_v51  ;;  %5001 = vmatprep.subr.bf16.mxu0 %v5344_v0  ;;  %v1642_v30 = vsel %vm1502_vm4, %v1011_v21, 0 }
 0x430   :  { %4996 = vmatpush3.bf16.msra.mxu1 %v1596_v23  ;;  %4997 = vmatprep.mubr.msk.bf16.mxu1 %vm5345_vm0, %v5344_v0 }
 0x431   :  { %4992 = vmatmul.mubr.msk.bf16.vlgmr.msra.gmra.mrb[16].mxu0 %vm1024_vm2, %v1492_v26  ;;  %5007 = vmatprep.subr.bf16.mxu1 %v5344_v0 }
 0x432   :  { %5002 = vmatpush3.bf16.msra.mxu0 %v1642_v30  ;;  %5003 = vmatprep.mubr.msk.bf16.mxu0 %vm5345_vm0, %v5344_v0 }
 0x433   :  { %5013 = vmatprep.subr.bf16.mxu0 %v5344_v0 }
 0x445   :  { %v1459_v48 = vpop.xlane.xlu0 %1458 }
 0x446   :  { %5262 = vrcp.f32 %v1459_v48 }
 0x447   :  { %v1462_v56 = vpop.xlane.xlu1 %1461 }
 0x448   :  { %5264 = vrcp.f32 %v1462_v56 }
 0x449   :  { %v1465_v58 = vpop.xlane.xlu0 %1464 }
 0x44a   :  { %5266 = vrcp.f32 %v1465_v58 }
 0x44b   :  { %v1471_v60 = vpop.xlane.xlu1 %1470 }
 0x44d   :  { %v1468_v24 = vpop.xlane.xlu0 %1467 }
 0x44e   :  { %5268 = vrcp.f32 %v1468_v24 }
 0x44f   :  { %5270 = vrcp.f32 %v1471_v60 }
 0x450   :  { %v5263_v17 = vpop.eup %5262 }
 0x451   :  { %v1485_v47 = vmul.f32 %v5263_v17, %v5720_v63  ;;  %v1474_v16 = vpop.xlane.xlu0 %1473  ;;  %v974_v63 = vcombine.high %v973_v59, %v5352_v27 }
 0x452   :  { %v5265_v61 = vpop.eup %5264  ;;  %5272 = vrcp.f32 %v1474_v16 }
 0x453   :  { %v1486_v2 = vmul.f32 %v5265_v61, %v5722_v1  ;;  %v1493_v4 = vpack.c.bf16 %v1485_v47, %v1485_v47  ;;  %v1734_v1 = vsel %vm1502_vm4, %v1017_v6, 0  ;;  %v1020_v22 = vpack.i.b16 %v999_v8, %v974_v63 }
 0x454   :  { %v5267_v9 = vpop.eup %5266  ;;  %v1021_v54 = vshrl.u32 %v974_v63, 16 }
 0x455   :  { %4998 = vmatmul.mubr.msk.bf16.vlgmr.msra.gmra.mrb[24].mxu1 %vm1024_vm2, %v1493_v4  ;;  %v1494_v13 = vpack.c.bf16 %v1486_v2, %v1486_v2  ;;  %v1487_v19 = vmul.f32 %v5267_v9, %v5726_v3  ;;  %v1780_v29 = vsel %vm1502_vm4, %v1020_v22, 0 }
 0x456   :  { %5008 = vmatpush3.bf16.msra.mxu1 %v1688_v11  ;;  %5009 = vmatprep.mubr.msk.bf16.mxu1 %vm5345_vm0, %v5344_v0  ;;  %v1023_v3 = vpack.i.b16 %v1022_v20, %v1021_v54 }
 0x457   :  { %5004 = vmatmul.mubr.msk.bf16.vlgmr.msra.gmra.mrb[20].mxu0 %vm1024_vm2, %v1494_v13  ;;  %5019 = vmatprep.subr.bf16.mxu1 %v5344_v0  ;;  %v1495_v23 = vpack.c.bf16 %v1487_v19, %v1487_v19 }
 0x458   :  { %v5269_v51 = vpop.eup %5268  ;;  %5014 = vmatpush3.bf16.msra.mxu0 %v1734_v1  ;;  %5015 = vmatprep.mubr.msk.bf16.mxu0 %vm5345_vm0, %v5344_v0 }
 0x459   :  { %v1488_v21 = vmul.f32 %v5269_v51, %v5734_v7  ;;  %5025 = vmatprep.subr.bf16.mxu0 %v5344_v0  ;;  %v5271_v26 = vpop.eup %5270  ;;  %v1826_v7 = vsel %vm1502_vm4, %v1023_v3, 0 }
 0x45a   :  { %v1489_v32 = vmul.f32 %v5271_v26, %v5730_v5 }
 0x45b   :  { %v1496_v31 = vpack.c.bf16 %v1488_v21, %v1488_v21 }
 0x45c   :  { %v5273_v30 = vpop.eup %5272  ;;  %v1497_v25 = vpack.c.bf16 %v1489_v32, %v1489_v32 }
 0x45d   :  { %5010 = vmatmul.mubr.msk.bf16.vlgmr.msra.gmra.mrb[28].mxu1 %vm1024_vm2, %v1495_v23  ;;  %v1490_v34 = vmul.f32 %v5273_v30, %v5740_v10 }
 0x45e   :  { %5020 = vmatpush3.bf16.msra.mxu1 %v1780_v29  ;;  %5021 = vmatprep.mubr.msk.bf16.mxu1 %vm5345_vm0, %v5344_v0 }
 0x45f   :  { %5016 = vmatmul.mubr.msk.bf16.vlgmr.msra.gmra.mrb[24].mxu0 %vm1024_vm2, %v1496_v31  ;;  %5031 = vmatprep.subr.bf16.mxu1 %v5344_v0  ;;  %v1498_v35 = vpack.c.bf16 %v1490_v34, %v1490_v34 }
 0x460   :  { %5026 = vmatpush3.bf16.msra.mxu0 %v1826_v7  ;;  %5027 = vmatprep.mubr.msk.bf16.mxu0 %vm5345_vm0, %v5344_v0 }
 0x461   :  { %5039 = vmatprep.subr.bf16.mxu0 %v5344_v0 }
 0x465   :  { %5022 = vmatmul.mubr.msk.bf16.vlgmr.msra.gmra.mrb[32].mxu1 %vm1024_vm2, %v1497_v25 }
 0x466   :  { %5035 = vmatprep.mubr.msk.bf16.mxu1 %vm5345_vm0, %v5344_v0 }
 0x467   :  { %5028 = vmatmul.mubr.msk.bf16.vlgmr.msra.gmra.mrb[28].mxu0 %vm1024_vm2, %v1498_v35 }
 0x468   :  { %5043 = vmatprep.mubr.msk.bf16.mxu0 %vm5345_vm0, %v5344_v0 }
 0x502   :  { %v1540_v5 = vpop.f32.mrb[20].mxu1 }
 0x503   :  { %v4987_v14 = vpop.f32.mrb[21].mxu1 }
 0x504   :  { %v1543_v36 = vpop.f32.mrb[22].mxu1  ;;  %v1586_v37 = vpop.f32.mrb[16].mxu0 }
 0x505   :  { %v4988_v38 = vpop.f32.mrb[23].mxu1  ;;  %v4993_v10 = vpop.f32.mrb[17].mxu0 }
 0x506   :  { %v1589_v39 = vpop.f32.mrb[18].mxu0 }
 0x507   :  { %v4994_v40 = vpop.f32.mrb[19].mxu0 }
 0x528   :  { %v1632_v42 = vpop.f32.mrb[24].mxu1 }
 0x529   :  { %v1868_v43 = vcombine.low %v1540_v5, %v1632_v42  ;;  %v1869_v44 = vcombine.high %v1540_v5, %v1632_v42  ;;  %v4999_v45 = vpop.f32.mrb[25].mxu1 }
 0x52a   :  { %v1635_v50 = vpop.f32.mrb[26].mxu1  ;;  %v1678_v52 = vpop.f32.mrb[20].mxu0 }
 0x52b   :  { %v1884_v55 = vcombine.low %v1586_v37, %v1678_v52  ;;  %v1885_v12 = vcombine.high %v1586_v37, %v1678_v52  ;;  %v5000_v53 = vpop.f32.mrb[27].mxu1  ;;  %v5005_v48 = vpop.f32.mrb[21].mxu0  ;;  %v1876_v57 = vrot.slane %v1868_v43, %v5545_v33  ;;  %v1883_v58 = vrot.slane %v1869_v44, %v5545_v33 }
 0x52c   :  { %v1681_v56 = vpop.f32.mrb[22].mxu0 }
 0x52d   :  { %v1892_v18 = vrot.slane %v1884_v55, %v5545_v33  ;;  %v1899_v49 = vrot.slane %v1885_v12, %v5545_v33  ;;  %v5006_v24 = vpop.f32.mrb[23].mxu0 }
 0x52f   :  { %v1900_v59 = vcombine.low %v1876_v57, %v1892_v18  ;;  %v1901_v60 = vcombine.high %v1876_v57, %v1892_v18  ;;  %v1916_v46 = vcombine.low %v1883_v58, %v1899_v49  ;;  %v1917_v17 = vcombine.high %v1883_v58, %v1899_v49 }
 0x530   :  { %v1724_v47 = vpop.f32.mrb[28].mxu1 }
 0x531   :  { %v1908_v16 = vrot.slane %v1900_v59, %v5549_v41  ;;  %v1915_v15 = vrot.slane %v1901_v60, %v5549_v41  ;;  %v1924_v62 = vrot.slane %v1916_v46, %v5549_v41  ;;  %v1931_v61 = vrot.slane %v1917_v17, %v5549_v41  ;;  %v5011_v2 = vpop.f32.mrb[29].mxu1 }
 0x532   :  { %v1727_v4 = vpop.f32.mrb[30].mxu1  ;;  %v1770_v6 = vpop.f32.mrb[24].mxu0 }
 0x533   :  { %v2004_v8 = vcombine.low %v1908_v16, %v1915_v15  ;;  %v4767_v9 = vcombine.high %v1908_v16, %v1915_v15  ;;  %v2020_v11 = vcombine.low %v1924_v62, %v1931_v61  ;;  %v4768_v13 = vcombine.high %v1924_v62, %v1931_v61  ;;  %v5012_v63 = vpop.f32.mrb[31].mxu1  ;;  %v5017_v19 = vpop.f32.mrb[25].mxu0  ;;  %v5226_v16 = vld [vmem:[%s6437_s3] sm:$0xff]  }
 0x534   :  { %v1773_v1 = vpop.f32.mrb[26].mxu0  ;;  %5032 = vmatpush3.bf16.msra.mxu1 %v5226_v16 }
 0x535   :  { %v2011_v20 = vrot.slane %v2004_v8, %v5545_v33  ;;  %v2019_v51 = vrot.slane %v4767_v9, %v5545_v33  ;;  %v2027_v21 = vrot.slane %v2020_v11, %v5545_v33  ;;  %v2035_v22 = vrot.slane %v4768_v13, %v5545_v33  ;;  %v5018_v54 = vpop.f32.mrb[27].mxu0  ;;  %5033 = vmatprep.subr.bf16.mxu1 %v5344_v0  ;;  %v5227_v1 = vld [vmem:[%s6437_s3 + $0x8] sm:$0xff]  }
 0x537   :  { %v2037_v23 = vcombine.high %v2011_v20, %v2019_v51  ;;  %v2053_v3 = vcombine.high %v2027_v21, %v2035_v22  ;;  %v2036_v26 = vcombine.low %v2011_v20, %v2019_v51  ;;  %v2052_v29 = vcombine.low %v2027_v21, %v2035_v22 }
 0x538   :  { %v1816_v31 = vpop.f32.mrb[32].mxu1  ;;  %5034 = vmatpush3.bf16.msra.mxu1 %v5227_v1 }
 0x539   :  { %v1936_v30 = vcombine.low %v1724_v47, %v1816_v31  ;;  %v1937_v32 = vcombine.high %v1724_v47, %v1816_v31  ;;  %v5023_v7 = vpop.f32.mrb[33].mxu1  ;;  %v2051_v34 = vrot.slane %v2037_v23, %v5549_v41  ;;  %v2067_v25 = vrot.slane %v2053_v3, %v5549_v41  ;;  %5047 = vmatprep.subr.bf16.mxu1 %v5344_v0 }
 0x53a   :  { %v1819_v35 = vpop.f32.mrb[34].mxu1  ;;  %v1862_v5 = vpop.f32.mrb[28].mxu0  ;;  %v5855_v14 = vrot.slane %v2036_v26, %v5549_v41  ;;  %v5858_v36 = vrot.slane %v2052_v29, %v5549_v41 }
 0x53b   :  { %v1952_v37 = vcombine.low %v1770_v6, %v1862_v5  ;;  %v1953_v38 = vcombine.high %v1770_v6, %v1862_v5  ;;  %v5024_v10 = vpop.f32.mrb[35].mxu1  ;;  %v5029_v39 = vpop.f32.mrb[29].mxu0  ;;  %v2070_v42 = vcombine.low %v2051_v34, %v2067_v25  ;;  %v2071_v45 = vcombine.high %v2051_v34, %v2067_v25 }
 0x53c   :  { %v1865_v40 = vpop.f32.mrb[30].mxu0  ;;  %v2068_v43 = vcombine.low %v5855_v14, %v5858_v36  ;;  %v2069_v44 = vcombine.high %v5855_v14, %v5858_v36  ;;  %v1944_v50 = vrot.slane %v1936_v30, %v5545_v33  ;;  %v1951_v52 = vrot.slane %v1937_v32, %v5545_v33 }
 0x53d   :  { %v1960_v55 = vrot.slane %v1952_v37, %v5545_v33  ;;  %v1967_v12 = vrot.slane %v1953_v38, %v5545_v33  ;;  %v5030_v53 = vpop.f32.mrb[31].mxu0  ;;  %v4771_v40 = vld [vmem:[%s6438_s26] ss:$0 sm:$0xff]  ;;  %s6439_s26 = sld [smem:[#allocation6_spill]] }
 0x53f   :  { %v1968_v48 = vcombine.low %v1944_v50, %v1960_v55  ;;  %v1969_v56 = vcombine.high %v1944_v50, %v1960_v55  ;;  %v1984_v57 = vcombine.low %v1951_v52, %v1967_v12  ;;  %v1985_v58 = vcombine.high %v1951_v52, %v1967_v12 }
 0x541   :  { %v1976_v18 = vrot.slane %v1968_v48, %v5549_v41  ;;  %v1983_v49 = vrot.slane %v1969_v56, %v5549_v41  ;;  %v1992_v24 = vrot.slane %v1984_v57, %v5549_v41  ;;  %v1999_v59 = vrot.slane %v1985_v58, %v5549_v41 }
 0x543   :  { %v2072_v60 = vcombine.low %v1976_v18, %v1983_v49  ;;  %v4769_v46 = vcombine.high %v1976_v18, %v1983_v49  ;;  %v2088_v17 = vcombine.low %v1992_v24, %v1999_v59  ;;  %v4770_v47 = vcombine.high %v1992_v24, %v1999_v59  ;;  %v5228_v18 = vld [vmem:[%s6409_s10] sm:$0xff]   ;;  %v5229_v49 = vld [vmem:[%s6409_s10 + $0x8] sm:$0xff]  }
 0x544   :  { %v5230_v24 = vld [vmem:[%s6439_s26] sm:$0xff]  }
 0x545   :  { %v2079_v15 = vrot.slane %v2072_v60, %v5545_v33  ;;  %v2087_v62 = vrot.slane %v4769_v46, %v5545_v33  ;;  %v2095_v61 = vrot.slane %v2088_v17, %v5545_v33  ;;  %v2103_v2 = vrot.slane %v4770_v47, %v5545_v33 }
 0x547   :  { %v2105_v4 = vcombine.high %v2079_v15, %v2087_v62  ;;  %v2121_v6 = vcombine.high %v2095_v61, %v2103_v2  ;;  %v2104_v8 = vcombine.low %v2079_v15, %v2087_v62  ;;  %v2120_v9 = vcombine.low %v2095_v61, %v2103_v2 }
 0x549   :  { %v2119_v11 = vrot.slane %v2105_v4, %v5549_v41  ;;  %v2135_v13 = vrot.slane %v2121_v6, %v5549_v41  ;;  %v2112_v63 = vrot.slane %v2104_v8, %v5549_v41  ;;  %v2128_v19 = vrot.slane %v2120_v9, %v5549_v41  ;;  %v5231_v4 = vld [vmem:[%s6407_s8] sm:$0xff]   ;;  %v5232_v6 = vld [vmem:[%s6407_s8 + $0x8] sm:$0xff]  }
 0x54a   :  { %5040 = vmatpush3.bf16.msra.mxu0 %v5231_v4  ;;  %v4781_v8 = vld [vmem:[%s6410_s11] ss:$0 sm:$0xff] }
 0x54b   :  { %v2138_v20 = vcombine.low %v2119_v11, %v2135_v13  ;;  %v2137_v51 = vcombine.high %v2112_v63, %v2128_v19  ;;  %v2136_v21 = vcombine.low %v2112_v63, %v2128_v19  ;;  %v2139_v22 = vcombine.high %v2119_v11, %v2135_v13  ;;  %5041 = vmatprep.subr.bf16.mxu0 %v5344_v0 }
 0x54d   :  { %v5198_v54 = vpack.i.bf16 %v2138_v20, %v2070_v42  ;;  %v5193_v23 = vpack.i.bf16 %v2137_v51, %v2069_v44  ;;  %v5203_v3 = vpack.i.bf16 %v2139_v22, %v2071_v45  ;;  %v5318_v42 = vld [vmem:[%s6433_s4] sm:$0xff]  }
 0x54e   :  { %v87_v52 = vunpack.c.h.bf16 %v5318_v42  ;;  %5042 = vmatpush3.bf16.msra.mxu0 %v5232_v6 }
 0x54f   :  { %5199 = vrot.lane.b32.xlu0 %v5198_v54, %s5354_s29  ;;  %5194 = vrot.lane.b32.xlu1 %v5193_v23, %s5355_s30 }
 0x550   :  { %5055 = vmatprep.subr.bf16.mxu0 %v5344_v0 }
 0x553   :  { %5204 = vrot.lane.b32.xlu1 %v5203_v3, %s5356_s0 }
 0x5c1   :  { %v5200_v26 = vpop.permute.xlu0 %5199  ;;  %v5195_v29 = vpop.permute.xlu1 %5194 }
 0x5c2   :  { %v5197_v31 = vunpack.i.h.bf16 %v5195_v29  ;;  %v5196_v30 = vunpack.i.l.bf16 %v5195_v29  ;;  %v5202_v32 = vunpack.i.h.bf16 %v5200_v26  ;;  %v5201_v7 = vunpack.i.l.bf16 %v5200_v26  ;;  %v4775_v29 = vld [vmem:[%s6440_s28] ss:$0 sm:$0xff] }
 0x5c4   :  { %v2164_v34 = vsel %vm1024_vm2, %v2068_v43, %v5196_v30  ;;  %v2165_v25 = vsel %vm1024_vm2, %v2136_v21, %v5197_v31  ;;  %v86_v43 = vunpack.c.l.bf16 %v5318_v42 }
 0x5c5   :  { %v5205_v35 = vpop.permute.xlu1 %5204  ;;  %v2167_v36 = vsel %vm2166_vm5, %v2164_v34, %v5201_v7  ;;  %v2168_v37 = vsel %vm2166_vm5, %v2165_v25, %v5202_v32  ;;  %v4776_v34 = vld [vmem:[%s6406_s7] ss:$0 sm:$0xff] }
 0x5c6   :  { %v5207_v5 = vunpack.i.h.bf16 %v5205_v35  ;;  %v5206_v14 = vunpack.i.l.bf16 %v5205_v35 }
 0x5c8   :  { %v2170_v38 = vsel %vm2169_vm6, %v2167_v36, %v5206_v14  ;;  %v2171_v10 = vsel %vm2169_vm6, %v2168_v37, %v5207_v5 }
 0x5c9   :  { %v2172_v39 = vpack.c.bf16 %v2171_v10, %v2170_v38 }
 0x5cb   :  { %5036 = vmatmul.mubr.msk.bf16.vlgmr.msra.gmra.mrb[36].mxu1 %vm123_vm1, %v2172_v39 }
 0x5cc   :  { %5051 = vmatprep.mubr.msk.bf16.mxu1 %vm5345_vm0, %v5344_v0  ;;  %5048 = vmatpush3.bf16.msra.mxu1 %v5228_v18 }
 0x5cd   :  { %5049 = vmatprep.subr.bf16.mxu1 %v5344_v0 }
 0x5d0   :  { %5050 = vmatpush3.bf16.msra.mxu1 %v5229_v49 }
 0x5d1   :  { %5061 = vmatprep.subr.bf16.mxu1 %v5344_v0 }
 0x5d3   :  { %5052 = vmatmul.mubr.msk.bf16.vlgmr.msra.gmra.mrb[40].mxu1 %vm123_vm1, %v5230_v24 }
 0x5d4   :  { %5063 = vmatprep.mubr.msk.bf16.mxu1 %vm5345_vm0, %v5344_v0 }
 0x69e   :  { %v2233_v44 = vpop.f32.mrb[36].mxu1 }
 0x69f   :  { %v2234_v45 = vadd.f32 %v4771_v40, %v2233_v44  ;;  %v5037_v50 = vpop.f32.mrb[37].mxu1 }
 0x6a0   :  { %v2236_v55 = vpop.f32.mrb[38].mxu1 }
 0x6a1   :  { %v2237_v12 = vadd.f32 %v4771_v40, %v2236_v55  ;;  %v5038_v53 = vpop.f32.mrb[39].mxu1  ;;  %v2240_v48 = vadd.f32 %v2234_v45, %v86_v43 }
 0x6a3   :  { %v2242_v56 = vsel %vm123_vm1, %v2240_v48, 0.0  ;;  %v2241_v57 = vadd.f32 %v2237_v12, %v87_v52 }
 0x6a4   :  { %2243 = vadd.xlane.f32.xlu1 %v2242_v56 }
 0x6a5   :  { %v2245_v58 = vsel %vm123_vm1, %v2241_v57, 0.0 }
 0x6a6   :  { %2246 = vadd.xlane.f32.xlu0 %v2245_v58  ;;  %v2420_v9 = vpop.f32.mrb[40].mxu1 }
 0x6a7   :  { %v2421_v11 = vadd.f32 %v4781_v8, %v2420_v9  ;;  %v5053_v13 = vpop.f32.mrb[41].mxu1 }
 0x6a8   :  { %v2423_v63 = vpop.f32.mrb[42].mxu1 }
 0x6a9   :  { %v2424_v19 = vadd.f32 %v4781_v8, %v2423_v63  ;;  %v5054_v1 = vpop.f32.mrb[43].mxu1 }
 0x6ab   :  { %v5935_v20 = vpack.c.bf16 %v2424_v19, %v2421_v11 }
 0x6ad   :  { %v2721_v36 = vshrl.u32 %v5935_v20, 16 }
 0x731   :  { %v2244_v59 = vpop.xlane.xlu1 %2243 }
 0x732   :  { %v2249_v60 = vmul.f32 0.03125, %v2244_v59 }
 0x733   :  { %v2247_v46 = vpop.xlane.xlu0 %2246 }
 0x734   :  { %v2251_v17 = vsub.f32 %v2240_v48, %v2249_v60  ;;  %v2250_v47 = vmul.f32 0.03125, %v2247_v46 }
 0x736   :  { %v2252_v16 = vsub.f32 %v2241_v57, %v2250_v47  ;;  %v2253_v15 = vmul.f32 %v2251_v17, %v2251_v17 }
 0x738   :  { %v2255_v62 = vsel %vm123_vm1, %v2253_v15, 0.0  ;;  %v2254_v61 = vmul.f32 %v2252_v16, %v2252_v16 }
 0x739   :  { %2256 = vadd.xlane.f32.xlu0 %v2255_v62 }
 0x73a   :  { %v2258_v2 = vsel %vm123_vm1, %v2254_v61, 0.0 }
 0x73b   :  { %2259 = vadd.xlane.f32.xlu1 %v2258_v2 }
 0x74c   :  { %2713 = vrot.lane.b32.xlu1 %v5935_v20, %s5349_s25 }
 0x74f   :  { %2711 = vrot.lane.b32.xlu0 %v5935_v20, %s5347_s24 }
 0x750   :  { %2715 = vrot.lane.b32.xlu1 %v5935_v20, %s5346_s5 }
 0x7c6   :  { %v2257_v51 = vpop.xlane.xlu0 %2256 }
 0x7c7   :  { %v2261_v21 = vmul.f32 0.03125, %v2257_v51 }
 0x7c8   :  { %v2260_v22 = vpop.xlane.xlu1 %2259 }
 0x7c9   :  { %v2263_v54 = vadd.f32 1e-05, %v2261_v21  ;;  %v2262_v23 = vmul.f32 0.03125, %v2260_v22 }
 0x7ca   :  { %v5961_v38 = vpop.permute.xlu0 %2711 }
 0x7cb   :  { %5274 = vrsqrt.f32 %v2263_v54  ;;  %v2264_v3 = vadd.f32 1e-05, %v2262_v23  ;;  %v2719_v10 = vpack.i.b16 %v5961_v38, %v5935_v20  ;;  %v2722_v39 = vshrl.u32 %v5961_v38, 16 }
 0x7cc   :  { %v5959_v37 = vpop.permute.xlu1 %2713 }
 0x7cd   :  { %5276 = vrsqrt.f32 %v2264_v3  ;;  %v2723_v40 = vpack.i.b16 %v2722_v39, %v2721_v36  ;;  %v2733_v42 = vcombine.high %v2719_v10, %v5542_v28  ;;  %v2729_v43 = vshrl.u32 %v5959_v37, 16 }
 0x7ce   :  { %v2740_v2 = vrot.slane %v2719_v10, %v5545_v33 }
 0x7cf   :  { %v2799_v50 = vcombine.high %v2723_v40, %v5542_v28  ;;  %v2747_v55 = vrot.slane %v2733_v42, %v5545_v33  ;;  %v2806_v6 = vrot.slane %v2723_v40, %v5545_v33 }
 0x7d0   :  { %v5968_v44 = vpop.permute.xlu1 %2715 }
 0x7d1   :  { %v2727_v45 = vpack.i.b16 %v5968_v44, %v5959_v37  ;;  %v2730_v52 = vshrl.u32 %v5968_v44, 16  ;;  %v2813_v56 = vrot.slane %v2799_v50, %v5545_v33 }
 0x7d3   :  { %v2748_v12 = vcombine.high %v2727_v45, %v5542_v28  ;;  %v2731_v53 = vpack.i.b16 %v2730_v52, %v2729_v43  ;;  %v2755_v4 = vrot.slane %v2727_v45, %v5545_v33 }
 0x7d5   :  { %v5275_v26 = vpop.eup %5274  ;;  %v2762_v48 = vrot.slane %v2748_v12, %v5545_v33  ;;  %v2814_v57 = vcombine.high %v2731_v53, %v5542_v28  ;;  %v2763_v8 = vcombine.low %v2740_v2, %v2755_v4  ;;  %v2764_v9 = vcombine.high %v2740_v2, %v2755_v4  ;;  %v4777_v4 = vld [vmem:[%s6408_s9] ss:$0 sm:$0xff] }
 0x7d6   :  { %v2267_v31 = vmul.f32 %v5275_v26, %v2251_v17  ;;  %v2821_v11 = vrot.slane %v2731_v53, %v5545_v33 }
 0x7d7   :  { %v5277_v30 = vpop.eup %5276  ;;  %v2779_v58 = vcombine.low %v2747_v55, %v2762_v48  ;;  %v2780_v18 = vcombine.high %v2747_v55, %v2762_v48  ;;  %v2828_v49 = vrot.slane %v2814_v57, %v5545_v33  ;;  %v2771_v13 = vrot.slane %v2763_v8, %v5549_v41 }
 0x7d8   :  { %v2276_v32 = vmul.f32 %v4775_v29, %v2267_v31  ;;  %v2268_v7 = vmul.f32 %v5277_v30, %v2252_v16  ;;  %v2778_v63 = vrot.slane %v2764_v9, %v5549_v41  ;;  %v2829_v19 = vcombine.low %v2806_v6, %v2821_v11 }
 0x7d9   :  { %v2787_v24 = vrot.slane %v2779_v58, %v5549_v41  ;;  %v2794_v59 = vrot.slane %v2780_v18, %v5549_v41  ;;  %v2845_v60 = vcombine.low %v2813_v56, %v2828_v49  ;;  %v2846_v46 = vcombine.high %v2813_v56, %v2828_v49 }
 0x7da   :  { %v2277_v25 = vmul.f32 %v4775_v29, %v2268_v7  ;;  %v5949_v35 = vadd.f32 %v4776_v34, %v2276_v32  ;;  %v2830_v1 = vcombine.high %v2806_v6, %v2821_v11  ;;  %v2837_v51 = vrot.slane %v2829_v19, %v5549_v41 }
 0x7db   :  { %v2915_v17 = vcombine.low %v2787_v24, %v2794_v59  ;;  %v4792_v47 = vcombine.high %v2787_v24, %v2794_v59  ;;  %v2853_v16 = vrot.slane %v2845_v60, %v5549_v41  ;;  %v2860_v15 = vrot.slane %v2846_v46, %v5549_v41 }
 0x7dc   :  { %v5951_v5 = vadd.f32 %v4776_v34, %v2277_v25  ;;  %v2844_v21 = vrot.slane %v2830_v1, %v5549_v41  ;;  %v2865_v22 = vcombine.low %v2771_v13, %v2778_v63  ;;  %v4790_v54 = vcombine.high %v2771_v13, %v2778_v63 }
 0x7dd   :  { %v2940_v62 = vcombine.low %v2853_v16, %v2860_v15  ;;  %v4793_v61 = vcombine.high %v2853_v16, %v2860_v15  ;;  %v2922_v42 = vrot.slane %v2915_v17, %v5545_v33  ;;  %v2930_v43 = vrot.slane %v4792_v47, %v5545_v33 }
 0x7de   :  { %v2287_v14 = vpack.c.bf16 %v5951_v5, %v5949_v35  ;;  %v2872_v23 = vrot.slane %v2865_v22, %v5545_v33  ;;  %v2880_v3 = vrot.slane %v4790_v54, %v5545_v33  ;;  %v2890_v26 = vcombine.low %v2837_v51, %v2844_v21 }
 0x7df   :  { %v4791_v29 = vcombine.high %v2837_v51, %v2844_v21  ;;  %v2947_v45 = vrot.slane %v2940_v62, %v5545_v33  ;;  %v2955_v50 = vrot.slane %v4793_v61, %v5545_v33  ;;  %v2931_v55 = vcombine.low %v2922_v42, %v2930_v43 }
 0x7e0   :  { %5044 = vmatmul.mubr.msk.bf16.vlgmr.msra.gmra.mrb[32].mxu0 %vm123_vm1, %v2287_v14  ;;  %v2881_v31 = vcombine.low %v2872_v23, %v2880_v3  ;;  %v2897_v30 = vrot.slane %v2890_v26, %v5545_v33 }
 0x7e1   :  { %5057 = vmatprep.mubr.msk.bf16.mxu0 %vm5345_vm0, %v5344_v0  ;;  %v2905_v32 = vrot.slane %v4791_v29, %v5545_v33  ;;  %v2956_v12 = vcombine.low %v2947_v45, %v2955_v50  ;;  %v6013_v56 = vrot.slane %v2931_v55, %v5549_v41 }
 0x7e2   :  { %v2888_v7 = vrot.slane %v2881_v31, %v5549_v41 }
 0x7e3   :  { %v2906_v34 = vcombine.low %v2897_v30, %v2905_v32  ;;  %v6016_v57 = vrot.slane %v2956_v12, %v5549_v41  ;;  %v2980_v24 = vshrl.u32 %v6013_v56, 16  ;;  %v6028_v46 = vcombine.high %v6013_v56, %v5352_v27 }
 0x7e4   :  { %v2968_v14 = vshrl.u32 %v2888_v7, 16  ;;  %v6006_v53 = vcombine.high %v2888_v7, %v5352_v27 }
 0x7e5   :  { %v2913_v25 = vrot.slane %v2906_v34, %v5549_v41  ;;  %v2979_v59 = vpack.i.b16 %v6016_v57, %v6013_v56  ;;  %v2981_v60 = vshrl.u32 %v6016_v57, 16  ;;  %v6032_v17 = vcombine.high %v6016_v57, %v5352_v27 }
 0x7e6   :  { %v2974_v18 = vshrl.u32 %v6006_v53, 16  ;;  %v2986_v62 = vshrl.u32 %v6028_v46, 16 }
 0x7e7   :  { %v2967_v36 = vpack.i.b16 %v2913_v25, %v2888_v7  ;;  %v2969_v10 = vshrl.u32 %v2913_v25, 16  ;;  %v6009_v48 = vcombine.high %v2913_v25, %v5352_v27  ;;  %v6036_v16 = vpack.i.b16 %v2981_v60, %v2980_v24 }
 0x7e8   :  { %v2985_v15 = vpack.i.b16 %v6032_v17, %v6028_v46  ;;  %v2987_v61 = vshrl.u32 %v6032_v17, 16 }
 0x7e9   :  { %v3273_v39 = vsel %vm1024_vm2, %v2967_v36, 0  ;;  %v2970_v40 = vpack.i.b16 %v2969_v10, %v2968_v14  ;;  %v2973_v58 = vpack.i.b16 %v6009_v48, %v6006_v53  ;;  %v2975_v49 = vshrl.u32 %v6009_v48, 16 }
 0x7ea   :  { %5056 = vmatpush3.bf16.xpose.msra.mxu0 %v3273_v39  ;;  %v6042_v2 = vpack.i.b16 %v2987_v61, %v2986_v62 }
 0x7eb   :  { %v3319_v52 = vsel %vm1024_vm2, %v2970_v40, 0  ;;  %5067 = vmatprep.subr.bf16.mxu0 %v5344_v0  ;;  %v6034_v47 = vpack.i.b16 %v2975_v49, %v2974_v18 }
 0x7ec   :  { %5062 = vmatpush3.bf16.xpose.msra.mxu1 %v3319_v52 }
 0x7ed   :  { %5073 = vmatprep.subr.bf16.mxu1 %v5344_v0  ;;  %v3411_v53 = vsel %vm1024_vm2, %v6034_v47, 0  ;;  %v3457_v47 = vsel %vm1024_vm2, %v2979_v59, 0 }
 0x8b3   :  { %v2348_v6 = vpop.f32.mrb[32].mxu0 }
 0x8b4   :  { %v2349_v8 = vadd.f32 %v4777_v4, %v2348_v6  ;;  %v5045_v9 = vpop.f32.mrb[33].mxu0 }
 0x8b5   :  { %v2351_v11 = vpop.f32.mrb[34].mxu0 }
 0x8b6   :  { %v2352_v13 = vadd.f32 %v4777_v4, %v2351_v11  ;;  %v5046_v63 = vpop.f32.mrb[35].mxu0  ;;  %v2428_v19 = vmul.f32 0.35355338, %v2349_v8 }
 0x8b8   :  { %v2429_v1 = vmul.f32 0.35355338, %v2352_v13 }
 0x8ba   :  { %v2430_v51 = vpack.c.bf16 %v2429_v1, %v2428_v19 }
 0x8bc   :  { %2434 = vrot.lane.b32.xlu1 %v2430_v51, %s5349_s25  ;;  %2432 = vrot.lane.b32.xlu0 %v2430_v51, %s5347_s24  ;;  %v2442_v54 = vshrl.u32 %v2430_v51, 16 }
 0x8c0   :  { %2436 = vrot.lane.b32.xlu0 %v2430_v51, %s5346_s5 }
 0x92e   :  { %v2433_v21 = vpop.permute.xlu0 %2432  ;;  %v2435_v3 = vpop.permute.xlu1 %2434 }
 0x92f   :  { %v2443_v22 = vshrl.u32 %v2433_v21, 16  ;;  %v2440_v23 = vpack.i.b16 %v2433_v21, %v2430_v51  ;;  %v2450_v30 = vshrl.u32 %v2435_v3, 16 }
 0x931   :  { %v2444_v26 = vpack.i.b16 %v2443_v22, %v2442_v54  ;;  %v2461_v7 = vrot.slane %v2440_v23, %v5545_v33  ;;  %v2454_v10 = vcombine.high %v2440_v23, %v5542_v28 }
 0x932   :  { %v2437_v29 = vpop.permute.xlu0 %2436 }
 0x933   :  { %v2448_v31 = vpack.i.b16 %v2437_v29, %v2435_v3  ;;  %v2451_v32 = vshrl.u32 %v2437_v29, 16  ;;  %v2520_v14 = vcombine.high %v2444_v26, %v5542_v28  ;;  %v2527_v42 = vrot.slane %v2444_v26, %v5545_v33 }
 0x934   :  { %v2468_v60 = vrot.slane %v2454_v10, %v5545_v33 }
 0x935   :  { %v2469_v34 = vcombine.high %v2448_v31, %v5542_v28  ;;  %v2476_v25 = vrot.slane %v2448_v31, %v5545_v33  ;;  %v2452_v36 = vpack.i.b16 %v2451_v32, %v2450_v30  ;;  %v2534_v12 = vrot.slane %v2520_v14, %v5545_v33 }
 0x937   :  { %v2484_v39 = vcombine.low %v2461_v7, %v2476_v25  ;;  %v2485_v40 = vcombine.high %v2461_v7, %v2476_v25  ;;  %v2535_v43 = vcombine.high %v2452_v36, %v5542_v28  ;;  %v2542_v45 = vrot.slane %v2452_v36, %v5545_v33 }
 0x938   :  { %v2483_v50 = vrot.slane %v2469_v34, %v5545_v33 }
 0x939   :  { %v2492_v52 = vrot.slane %v2484_v39, %v5549_v41  ;;  %v2499_v55 = vrot.slane %v2485_v40, %v5549_v41  ;;  %v2549_v18 = vrot.slane %v2535_v43, %v5545_v33  ;;  %v2550_v49 = vcombine.low %v2527_v42, %v2542_v45 }
 0x93a   :  { %v2551_v24 = vcombine.high %v2527_v42, %v2542_v45  ;;  %v2500_v11 = vcombine.low %v2468_v60, %v2483_v50  ;;  %v2501_v13 = vcombine.high %v2468_v60, %v2483_v50  ;;  %v3365_v40 = vsel %vm1024_vm2, %v2973_v58, 0 }
 0x93b   :  { %v2586_v62 = vcombine.low %v2492_v52, %v2499_v55  ;;  %v4786_v61 = vcombine.high %v2492_v52, %v2499_v55  ;;  %v2558_v4 = vrot.slane %v2550_v49, %v5549_v41  ;;  %v2566_v8 = vcombine.low %v2534_v12, %v2549_v18 }
 0x93c   :  { %v2565_v6 = vrot.slane %v2551_v24, %v5549_v41  ;;  %v2567_v9 = vcombine.high %v2534_v12, %v2549_v18  ;;  %v2508_v26 = vrot.slane %v2500_v11, %v5549_v41  ;;  %v2515_v29 = vrot.slane %v2501_v13, %v5549_v41 }
 0x93d   :  { %v2593_v63 = vrot.slane %v2586_v62, %v5545_v33  ;;  %v2601_v19 = vrot.slane %v4786_v61, %v5545_v33  ;;  %v2574_v22 = vrot.slane %v2566_v8, %v5549_v41  ;;  %v3503_v61 = vsel %vm1024_vm2, %v6036_v16, 0 }
 0x93e   :  { %v2611_v1 = vcombine.low %v2558_v4, %v2565_v6  ;;  %v4787_v51 = vcombine.high %v2558_v4, %v2565_v6  ;;  %v2581_v54 = vrot.slane %v2567_v9, %v5549_v41  ;;  %v2636_v25 = vcombine.low %v2508_v26, %v2515_v29 }
 0x93f   :  { %v2602_v21 = vcombine.low %v2593_v63, %v2601_v19  ;;  %v4788_v14 = vcombine.high %v2508_v26, %v2515_v29  ;;  %v3549_v16 = vsel %vm1024_vm2, %v2985_v15, 0  ;;  %v3595_v9 = vsel %vm1024_vm2, %v6042_v2, 0 }
 0x940   :  { %v2618_v23 = vrot.slane %v2611_v1, %v5545_v33  ;;  %v2626_v3 = vrot.slane %v4787_v51, %v5545_v33  ;;  %v2661_v32 = vcombine.low %v2574_v22, %v2581_v54  ;;  %v4789_v7 = vcombine.high %v2574_v22, %v2581_v54 }
 0x941   :  { %v2609_v31 = vrot.slane %v2602_v21, %v5549_v41  ;;  %v2643_v52 = vrot.slane %v2636_v25, %v5545_v33  ;;  %v2651_v55 = vrot.slane %v4788_v14, %v5545_v33 }
 0x942   :  { %v2627_v30 = vcombine.low %v2618_v23, %v2626_v3  ;;  %v2668_v42 = vrot.slane %v2661_v32, %v5545_v33  ;;  %v2676_v43 = vrot.slane %v4789_v7, %v5545_v33 }
 0x943   :  { %v2689_v10 = vshrl.u32 %v2609_v31, 16  ;;  %v2610_v48 = vcombine.high %v2609_v31, %v5352_v27  ;;  %v2652_v18 = vcombine.low %v2643_v52, %v2651_v55 }
 0x944   :  { %v2634_v34 = vrot.slane %v2627_v30, %v5549_v41  ;;  %v2677_v58 = vcombine.low %v2668_v42, %v2676_v43 }
 0x945   :  { %v2695_v24 = vshrl.u32 %v2610_v48, 16  ;;  %v2659_v4 = vrot.slane %v2652_v18, %v5549_v41 }
 0x946   :  { %v2688_v36 = vpack.i.b16 %v2634_v34, %v2609_v31  ;;  %v2690_v39 = vshrl.u32 %v2634_v34, 16  ;;  %v2635_v50 = vcombine.high %v2634_v34, %v5352_v27  ;;  %v2684_v62 = vrot.slane %v2677_v58, %v5549_v41 }
 0x947   :  { %v2701_v59 = vshrl.u32 %v2659_v4, 16  ;;  %v2660_v11 = vcombine.high %v2659_v4, %v5352_v27 }
 0x948   :  { %5058 = vmatmul.mubr.msk.bf16.vlgmr.msra.gmra.mrb[36].mxu0 %vm1024_vm2, %v2688_v36  ;;  %v2691_v45 = vpack.i.b16 %v2690_v39, %v2689_v10  ;;  %v2696_v12 = vshrl.u32 %v2635_v50, 16  ;;  %v2694_v49 = vpack.i.b16 %v2635_v50, %v2610_v48  ;;  %v2702_v56 = vshrl.u32 %v2684_v62, 16 }
 0x949   :  { %5068 = vmatpush3.bf16.xpose.msra.mxu0 %v3365_v40  ;;  %5069 = vmatprep.mubr.msk.bf16.mxu0 %vm5345_vm0, %v5344_v0  ;;  %v2700_v57 = vpack.i.b16 %v2684_v62, %v2659_v4  ;;  %v2685_v8 = vcombine.high %v2684_v62, %v5352_v27  ;;  %v2707_v15 = vshrl.u32 %v2660_v11, 16 }
 0x94a   :  { %5064 = vmatmul.mubr.msk.bf16.vlgmr.msra.gmra.mrb[44].mxu1 %vm1024_vm2, %v2691_v45  ;;  %5079 = vmatprep.subr.bf16.mxu0 %v5344_v0  ;;  %v2697_v60 = vpack.i.b16 %v2696_v12, %v2695_v24  ;;  %v2703_v6 = vpack.i.b16 %v2702_v56, %v2701_v59 }
 0x94b   :  { %5074 = vmatpush3.bf16.xpose.msra.mxu1 %v3411_v53  ;;  %5075 = vmatprep.mubr.msk.bf16.mxu1 %vm5345_vm0, %v5344_v0  ;;  %v2708_v46 = vshrl.u32 %v2685_v8, 16  ;;  %v2706_v17 = vpack.i.b16 %v2685_v8, %v2660_v11 }
 0x94c   :  { %5085 = vmatprep.subr.bf16.mxu1 %v5344_v0 }
 0x94d   :  { %v2709_v13 = vpack.i.b16 %v2708_v46, %v2707_v15 }
 0x950   :  { %5070 = vmatmul.mubr.msk.bf16.vlgmr.msra.gmra.mrb[40].mxu0 %vm1024_vm2, %v2694_v49 }
 0x951   :  { %5080 = vmatpush3.bf16.xpose.msra.mxu0 %v3457_v47  ;;  %5081 = vmatprep.mubr.msk.bf16.mxu0 %vm5345_vm0, %v5344_v0 }
 0x952   :  { %5076 = vmatmul.mubr.msk.bf16.vlgmr.msra.gmra.mrb[48].mxu1 %vm1024_vm2, %v2697_v60  ;;  %5091 = vmatprep.subr.bf16.mxu0 %v5344_v0 }
 0x953   :  { %5086 = vmatpush3.bf16.xpose.msra.mxu1 %v3503_v61  ;;  %5087 = vmatprep.mubr.msk.bf16.mxu1 %vm5345_vm0, %v5344_v0 }
 0x954   :  { %5097 = vmatprep.subr.bf16.mxu1 %v5344_v0 }
 0x958   :  { %5082 = vmatmul.mubr.msk.bf16.vlgmr.msra.gmra.mrb[44].mxu0 %vm1024_vm2, %v2700_v57 }
 0x959   :  { %5092 = vmatpush3.bf16.xpose.msra.mxu0 %v3549_v16  ;;  %5093 = vmatprep.mubr.msk.bf16.mxu0 %vm5345_vm0, %v5344_v0 }
 0x95a   :  { %5088 = vmatmul.mubr.msk.bf16.vlgmr.msra.gmra.mrb[52].mxu1 %vm1024_vm2, %v2703_v6  ;;  %5103 = vmatprep.subr.bf16.mxu0 %v5344_v0 }
 0x95b   :  { %5098 = vmatpush3.bf16.xpose.msra.mxu1 %v3595_v9  ;;  %5099 = vmatprep.mubr.msk.bf16.mxu1 %vm5345_vm0, %v5344_v0 }
 0x95c   :  { %5109 = vmatprep.subr.bf16.mxu1 %v5344_v0 }
 0x960   :  { %5094 = vmatmul.mubr.msk.bf16.vlgmr.msra.gmra.mrb[48].mxu0 %vm1024_vm2, %v2706_v17 }
 0x961   :  { %5105 = vmatprep.mubr.msk.bf16.mxu0 %vm5345_vm0, %v5344_v0 }
 0x962   :  { %5100 = vmatmul.mubr.msk.bf16.vlgmr.msra.gmra.mrb[56].mxu1 %vm1024_vm2, %v2709_v13 }
 0x963   :  { %5111 = vmatprep.mubr.msk.bf16.mxu1 %vm5345_vm0, %v5344_v0 }
 0xa1b   :  { %v3309_v2 = vpop.f32.mrb[36].mxu0 }
 0xa1c   :  { %v5059_v63 = vpop.f32.mrb[37].mxu0  ;;  %v3637_v19 = vsel %vm1024_vm2, %v3309_v2, -inf }
 0xa1d   :  { %v3355_v1 = vpop.f32.mrb[44].mxu1  ;;  %3638 = vmax.xlane.f32.xlu1 %v3637_v19  ;;  %v3312_v51 = vpop.f32.mrb[38].mxu0 }
 0xa1e   :  { %v5060_v21 = vpop.f32.mrb[39].mxu0  ;;  %v5065_v22 = vpop.f32.mrb[45].mxu1  ;;  %v3640_v54 = vsel %vm1024_vm2, %v3355_v1, -inf }
 0xa1f   :  { %3641 = vmax.xlane.f32.xlu0 %v3640_v54  ;;  %v3358_v23 = vpop.f32.mrb[46].mxu1 }
 0xa20   :  { %v5066_v3 = vpop.f32.mrb[47].mxu1 }
 0xa23   :  { %v6136_v26 = vpop.f32.mrb[40].mxu0 }
 0xa24   :  { %v5071_v29 = vpop.f32.mrb[41].mxu0  ;;  %v3643_v31 = vsel %vm1024_vm2, %v6136_v26, -inf }
 0xa25   :  { %v3447_v30 = vpop.f32.mrb[48].mxu1  ;;  %3644 = vmax.xlane.f32.xlu0 %v3643_v31  ;;  %v3404_v32 = vpop.f32.mrb[42].mxu0 }
 0xa26   :  { %v5072_v7 = vpop.f32.mrb[43].mxu0  ;;  %v5077_v34 = vpop.f32.mrb[49].mxu1  ;;  %v3646_v25 = vsel %vm1024_vm2, %v3447_v30, -inf }
 0xa27   :  { %3647 = vmax.xlane.f32.xlu1 %v3646_v25  ;;  %v3450_v14 = vpop.f32.mrb[50].mxu1 }
 0xa28   :  { %v5078_v36 = vpop.f32.mrb[51].mxu1 }
 0xa2b   :  { %v3493_v10 = vpop.f32.mrb[44].mxu0 }
 0xa2c   :  { %v5083_v39 = vpop.f32.mrb[45].mxu0  ;;  %v3649_v40 = vsel %vm1024_vm2, %v3493_v10, -inf }
 0xa2d   :  { %v3539_v42 = vpop.f32.mrb[52].mxu1  ;;  %3650 = vmax.xlane.f32.xlu0 %v3649_v40  ;;  %v3496_v43 = vpop.f32.mrb[46].mxu0 }
 0xa2e   :  { %v5084_v45 = vpop.f32.mrb[47].mxu0  ;;  %v5089_v50 = vpop.f32.mrb[53].mxu1  ;;  %v3652_v52 = vsel %vm1024_vm2, %v3539_v42, -inf }
 0xa2f   :  { %3653 = vmax.xlane.f32.xlu1 %v3652_v52  ;;  %v3542_v55 = vpop.f32.mrb[54].mxu1 }
 0xa30   :  { %v5090_v53 = vpop.f32.mrb[55].mxu1 }
 0xa33   :  { %v3585_v48 = vpop.f32.mrb[48].mxu0 }
 0xa34   :  { %v5095_v58 = vpop.f32.mrb[49].mxu0  ;;  %v3655_v12 = vsel %vm1024_vm2, %v3585_v48, -inf }
 0xa35   :  { %v3631_v18 = vpop.f32.mrb[56].mxu1  ;;  %3656 = vmax.xlane.f32.xlu0 %v3655_v12  ;;  %v3588_v49 = vpop.f32.mrb[50].mxu0 }
 0xa36   :  { %v5096_v24 = vpop.f32.mrb[51].mxu0  ;;  %v5101_v47 = vpop.f32.mrb[57].mxu1  ;;  %v3658_v60 = vsel %vm1024_vm2, %v3631_v18, -inf }
 0xa37   :  { %3659 = vmax.xlane.f32.xlu1 %v3658_v60  ;;  %v3634_v62 = vpop.f32.mrb[58].mxu1 }
 0xa38   :  { %v5102_v61 = vpop.f32.mrb[59].mxu1 }
 0xa48   :  { %2991 = vrot.lane.b32.xlu1 %v5961_v38, %s5348_s6 }
 0xa4b   :  { %2989 = vrot.lane.b32.xlu0 %v5935_v20, %s5348_s6 }
 0xaaa   :  { %v3639_v4 = vpop.xlane.xlu1 %3638 }
 0xaab   :  { %v3661_v56 = vsub.f32 %v3309_v2, %v3639_v4 }
 0xaac   :  { %v3642_v57 = vpop.xlane.xlu0 %3641 }
 0xaad   :  { %v3669_v59 = vmul.f32 1.442695, %v3661_v56  ;;  %v3662_v16 = vsub.f32 %v3355_v1, %v3642_v57 }
 0xaaf   :  { %5278 = vpow2.f32 %v3669_v59  ;;  %v3671_v6 = vmul.f32 1.442695, %v3662_v16 }
 0xab1   :  { %5280 = vpow2.f32 %v3671_v6 }
 0xab2   :  { %v3645_v20 = vpop.xlane.xlu0 %3644 }
 0xab3   :  { %v3663_v13 = vsub.f32 %v6136_v26, %v3645_v20 }
 0xab4   :  { %v3648_v46 = vpop.xlane.xlu1 %3647 }
 0xab5   :  { %v3664_v17 = vsub.f32 %v3447_v30, %v3648_v46  ;;  %v3673_v51 = vmul.f32 1.442695, %v3663_v13 }
 0xab7   :  { %v3675_v63 = vmul.f32 1.442695, %v3664_v17 }
 0xab9   :  { %v6149_v8 = vpop.eup %5278  ;;  %5282 = vpow2.f32 %v3675_v63 }
 0xaba   :  { %v3685_v9 = vsel %vm1024_vm2, %v6149_v8, 0.0  ;;  %v3651_v15 = vpop.xlane.xlu0 %3650  ;;  %5284 = vpow2.f32 %v3673_v51 }
 0xabb   :  { %v6153_v11 = vpop.eup %5280  ;;  %3686 = vadd.xlane.f32.xlu0 %v3685_v9  ;;  %v3665_v19 = vsub.f32 %v3493_v10, %v3651_v15 }
 0xabc   :  { %v3688_v38 = vsel %vm1024_vm2, %v6153_v11, 0.0  ;;  %v3654_v2 = vpop.xlane.xlu1 %3653 }
 0xabd   :  { %3689 = vadd.xlane.f32.xlu1 %v3688_v38  ;;  %v3666_v21 = vsub.f32 %v3539_v42, %v3654_v2  ;;  %v3677_v54 = vmul.f32 1.442695, %v3665_v19 }
 0xabf   :  { %5286 = vpow2.f32 %v3677_v54 }
 0xac2   :  { %v3657_v1 = vpop.xlane.xlu0 %3656 }
 0xac3   :  { %v3667_v23 = vsub.f32 %v3585_v48, %v3657_v1  ;;  %v6162_v31 = vpop.eup %5282 }
 0xac4   :  { %v3660_v22 = vpop.xlane.xlu1 %3659  ;;  %v6164_v26 = vpop.eup %5284  ;;  %v3694_v30 = vsel %vm1024_vm2, %v6162_v31, 0.0 }
 0xac5   :  { %v3668_v3 = vsub.f32 %v3631_v18, %v3660_v22  ;;  %v3691_v7 = vsel %vm1024_vm2, %v6164_v26, 0.0 }
 0xac6   :  { %v2990_v42 = vpop.permute.xlu0 %2989 }
 0xac7   :  { %v3683_v29 = vmul.f32 1.442695, %v3668_v3  ;;  %v3001_v48 = vshrl.u32 %v2990_v42, 16 }
 0xac8   :  { %v2992_v43 = vpop.permute.xlu1 %2991 }
 0xac9   :  { %v6168_v32 = vpop.eup %5286  ;;  %v3002_v52 = vshrl.u32 %v2992_v43, 16  ;;  %v6186_v53 = vpack.i.b16 %v2992_v43, %v2990_v42 }
 0xaca   :  { %v3697_v25 = vsel %vm1024_vm2, %v6168_v32, 0.0 }
 0xacb   :  { %v6190_v24 = vpack.i.b16 %v3002_v52, %v3001_v48  ;;  %v3020_v47 = vrot.slane %v6186_v53, %v5545_v33 }
 0xacd   :  { %v3086_v56 = vrot.slane %v6190_v24, %v5545_v33  ;;  %v3079_v48 = vcombine.high %v6190_v24, %v5542_v28 }
 0xace   :  { %2993 = vrot.lane.b32.xlu1 %v5959_v37, %s5348_s6  ;;  %v3679_v37 = vmul.f32 1.442695, %v3666_v21 }
 0xacf   :  { %v3093_v24 = vrot.slane %v3079_v48, %v5545_v33 }
 0xad0   :  { %5288 = vpow2.f32 %v3679_v37 }
 0xad1   :  { %2995 = vrot.lane.b32.xlu0 %v5968_v44, %s5348_s6  ;;  %v3681_v44 = vmul.f32 1.442695, %v3667_v23 }
 0xad3   :  { %5290 = vpow2.f32 %v3681_v44 }
 0xad4   :  { %5292 = vpow2.f32 %v3683_v29 }
 0xada   :  { %v6172_v34 = vpop.eup %5288 }
 0xadb   :  { %v3700_v36 = vsel %vm1024_vm2, %v6172_v34, 0.0 }
 0xadd   :  { %v6176_v14 = vpop.eup %5290 }
 0xade   :  { %v6180_v10 = vpop.eup %5292  ;;  %v3703_v39 = vsel %vm1024_vm2, %v6176_v14, 0.0 }
 0xadf   :  { %v3706_v40 = vsel %vm1024_vm2, %v6180_v10, 0.0 }
 0xaf0   :  { %3695 = vadd.xlane.f32.xlu0 %v3694_v30 }
 0xaf2   :  { %3692 = vadd.xlane.f32.xlu1 %v3691_v7 }
 0xaf4   :  { %3698 = vadd.xlane.f32.xlu0 %v3697_v25 }
 0xaf6   :  { %3701 = vadd.xlane.f32.xlu1 %v3700_v36 }
 0xaf8   :  { %3704 = vadd.xlane.f32.xlu0 %v3703_v39 }
 0xafa   :  { %3707 = vadd.xlane.f32.xlu1 %v3706_v40 }
 0xb48   :  { %v3687_v45 = vpop.xlane.xlu0 %3686 }
 0xb49   :  { %5294 = vrcp.f32 %v3687_v45 }
 0xb4a   :  { %v3690_v50 = vpop.xlane.xlu1 %3689 }
 0xb4b   :  { %5296 = vrcp.f32 %v3690_v50 }
 0xb4c   :  { %v2996_v55 = vpop.permute.xlu0 %2995 }
 0xb4d   :  { %v3010_v12 = vshrl.u32 %v2996_v55, 16 }
 0xb4e   :  { %v2994_v58 = vpop.permute.xlu1 %2993 }
 0xb4f   :  { %v6188_v18 = vpack.i.b16 %v2996_v55, %v2994_v58  ;;  %v3009_v49 = vshrl.u32 %v2994_v58, 16 }
 0xb51   :  { %v3011_v60 = vpack.i.b16 %v3010_v12, %v3009_v49  ;;  %v3035_v62 = vrot.slane %v6188_v18, %v5545_v33  ;;  %v3013_v49 = vcombine.high %v6186_v53, %v5542_v28 }
 0xb53   :  { %v3043_v61 = vcombine.low %v3020_v47, %v3035_v62  ;;  %v3044_v4 = vcombine.high %v3020_v47, %v3035_v62  ;;  %v3101_v57 = vrot.slane %v3011_v60, %v5545_v33  ;;  %v5295_v22 = vpop.eup %5294  ;;  %v3094_v50 = vcombine.high %v3011_v60, %v5542_v28 }
 0xb54   :  { %v3717_v44 = vmul.f32 %v5295_v22, %v6149_v8 }
 0xb55   :  { %v3051_v59 = vrot.slane %v3043_v61, %v5549_v41  ;;  %v3058_v16 = vrot.slane %v3044_v4, %v5549_v41  ;;  %v3109_v6 = vcombine.low %v3086_v56, %v3101_v57  ;;  %v3110_v9 = vcombine.high %v3086_v56, %v3101_v57  ;;  %v5297_v37 = vpop.eup %5296 }
 0xb56   :  { %v3718_v36 = vmul.f32 %v5297_v37, %v6153_v11  ;;  %v3725_v55 = vpack.c.bf16 %v3717_v44, %v3717_v44  ;;  %v3028_v11 = vcombine.high %v6188_v18, %v5542_v28  ;;  %v3108_v47 = vrot.slane %v3094_v50, %v5545_v33 }
 0xb57   :  { %v3145_v38 = vcombine.low %v3051_v59, %v3058_v16  ;;  %v4794_v20 = vcombine.high %v3051_v59, %v3058_v16  ;;  %v3117_v46 = vrot.slane %v3109_v6, %v5549_v41  ;;  %v3124_v17 = vrot.slane %v3110_v9, %v5549_v41 }
 0xb58   :  { %v3726_v12 = vpack.c.bf16 %v3718_v36, %v3718_v36  ;;  %v3042_v60 = vrot.slane %v3028_v11, %v5545_v33  ;;  %v3027_v28 = vrot.slane %v3013_v49, %v5545_v33  ;;  %v3125_v53 = vcombine.low %v3093_v24, %v3108_v47 }
 0xb59   :  { %v3152_v15 = vrot.slane %v3145_v38, %v5545_v33  ;;  %v3160_v13 = vrot.slane %v4794_v20, %v5545_v33  ;;  %v3170_v2 = vcombine.low %v3117_v46, %v3124_v17  ;;  %v4795_v63 = vcombine.high %v3117_v46, %v3124_v17 }
 0xb5a   :  { %v3126_v62 = vcombine.high %v3093_v24, %v3108_v47  ;;  %v3059_v61 = vcombine.low %v3027_v28, %v3042_v60  ;;  %v3060_v4 = vcombine.high %v3027_v28, %v3042_v60  ;;  %v3133_v56 = vrot.slane %v3125_v53, %v5549_v41 }
 0xb5b   :  { %v3161_v19 = vcombine.low %v3152_v15, %v3160_v13  ;;  %v3177_v1 = vrot.slane %v3170_v2, %v5545_v33  ;;  %v3185_v51 = vrot.slane %v4795_v63, %v5545_v33 }
 0xb5c   :  { %v3140_v57 = vrot.slane %v3126_v62, %v5549_v41  ;;  %v3067_v59 = vrot.slane %v3059_v61, %v5549_v41  ;;  %v3074_v16 = vrot.slane %v3060_v4, %v5549_v41 }
 0xb5d   :  { %v3168_v21 = vrot.slane %v3161_v19, %v5549_v41  ;;  %v3186_v54 = vcombine.low %v3177_v1, %v3185_v51 }
 0xb5e   :  { %v3220_v6 = vcombine.low %v3133_v56, %v3140_v57  ;;  %v4797_v9 = vcombine.high %v3133_v56, %v3140_v57  ;;  %v3195_v38 = vcombine.low %v3067_v59, %v3074_v16  ;;  %v4796_v20 = vcombine.high %v3067_v59, %v3074_v16 }
 0xb5f   :  { %v3169_v23 = vcombine.high %v3168_v21, %v5352_v27  ;;  %v3193_v3 = vrot.slane %v3186_v54, %v5549_v41  ;;  %v3248_v30 = vshrl.u32 %v3168_v21, 16 }
 0xb60   :  { %v3227_v46 = vrot.slane %v3220_v6, %v5545_v33  ;;  %v3235_v17 = vrot.slane %v4797_v9, %v5545_v33  ;;  %v3202_v15 = vrot.slane %v3195_v38, %v5545_v33  ;;  %v3210_v13 = vrot.slane %v4796_v20, %v5545_v33 }
 0xb61   :  { %v3247_v29 = vpack.i.b16 %v3193_v3, %v3168_v21  ;;  %v3249_v7 = vshrl.u32 %v3193_v3, 16  ;;  %v3194_v25 = vcombine.high %v3193_v3, %v5352_v27  ;;  %v3254_v39 = vshrl.u32 %v3169_v23, 16 }
 0xb62   :  { %v3236_v63 = vcombine.low %v3227_v46, %v3235_v17  ;;  %v3211_v1 = vcombine.low %v3202_v15, %v3210_v13 }
 0xb63   :  { %v3737_v40 = vsel %vm1502_vm4, %v3247_v29, 0  ;;  %v3250_v42 = vpack.i.b16 %v3249_v7, %v3248_v30  ;;  %v3253_v43 = vpack.i.b16 %v3194_v25, %v3169_v23  ;;  %v3255_v45 = vshrl.u32 %v3194_v25, 16 }
 0xb64   :  { %5104 = vmatpush3.bf16.msra.mxu0 %v3737_v40  ;;  %v3243_v21 = vrot.slane %v3236_v63, %v5549_v41  ;;  %v3218_v54 = vrot.slane %v3211_v1, %v5549_v41 }
 0xb65   :  { %v3783_v52 = vsel %vm1502_vm4, %v3250_v42, 0  ;;  %5115 = vmatprep.subr.bf16.mxu0 %v5344_v0  ;;  %v3256_v8 = vpack.i.b16 %v3255_v45, %v3254_v39  ;;  %v3829_v58 = vsel %vm1502_vm4, %v3253_v43, 0 }
 0xb66   :  { %5110 = vmatpush3.bf16.msra.mxu1 %v3783_v52  ;;  %v3261_v23 = vshrl.u32 %v3243_v21, 16  ;;  %v3260_v3 = vshrl.u32 %v3218_v54, 16  ;;  %v3244_v25 = vcombine.high %v3243_v21, %v5352_v27  ;;  %v3259_v42 = vpack.i.b16 %v3243_v21, %v3218_v54 }
 0xb67   :  { %5106 = vmatmul.mubr.msk.bf16.vlgmr.msra.gmra.mrb[52].mxu0 %vm1024_vm2, %v3725_v55  ;;  %5121 = vmatprep.subr.bf16.mxu1 %v5344_v0  ;;  %v3875_v18 = vsel %vm1502_vm4, %v3256_v8, 0  ;;  %v3219_v43 = vcombine.high %v3218_v54, %v5352_v27 }
 0xb68   :  { %5116 = vmatpush3.bf16.msra.mxu0 %v3829_v58  ;;  %5117 = vmatprep.mubr.msk.bf16.mxu0 %vm5345_vm0, %v5344_v0  ;;  %v3262_v7 = vpack.i.b16 %v3261_v23, %v3260_v3 }
 0xb69   :  { %5112 = vmatmul.mubr.msk.bf16.vlgmr.msra.gmra.mrb[60].mxu1 %vm1024_vm2, %v3726_v12  ;;  %5127 = vmatprep.subr.bf16.mxu0 %v5344_v0  ;;  %v3266_v27 = vshrl.u32 %v3219_v43, 16  ;;  %v3265_v12 = vpack.i.b16 %v3244_v25, %v3219_v43 }
 0xb6a   :  { %5122 = vmatpush3.bf16.msra.mxu1 %v3875_v18  ;;  %5123 = vmatprep.mubr.msk.bf16.mxu1 %vm5345_vm0, %v5344_v0  ;;  %v3967_v50 = vsel %vm1502_vm4, %v3262_v7, 0 }
 0xb6b   :  { %5133 = vmatprep.subr.bf16.mxu1 %v5344_v0 }
 0xb7d   :  { %v3696_v2 = vpop.xlane.xlu0 %3695 }
 0xb7e   :  { %5298 = vrcp.f32 %v3696_v2 }
 0xb7f   :  { %v3693_v19 = vpop.xlane.xlu1 %3692 }
 0xb80   :  { %5300 = vrcp.f32 %v3693_v19 }
 0xb81   :  { %v3699_v51 = vpop.xlane.xlu0 %3698 }
 0xb82   :  { %5302 = vrcp.f32 %v3699_v51 }
 0xb83   :  { %v3702_v22 = vpop.xlane.xlu1 %3701 }
 0xb84   :  { %5304 = vrcp.f32 %v3702_v22 }
 0xb85   :  { %v3705_v30 = vpop.xlane.xlu0 %3704 }
 0xb87   :  { %v3708_v37 = vpop.xlane.xlu1 %3707 }
 0xb88   :  { %v5299_v44 = vpop.eup %5298  ;;  %5306 = vrcp.f32 %v3708_v37 }
 0xb89   :  { %v3720_v29 = vmul.f32 %v5299_v44, %v6162_v31  ;;  %5308 = vrcp.f32 %v3705_v30  ;;  %v3267_v31 = vshrl.u32 %v3244_v25, 16 }
 0xb8a   :  { %v5301_v36 = vpop.eup %5300 }
 0xb8b   :  { %v3719_v39 = vmul.f32 %v5301_v36, %v6164_v26  ;;  %v3728_v40 = vpack.c.bf16 %v3720_v29, %v3720_v29  ;;  %v3921_v26 = vsel %vm1502_vm4, %v3259_v42, 0  ;;  %v3268_v11 = vpack.i.b16 %v3267_v31, %v3266_v27 }
 0xb8c   :  { %v5303_v45 = vpop.eup %5302 }
 0xb8d   :  { %5124 = vmatmul.mubr.msk.bf16.vlgmr.msra.gmra.mrb[64].mxu1 %vm1024_vm2, %v3728_v40  ;;  %v3727_v52 = vpack.c.bf16 %v3719_v39, %v3719_v39  ;;  %v3721_v48 = vmul.f32 %v5303_v45, %v6168_v32  ;;  %v4013_v32 = vsel %vm1502_vm4, %v3265_v12, 0 }
 0xb8e   :  { %v5305_v55 = vpop.eup %5304  ;;  %5134 = vmatpush3.bf16.msra.mxu1 %v3967_v50  ;;  %5135 = vmatprep.mubr.msk.bf16.mxu1 %vm5345_vm0, %v5344_v0 }
 0xb8f   :  { %v3722_v8 = vmul.f32 %v5305_v55, %v6172_v34  ;;  %5118 = vmatmul.mubr.msk.bf16.vlgmr.msra.gmra.mrb[56].mxu0 %vm1024_vm2, %v3727_v52  ;;  %5145 = vmatprep.subr.bf16.mxu1 %v5344_v0  ;;  %v4059_v34 = vsel %vm1502_vm4, %v3268_v11, 0  ;;  %v3729_v47 = vpack.c.bf16 %v3721_v48, %v3721_v48 }
 0xb90   :  { %5128 = vmatpush3.bf16.msra.mxu0 %v3921_v26  ;;  %5129 = vmatprep.mubr.msk.bf16.mxu0 %vm5345_vm0, %v5344_v0 }
 0xb91   :  { %5139 = vmatprep.subr.bf16.mxu0 %v5344_v0  ;;  %v3730_v58 = vpack.c.bf16 %v3722_v8, %v3722_v8 }
 0xb92   :  { %v5307_v49 = vpop.eup %5306 }
 0xb93   :  { %v5309_v18 = vpop.eup %5308  ;;  %v3724_v24 = vmul.f32 %v5307_v49, %v6180_v10 }
 0xb94   :  { %v3723_v60 = vmul.f32 %v5309_v18, %v6176_v14 }
 0xb95   :  { %5136 = vmatmul.mubr.msk.bf16.vlgmr.msra.gmra.mrb[68].mxu1 %vm1024_vm2, %v3730_v58  ;;  %v3732_v28 = vpack.c.bf16 %v3724_v24, %v3724_v24 }
 0xb96   :  { %5146 = vmatpush3.bf16.msra.mxu1 %v4059_v34  ;;  %5147 = vmatprep.mubr.msk.bf16.mxu1 %vm5345_vm0, %v5344_v0  ;;  %v3731_v53 = vpack.c.bf16 %v3723_v60, %v3723_v60 }
 0xb97   :  { %5130 = vmatmul.mubr.msk.bf16.vlgmr.msra.gmra.mrb[60].mxu0 %vm1024_vm2, %v3729_v47  ;;  %5159 = vmatprep.subr.bf16.mxu1 %v5344_v0 }
 0xb98   :  { %5140 = vmatpush3.bf16.msra.mxu0 %v4013_v32  ;;  %5141 = vmatprep.mubr.msk.bf16.mxu0 %vm5345_vm0, %v5344_v0 }
 0xb99   :  { %5151 = vmatprep.subr.bf16.mxu0 %v5344_v0 }
 0xb9d   :  { %5148 = vmatmul.mubr.msk.bf16.vlgmr.msra.gmra.mrb[72].mxu1 %vm1024_vm2, %v3732_v28 }
 0xb9e   :  { %5163 = vmatprep.mubr.msk.bf16.mxu1 %vm5345_vm0, %v5344_v0 }
 0xb9f   :  { %5142 = vmatmul.mubr.msk.bf16.vlgmr.msra.gmra.mrb[64].mxu0 %vm1024_vm2, %v3731_v53 }
 0xba0   :  { %5155 = vmatprep.mubr.msk.bf16.mxu0 %vm5345_vm0, %v5344_v0 }
 0xc3a   :  { %v3773_v10 = vpop.f32.mrb[52].mxu0 }
 0xc3b   :  { %v5107_v62 = vpop.f32.mrb[53].mxu0 }
 0xc3c   :  { %v3776_v61 = vpop.f32.mrb[54].mxu0  ;;  %v3819_v4 = vpop.f32.mrb[60].mxu1 }
 0xc3d   :  { %v5108_v56 = vpop.f32.mrb[55].mxu0  ;;  %v5113_v14 = vpop.f32.mrb[61].mxu1 }
 0xc3e   :  { %v3822_v57 = vpop.f32.mrb[62].mxu1 }
 0xc3f   :  { %v5114_v59 = vpop.f32.mrb[63].mxu1 }
 0xc60   :  { %v3911_v16 = vpop.f32.mrb[64].mxu1 }
 0xc61   :  { %v4117_v6 = vcombine.low %v3819_v4, %v3911_v16  ;;  %v4118_v9 = vcombine.high %v3819_v4, %v3911_v16  ;;  %v5125_v38 = vpop.f32.mrb[65].mxu1 }
 0xc62   :  { %v3865_v20 = vpop.f32.mrb[56].mxu0  ;;  %v3914_v46 = vpop.f32.mrb[66].mxu1 }
 0xc63   :  { %v4101_v17 = vcombine.low %v3773_v10, %v3865_v20  ;;  %v4102_v15 = vcombine.high %v3773_v10, %v3865_v20  ;;  %v5119_v13 = vpop.f32.mrb[57].mxu0  ;;  %v5126_v2 = vpop.f32.mrb[67].mxu1  ;;  %v4125_v19 = vrot.slane %v4117_v6, %v5545_v33  ;;  %v4132_v1 = vrot.slane %v4118_v9, %v5545_v33 }
 0xc64   :  { %v3868_v63 = vpop.f32.mrb[58].mxu0 }
 0xc65   :  { %v4109_v51 = vrot.slane %v4101_v17, %v5545_v33  ;;  %v4116_v21 = vrot.slane %v4102_v15, %v5545_v33  ;;  %v5120_v22 = vpop.f32.mrb[59].mxu0 }
 0xc67   :  { %v4133_v54 = vcombine.low %v4109_v51, %v4125_v19  ;;  %v4134_v23 = vcombine.high %v4109_v51, %v4125_v19  ;;  %v4149_v37 = vcombine.low %v4116_v21, %v4132_v1  ;;  %v4150_v3 = vcombine.high %v4116_v21, %v4132_v1 }
 0xc68   :  { %v4003_v44 = vpop.f32.mrb[68].mxu1 }
 0xc69   :  { %v4141_v29 = vrot.slane %v4133_v54, %v5549_v41  ;;  %v4148_v30 = vrot.slane %v4134_v23, %v5549_v41  ;;  %v4157_v7 = vrot.slane %v4149_v37, %v5549_v41  ;;  %v4164_v25 = vrot.slane %v4150_v3, %v5549_v41  ;;  %v5137_v36 = vpop.f32.mrb[69].mxu1 }
 0xc6a   :  { %v3957_v39 = vpop.f32.mrb[60].mxu0  ;;  %v4006_v40 = vpop.f32.mrb[70].mxu1 }
 0xc6b   :  { %v4237_v42 = vcombine.low %v4141_v29, %v4148_v30  ;;  %v4814_v43 = vcombine.high %v4141_v29, %v4148_v30  ;;  %v4253_v45 = vcombine.low %v4157_v7, %v4164_v25  ;;  %v4815_v50 = vcombine.high %v4157_v7, %v4164_v25  ;;  %v5131_v52 = vpop.f32.mrb[61].mxu0  ;;  %v5138_v31 = vpop.f32.mrb[71].mxu1  ;;  %v5233_v29 = vld [vmem:[%s6411_s12] sm:$0xff]  }
 0xc6c   :  { %v3960_v55 = vpop.f32.mrb[62].mxu0  ;;  %5152 = vmatpush3.bf16.msra.mxu0 %v5233_v29 }
 0xc6d   :  { %v4244_v8 = vrot.slane %v4237_v42, %v5545_v33  ;;  %v4252_v26 = vrot.slane %v4814_v43, %v5545_v33  ;;  %v4260_v27 = vrot.slane %v4253_v45, %v5545_v33  ;;  %v4268_v48 = vrot.slane %v4815_v50, %v5545_v33  ;;  %v5132_v11 = vpop.f32.mrb[63].mxu0  ;;  %5153 = vmatprep.subr.bf16.mxu0 %v5344_v0  ;;  %v5234_v55 = vld [vmem:[%s6411_s12 + $0x8] sm:$0xff]  }
 0xc6f   :  { %v4270_v58 = vcombine.high %v4244_v8, %v4252_v26  ;;  %v4286_v12 = vcombine.high %v4260_v27, %v4268_v48  ;;  %v4269_v49 = vcombine.low %v4244_v8, %v4252_v26  ;;  %v4285_v34 = vcombine.low %v4260_v27, %v4268_v48 }
 0xc70   :  { %v4095_v47 = vpop.f32.mrb[72].mxu1  ;;  %5154 = vmatpush3.bf16.msra.mxu0 %v5234_v55 }
 0xc71   :  { %v4185_v18 = vcombine.low %v4003_v44, %v4095_v47  ;;  %v4186_v24 = vcombine.high %v4003_v44, %v4095_v47  ;;  %v5149_v32 = vpop.f32.mrb[73].mxu1  ;;  %v4284_v60 = vrot.slane %v4270_v58, %v5549_v41  ;;  %v4300_v28 = vrot.slane %v4286_v12, %v5549_v41  ;;  %5167 = vmatprep.subr.bf16.mxu0 %v5344_v0 }
 0xc72   :  { %v4049_v53 = vpop.f32.mrb[64].mxu0  ;;  %v4098_v10 = vpop.f32.mrb[74].mxu1  ;;  %v6297_v62 = vrot.slane %v4269_v49, %v5549_v41  ;;  %v6300_v61 = vrot.slane %v4285_v34, %v5549_v41 }
 0xc73   :  { %v4169_v4 = vcombine.low %v3957_v39, %v4049_v53  ;;  %v4170_v56 = vcombine.high %v3957_v39, %v4049_v53  ;;  %v5143_v14 = vpop.f32.mrb[65].mxu0  ;;  %v5150_v57 = vpop.f32.mrb[75].mxu1  ;;  %v4303_v16 = vcombine.low %v4284_v60, %v4300_v28  ;;  %v4304_v38 = vcombine.high %v4284_v60, %v4300_v28 }
 0xc74   :  { %v4052_v59 = vpop.f32.mrb[66].mxu0  ;;  %v4301_v6 = vcombine.low %v6297_v62, %v6300_v61  ;;  %v4302_v9 = vcombine.high %v6297_v62, %v6300_v61  ;;  %v4193_v20 = vrot.slane %v4185_v18, %v5545_v33  ;;  %v4200_v46 = vrot.slane %v4186_v24, %v5545_v33  ;;  %v4818_v14 = vld [vmem:[%s6412_s13] ss:$0 sm:$0xff] }
 0xc75   :  { %v4177_v17 = vrot.slane %v4169_v4, %v5545_v33  ;;  %v4184_v15 = vrot.slane %v4170_v56, %v5545_v33  ;;  %v5144_v13 = vpop.f32.mrb[67].mxu0 }
 0xc77   :  { %v4201_v2 = vcombine.low %v4177_v17, %v4193_v20  ;;  %v4202_v63 = vcombine.high %v4177_v17, %v4193_v20  ;;  %v4217_v19 = vcombine.low %v4184_v15, %v4200_v46  ;;  %v4218_v1 = vcombine.high %v4184_v15, %v4200_v46 }
 0xc79   :  { %v4209_v51 = vrot.slane %v4201_v2, %v5549_v41  ;;  %v4216_v21 = vrot.slane %v4202_v63, %v5549_v41  ;;  %v4225_v22 = vrot.slane %v4217_v19, %v5549_v41  ;;  %v4232_v54 = vrot.slane %v4218_v1, %v5549_v41 }
 0xc7b   :  { %v4305_v23 = vcombine.low %v4209_v51, %v4216_v21  ;;  %v4816_v37 = vcombine.high %v4209_v51, %v4216_v21  ;;  %v4321_v3 = vcombine.low %v4225_v22, %v4232_v54  ;;  %v4817_v44 = vcombine.high %v4225_v22, %v4232_v54 }
 0xc7d   :  { %v4312_v30 = vrot.slane %v4305_v23, %v5545_v33  ;;  %v4320_v7 = vrot.slane %v4816_v37, %v5545_v33  ;;  %v4328_v25 = vrot.slane %v4321_v3, %v5545_v33  ;;  %v4336_v36 = vrot.slane %v4817_v44, %v5545_v33  ;;  %v5236_v23 = vld [vmem:[%s6415_s16 + $0x8] sm:$0xff]   ;;  %v5237_v37 = vld [vmem:[%s6417_s18] sm:$0xff]  }
 0xc7e   :  { %v5238_v3 = vld [vmem:[%s6417_s18 + $0x8] sm:$0xff]  }
 0xc7f   :  { %v4338_v39 = vcombine.high %v4312_v30, %v4320_v7  ;;  %v4354_v40 = vcombine.high %v4328_v25, %v4336_v36  ;;  %v4337_v42 = vcombine.low %v4312_v30, %v4320_v7  ;;  %v4353_v43 = vcombine.low %v4328_v25, %v4336_v36 }
 0xc81   :  { %v4352_v45 = vrot.slane %v4338_v39, %v5549_v41  ;;  %v4368_v50 = vrot.slane %v4354_v40, %v5549_v41  ;;  %v4345_v52 = vrot.slane %v4337_v42, %v5549_v41  ;;  %v4361_v31 = vrot.slane %v4353_v43, %v5549_v41  ;;  %v4822_v42 = vld [vmem:[%s6413_s14] ss:$0 sm:$0xff] }
 0xc83   :  { %v4371_v33 = vcombine.low %v4352_v45, %v4368_v50  ;;  %v4370_v8 = vcombine.high %v4345_v52, %v4361_v31  ;;  %v4369_v26 = vcombine.low %v4345_v52, %v4361_v31  ;;  %v4372_v27 = vcombine.high %v4352_v45, %v4368_v50  ;;  %v4823_v52 = vld [vmem:[%s6414_s15] ss:$0 sm:$0xff] }
 0xc85   :  { %v5213_v48 = vpack.i.bf16 %v4371_v33, %v4303_v16  ;;  %v5208_v11 = vpack.i.bf16 %v4370_v8, %v4302_v9  ;;  %v5218_v58 = vpack.i.bf16 %v4372_v27, %v4304_v38  ;;  %v5240_v27 = vld [vmem:[%s6417_s18 + $0x18] sm:$0xff]  }
 0xc87   :  { %5214 = vrot.lane.b32.xlu1 %v5213_v48, %s5354_s29  ;;  %5209 = vrot.lane.b32.xlu0 %v5208_v11, %s5355_s30  ;;  %v4824_v48 = vld [vmem:[%s6416_s17] ss:$0 sm:$0xff] }
 0xc8b   :  { %5219 = vrot.lane.b32.xlu1 %v5218_v58, %s5356_s0 }
 0xcf9   :  { %v5215_v41 = vpop.permute.xlu1 %5214  ;;  %v5210_v12 = vpop.permute.xlu0 %5209 }
 0xcfa   :  { %v5212_v49 = vunpack.i.h.bf16 %v5210_v12  ;;  %v5211_v34 = vunpack.i.l.bf16 %v5210_v12  ;;  %v5217_v47 = vunpack.i.h.bf16 %v5215_v41  ;;  %v5216_v18 = vunpack.i.l.bf16 %v5215_v41 }
 0xcfc   :  { %v4397_v24 = vsel %vm1024_vm2, %v4301_v6, %v5211_v34  ;;  %v4398_v32 = vsel %vm1024_vm2, %v4369_v26, %v5212_v49  ;;  %v5239_v26 = vld [vmem:[%s6417_s18 + $0x10] sm:$0xff]  }
 0xcfd   :  { %v5220_v60 = vpop.permute.xlu1 %5219  ;;  %v4399_v10 = vsel %vm2166_vm5, %v4397_v24, %v5216_v18  ;;  %v4400_v62 = vsel %vm2166_vm5, %v4398_v32, %v5217_v47 }
 0xcfe   :  { %v5222_v28 = vunpack.i.h.bf16 %v5220_v60  ;;  %v5221_v53 = vunpack.i.l.bf16 %v5220_v60 }
 0xd00   :  { %v4401_v61 = vsel %vm2169_vm6, %v4399_v10, %v5221_v53  ;;  %v4402_v4 = vsel %vm2169_vm6, %v4400_v62, %v5222_v28 }
 0xd01   :  { %v4403_v56 = vpack.c.bf16 %v4402_v4, %v4401_v61 }
 0xd03   :  { %5156 = vmatmul.mubr.msk.bf16.vlgmr.msra.gmra.mrb[68].mxu0 %vm123_vm1, %v4403_v56 }
 0xd04   :  { %5175 = vmatprep.mubr.msk.bf16.mxu0 %vm5345_vm0, %v5344_v0  ;;  %5168 = vmatpush3.bf16.msra.mxu0 %v5237_v37 }
 0xd05   :  { %5169 = vmatprep.subr.bf16.mxu0 %v5344_v0 }
 0xd08   :  { %5170 = vmatpush3.bf16.msra.mxu0 %v5238_v3 }
 0xd09   :  { %5171 = vmatprep.subr.bf16.mxu0 %v5344_v0 }
 0xd0c   :  { %5172 = vmatpush3.bf16.msra.mxu0 %v5239_v26 }
 0xd0d   :  { %5173 = vmatprep.subr.bf16.mxu0 %v5344_v0 }
 0xd10   :  { %5174 = vmatpush3.bf16.msra.mxu0 %v5240_v27 }
 0xdd6   :  { %v4464_v57 = vpop.f32.mrb[68].mxu0 }
 0xdd7   :  { %v4465_v59 = vadd.f32 %v4818_v14, %v4464_v57  ;;  %v5157_v16 = vpop.f32.mrb[69].mxu0 }
 0xdd8   :  { %v4467_v6 = vpop.f32.mrb[70].mxu0 }
 0xdd9   :  { %v4468_v9 = vadd.f32 %v4818_v14, %v4467_v6  ;;  %v5158_v38 = vpop.f32.mrb[71].mxu0  ;;  %v4471_v20 = vadd.f32 %v4465_v59, %v5949_v35 }
 0xddb   :  { %v4473_v46 = vsel %vm123_vm1, %v4471_v20, 0.0  ;;  %v4472_v17 = vadd.f32 %v4468_v9, %v5951_v5  ;;  %v5235_v5 = vld [vmem:[%s6415_s16] sm:$0xff]  }
 0xddc   :  { %4474 = vadd.xlane.f32.xlu0 %v4473_v46  ;;  %5160 = vmatpush3.bf16.msra.mxu1 %v5235_v5  ;;  %v4835_v5 = vld [vmem:[#allocation2] ss:$0 sm:$0xff] }
 0xddd   :  { %v4476_v15 = vsel %vm123_vm1, %v4472_v17, 0.0  ;;  %5161 = vmatprep.subr.bf16.mxu1 %v5344_v0  ;;  %v4828_v0 = vld [vmem:[%s6418_s19] ss:$0 sm:$0xff] }
 0xdde   :  { %4477 = vadd.xlane.f32.xlu1 %v4476_v15 }
 0xde0   :  { %5162 = vmatpush3.bf16.msra.mxu1 %v5236_v23 }
 0xe69   :  { %v4475_v13 = vpop.xlane.xlu0 %4474 }
 0xe6a   :  { %v4479_v2 = vmul.f32 0.03125, %v4475_v13 }
 0xe6b   :  { %v4478_v63 = vpop.xlane.xlu1 %4477 }
 0xe6c   :  { %v4481_v19 = vsub.f32 %v4471_v20, %v4479_v2  ;;  %v4480_v1 = vmul.f32 0.03125, %v4478_v63 }
 0xe6e   :  { %v4482_v51 = vsub.f32 %v4472_v17, %v4480_v1  ;;  %v4483_v21 = vmul.f32 %v4481_v19, %v4481_v19 }
 0xe70   :  { %v4485_v22 = vsel %vm123_vm1, %v4483_v21, 0.0  ;;  %v4484_v54 = vmul.f32 %v4482_v51, %v4482_v51 }
 0xe71   :  { %4486 = vadd.xlane.f32.xlu0 %v4485_v22  ;;  %v4834_v22 = vld [vmem:[%s6419_s20] ss:$0 sm:$0xff] }
 0xe72   :  { %v4488_v35 = vsel %vm123_vm1, %v4484_v54, 0.0 }
 0xe75   :  { %4489 = vadd.xlane.f32.xlu0 %v4488_v35 }
 0xefe   :  { %v4487_v44 = vpop.xlane.xlu0 %4486 }
 0xeff   :  { %v4491_v29 = vmul.f32 0.03125, %v4487_v44 }
 0xf01   :  { %v4493_v30 = vadd.f32 1e-05, %v4491_v29 }
 0xf02   :  { %v4490_v7 = vpop.xlane.xlu0 %4489 }
 0xf03   :  { %5310 = vrsqrt.f32 %v4493_v30  ;;  %v4492_v25 = vmul.f32 0.03125, %v4490_v7 }
 0xf05   :  { %v4494_v36 = vadd.f32 1e-05, %v4492_v25 }
 0xf07   :  { %5312 = vrsqrt.f32 %v4494_v36 }
 0xf0d   :  { %v5311_v39 = vpop.eup %5310 }
 0xf0e   :  { %v4497_v40 = vmul.f32 %v5311_v39, %v4481_v19 }
 0xf10   :  { %v4506_v45 = vmul.f32 %v4822_v42, %v4497_v40 }
 0xf11   :  { %v5313_v43 = vpop.eup %5312 }
 0xf12   :  { %v4498_v50 = vmul.f32 %v5313_v43, %v4482_v51  ;;  %v4515_v55 = vadd.f32 %v4823_v52, %v4506_v45 }
 0xf14   :  { %v4507_v31 = vmul.f32 %v4822_v42, %v4498_v50 }
 0xf16   :  { %v4516_v33 = vadd.f32 %v4823_v52, %v4507_v31 }
 0xf18   :  { %v4517_v8 = vpack.c.bf16 %v4516_v33, %v4515_v55 }
 0xf1a   :  { %5164 = vmatmul.mubr.msk.bf16.vlgmr.msra.gmra.mrb[76].mxu1 %vm123_vm1, %v4517_v8 }
 0xfed   :  { %v4578_v11 = vpop.f32.mrb[76].mxu1 }
 0xfee   :  { %v4579_v58 = vadd.f32 %v4824_v48, %v4578_v11  ;;  %v5165_v41 = vpop.f32.mrb[77].mxu1 }
 0xfef   :  { %v4581_v12 = vpop.f32.mrb[78].mxu1 }
 0xff0   :  { %v4582_v49 = vadd.f32 %v4824_v48, %v4581_v12  ;;  %v5166_v34 = vpop.f32.mrb[79].mxu1  ;;  %v4585_v47 = vmax.f32 %v4579_v58, 0.0 }
 0xff2   :  { %v4586_v18 = vmax.f32 %v4582_v49, 0.0 }
 0xff4   :  { %v4587_v24 = vpack.c.bf16 %v4586_v18, %v4585_v47 }
 0xff6   :  { %5176 = vmatmul.mubr.msk.bf16.vlgmr.msra.gmra.mrb[72].mxu0 %vm4627_vm7, %v4587_v24 }
0x10c9   :  { %v4665_v32 = vpop.f32.mrb[72].mxu0 }
0x10ca   :  { %v4666_v60 = vadd.f32 %v4828_v0, %v4665_v32  ;;  %v5177_v28 = vpop.f32.mrb[73].mxu0 }
0x10cb   :  { %v4668_v53 = vpop.f32.mrb[74].mxu0 }
0x10cc   :  { %v4669_v10 = vadd.f32 %v4828_v0, %v4668_v53  ;;  %v5178_v62 = vpop.f32.mrb[75].mxu0  ;;  %v4672_v61 = vadd.f32 %v4666_v60, %v4515_v55 }
0x10ce   :  { %v4674_v4 = vsel %vm123_vm1, %v4672_v61, 0.0  ;;  %v4673_v56 = vadd.f32 %v4669_v10, %v4516_v33 }
0x10cf   :  { %4675 = vadd.xlane.f32.xlu1 %v4674_v4 }
0x10d0   :  { %v4677_v14 = vsel %vm123_vm1, %v4673_v56, 0.0 }
0x10d1   :  { %4678 = vadd.xlane.f32.xlu0 %v4677_v14 }
0x115c   :  { %v4676_v57 = vpop.xlane.xlu1 %4675 }
0x115d   :  { %v4680_v59 = vmul.f32 0.03125, %v4676_v57 }
0x115e   :  { %v4679_v16 = vpop.xlane.xlu0 %4678 }
0x115f   :  { %v4682_v6 = vsub.f32 %v4672_v61, %v4680_v59  ;;  %v4681_v9 = vmul.f32 0.03125, %v4679_v16 }
0x1161   :  { %v4683_v38 = vsub.f32 %v4673_v56, %v4681_v9  ;;  %v4684_v20 = vmul.f32 %v4682_v6, %v4682_v6 }
0x1163   :  { %v4686_v46 = vsel %vm123_vm1, %v4684_v20, 0.0  ;;  %v4685_v17 = vmul.f32 %v4683_v38, %v4683_v38 }
0x1164   :  { %4687 = vadd.xlane.f32.xlu1 %v4686_v46 }
0x1165   :  { %v4689_v15 = vsel %vm123_vm1, %v4685_v17, 0.0 }
0x1166   :  { %4690 = vadd.xlane.f32.xlu0 %v4689_v15 }
0x11f1   :  { %v4688_v13 = vpop.xlane.xlu1 %4687 }
0x11f2   :  { %v4692_v2 = vmul.f32 0.03125, %v4688_v13 }
0x11f3   :  { %v4691_v63 = vpop.xlane.xlu0 %4690 }
0x11f4   :  { %v4694_v19 = vadd.f32 1e-05, %v4692_v2  ;;  %v4693_v1 = vmul.f32 0.03125, %v4691_v63 }
0x11f6   :  { %5314 = vrsqrt.f32 %v4694_v19  ;;  %v4695_v51 = vadd.f32 1e-05, %v4693_v1 }
0x11f8   :  { %5316 = vrsqrt.f32 %v4695_v51 }
0x1200   :  { %v5315_v21 = vpop.eup %5314 }
0x1201   :  { %v4698_v54 = vmul.f32 %v5315_v21, %v4682_v6 }
0x1202   :  { %v5317_v35 = vpop.eup %5316 }
0x1203   :  { %v4707_v23 = vmul.f32 %v4834_v22, %v4698_v54  ;;  %v4699_v37 = vmul.f32 %v5317_v35, %v4683_v38 }
0x1205   :  { %v4716_v3 = vadd.f32 %v4835_v5, %v4707_v23  ;;  %v4708_v44 = vmul.f32 %v4834_v22, %v4699_v37 }
0x1207   :  { %v4838_v29 = vpack.c.bf16 %v4716_v3, %v4716_v3  ;;  %v4717_v30 = vadd.f32 %v4835_v5, %v4708_v44 }
0x1209   :  { %4727 = vst.msk [vmem:[%s6421_s22] sm:$0xf] %vm4726_vm8, %v4838_v29  ;;  %v4839_v7 = vpack.c.bf16 %v4717_v30, %v4717_v30 }
0x120b   :  { %4728 = vst.msk [vmem:[%s6421_s22 + $0x4] sm:$0xf] %vm4726_vm8, %v4839_v7 }
0x120c   :  { %4733 = vsyncpa [#allocation3], 1 }

// kernel: simple_decoder_llm_forward.3
= control target key start
LH: loop header
LB: loop body
LE: loop exit
PB: predicated region body
PF: predicated region fallthrough
CT: control target
= control target key end

     0   :  { %v5305_v0 = vmov 0.0   ;;  %vm5306_vm0 = vmmov 0   ;;  %vm111_vm1 = vcmask 261120   ;;  %s5307_s25 = smov 104   ;;  %s5308_s26 = smov 120   ;;  %v78_v18 = vlaneseq  ;;  %s6351_s2 = inlined_call_operand.vmem [shape: bf16[32,96], index: 2, kind: input, shape index: {}]   ;;  %s6352_s0 = inlined_call_operand.vmem [shape: bf16[2,8,32], index: 0, kind: input, shape index: {}]   ;;  %s6353_s3 = inlined_call_operand.vmem [shape: f32[1,96], index: 3, kind: input, shape index: {}]   ;;  %s6354_s4 = inlined_call_operand.vmem [shape: bf16[32,32], index: 4, kind: input, shape index: {}]   ;;  %s6355_s5 = inlined_call_operand.vmem [shape: f32[1,32], index: 5, kind: input, shape index: {}]   ;;  %s6356_s10 = inlined_call_operand.vmem [shape: bf16[32,64], index: 10, kind: input, shape index: {}]   ;;  %s6357_s1 = inlined_call_operand.vmem [shape: bf16[2,8,32], index: 1, kind: input, shape index: {}]   ;;  %s6358_s8 = inlined_call_operand.vmem [shape: bf16[32,32], index: 8, kind: input, shape index: {}]   ;;  %s6359_s11 = inlined_call_operand.vmem [shape: f32[1,64], index: 11, kind: input, shape index: {}]   ;;  %s6360_s6 = inlined_call_operand.vmem [shape: f32[1,32], index: 6, kind: input, shape index: {}]   ;;  %s6361_s7 = inlined_call_operand.vmem [shape: f32[1,32], index: 7, kind: input, shape index: {}]   ;;  %s6362_s9 = inlined_call_operand.vmem [shape: f32[1,32], index: 9, kind: input, shape index: {}]   ;;  %s6363_s12 = inlined_call_operand.vmem [shape: bf16[32,32], index: 12, kind: input, shape index: {}]   ;;  %s6364_s13 = inlined_call_operand.vmem [shape: f32[1,32], index: 13, kind: input, shape index: {}]   ;;  %s6365_s16 = inlined_call_operand.vmem [shape: bf16[32,64], index: 16, kind: input, shape index: {}]   ;;  %s6366_s18 = inlined_call_operand.vmem [shape: bf16[64,32], index: 18, kind: input, shape index: {}]   ;;  %s6367_s14 = inlined_call_operand.vmem [shape: f32[1,32], index: 14, kind: input, shape index: {}]   ;;  %s6368_s15 = inlined_call_operand.vmem [shape: f32[1,32], index: 15, kind: input, shape index: {}]   ;;  %s6369_s17 = inlined_call_operand.vmem [shape: f32[1,64], index: 17, kind: input, shape index: {}]   ;;  %s6370_s19 = inlined_call_operand.vmem [shape: f32[1,32], index: 19, kind: input, shape index: {}]   ;;  %s6371_s20 = inlined_call_operand.vmem [shape: f32[1,32], index: 20, kind: input, shape index: {}]   ;;  %s6372_s21 = inlined_call_operand.vmem [shape: f32[1,32], index: 21, kind: input, shape index: {}]   ;;  %s6373_s22 = inlined_call_operand.vmem [shape: bf16[2,8,32], index: 22, kind: output, shape index: {}]  }
   0x1   :  { %6378 = sst [smem:[#allocation2_spill]] %s6351_s2  ;;  %4914 = vmatprep.subr.bf16.mxu1 %v5305_v0  ;;  %4918 = vmatprep.mubr.msk.bf16.mxu1 %vm5306_vm0, %v5305_v0  ;;  %s5310_s27 = smov 112   ;;  %v5311_v19 = vmov 1983009808   ;;  %v5312_v21 = vmov 1934713408  }
   0x2   :  { %6379 = sst [smem:[#allocation3_spill]] %s6352_s0  ;;  %s6385_s29 = sld [smem:[#allocation2_spill]]  ;;  %4928 = vmatprep.subr.bf16.mxu0 %v5305_v0  ;;  %4930 = vmatprep.mubr.msk.bf16.mxu0 %vm5306_vm0, %v5305_v0  ;;  %v191_v20 = vunpack.c.l.s4 %v5311_v19  ;;  %v222_v22 = vunpack.c.l.s4 %v5312_v21  ;;  %v5487_v24 = vshrl.u32 %v78_v18, 7  ;;  %v5313_v27 = vmov 0  }
   0x3   :  { %6380 = sst [smem:[#allocation4_spill]] %s6353_s3  ;;  %s6386_s0 = sld [smem:[#allocation3_spill]]  ;;  %v5491_v28 = vpack.i.b16 %v5313_v27, %v5313_v27  ;;  %vm1012_vm2 = vcmask 64512   ;;  %vm1490_vm4 = vcmask 1043456   ;;  %vm2154_vm5 = vcmask 130048  }
   0x4   :  { %6381 = sst [smem:[#allocation5_spill]] %s6354_s4  ;;  %s5309_s3 = smov 96   ;;  %v192_v25 = vunpack.c.0.s8 %v191_v20  ;;  %v223_v32 = vunpack.c.0.s8 %v222_v22  ;;  %vm2157_vm6 = vcmask 195584   ;;  %vm4615_vm7 = vcmask 523264  }
   0x5   :  { %6382 = sst [smem:[#allocation6_spill]] %s6355_s5  ;;  %s5314_s4 = smov 64   ;;  %vm4714_vm8 = vcmask 257024  }
   0x6   :  { %6383 = sst [smem:[#allocation7_spill]] %s6356_s10  ;;  %v5494_v33 = vsub.s32 %v192_v25, %v5487_v24  ;;  %v5498_v41 = vsub.s32 %v223_v32, %v5487_v24  ;;  %s6390_s30 = sld [smem:[#allocation5_spill]] }
   0x7   :  { %6384 = sst [smem:[#allocation8_spill]] %s6357_s1  ;;  %s6387_s1 = sld [smem:[#allocation4_spill]] }
   0x8   :  { %v5209_v1 = vld [vmem:[%s6385_s29] sm:$0xff]   ;;  %v5210_v2 = vld [vmem:[%s6385_s29 + $0x8] sm:$0xff]   ;;  %s5315_s23 = smov 16   ;;  %s5316_s10 = smov 8  }
   0x9   :  { %4915 = vmatpush3.bf16.msra.mxu1 %v5209_v1  ;;  %v72_v3 = vld [vmem:[%s6386_s0] sm:$0xff]   ;;  %s5317_s24 = smov 24   ;;  %s6391_s28 = sld [smem:[#allocation6_spill]] }
   0xa   :  { %4916 = vmatprep.subr.bf16.mxu1 %v5305_v0 }
   0xd   :  { %4917 = vmatpush3.bf16.msra.mxu1 %v5210_v2  ;;  %v4721_v4 = vld [vmem:[%s6387_s1] ss:$0 sm:$0xff]  ;;  %s6392_s1 = sld [smem:[#allocation7_spill]] }
   0xe   :  { %4922 = vmatprep.subr.bf16.mxu1 %v5305_v0 }
  0x10   :  { %4919 = vmatmul.mubr.msk.bf16.vlgmr.msra.gmra.mrb[0].mxu1 %vm111_vm1, %v72_v3 }
  0x11   :  { %4924 = vmatprep.mubr.msk.bf16.mxu1 %vm5306_vm0, %v5305_v0 }
  0xe3   :  { %v149_v5 = vpop.f32.mrb[0].mxu1 }
  0xe4   :  { %v150_v6 = vadd.f32 %v4721_v4, %v149_v5  ;;  %v4920_v7 = vpop.f32.mrb[1].mxu1 }
  0xe5   :  { %v152_v8 = vpop.f32.mrb[2].mxu1 }
  0xe6   :  { %v153_v9 = vadd.f32 %v4721_v4, %v152_v8  ;;  %v4921_v10 = vpop.f32.mrb[3].mxu1  ;;  %v157_v11 = vmul.f32 0.35355338, %v150_v6 }
  0xe8   :  { %v5456_v12 = vpack.c.bf16 %v153_v9, %v150_v6  ;;  %v158_v13 = vmul.f32 0.35355338, %v153_v9 }
  0xea   :  { %v5458_v14 = vpack.c.bf16 %v158_v13, %v157_v11  ;;  %450 = vrot.lane.b32.xlu1 %v5456_v12, %s5307_s25  ;;  %446 = vrot.lane.b32.xlu0 %v5456_v12, %s5308_s26 }
  0xec   :  { %v171_v11 = vshrl.u32 %v5458_v14, 16 }
  0xee   :  { %452 = vrot.lane.b32.xlu1 %v5456_v12, %s5309_s3  ;;  %448 = vrot.lane.b32.xlu0 %v5456_v12, %s5310_s27 }
 0x15c   :  { %v5468_v15 = vpop.permute.xlu0 %446  ;;  %v5472_v16 = vpop.permute.xlu1 %450 }
 0x15d   :  { %454 = vrot.lane.b32.xlu0 %v5468_v15, %s5309_s3 }
 0x160   :  { %v5474_v17 = vpop.permute.xlu0 %448  ;;  %v453_v23 = vpop.permute.xlu1 %452 }
 0x161   :  { %458 = vrot.lane.b32.xlu0 %v5472_v16, %s5309_s3  ;;  %456 = vrot.lane.b32.xlu1 %v5474_v17, %s5309_s3  ;;  %v464_v31 = vshrl.u32 %v453_v23, 16 }
 0x165   :  { %163 = vrot.lane.b32.xlu0 %v5458_v14, %s5310_s27  ;;  %161 = vrot.lane.b32.xlu1 %v5458_v14, %s5308_s26 }
 0x169   :  { %165 = vrot.lane.b32.xlu1 %v5458_v14, %s5307_s25 }
 0x1cf   :  { %v455_v26 = vpop.permute.xlu0 %454 }
 0x1d0   :  { %v462_v29 = vpack.i.b16 %v455_v26, %v453_v23  ;;  %v465_v30 = vshrl.u32 %v455_v26, 16 }
 0x1d2   :  { %v466_v36 = vpack.i.b16 %v465_v30, %v464_v31  ;;  %v476_v37 = vcombine.high %v462_v29, %v5491_v28  ;;  %v483_v42 = vrot.slane %v462_v29, %v5494_v33 }
 0x1d3   :  { %v457_v34 = vpop.permute.xlu1 %456  ;;  %v459_v35 = vpop.permute.xlu0 %458 }
 0x1d4   :  { %v472_v38 = vshrl.u32 %v457_v34, 16  ;;  %v470_v39 = vpack.i.b16 %v459_v35, %v457_v34  ;;  %v473_v40 = vshrl.u32 %v459_v35, 16  ;;  %v490_v47 = vrot.slane %v476_v37, %v5494_v33 }
 0x1d5   :  { %v542_v48 = vcombine.high %v466_v36, %v5491_v28  ;;  %v549_v53 = vrot.slane %v466_v36, %v5494_v33 }
 0x1d6   :  { %v474_v43 = vpack.i.b16 %v473_v40, %v472_v38  ;;  %v491_v44 = vcombine.high %v470_v39, %v5491_v28  ;;  %v498_v45 = vrot.slane %v470_v39, %v5494_v33 }
 0x1d7   :  { %v162_v46 = vpop.permute.xlu1 %161  ;;  %v556_v63 = vrot.slane %v542_v48, %v5494_v33  ;;  %v164_v8 = vpop.permute.xlu0 %163 }
 0x1d8   :  { %v505_v49 = vrot.slane %v491_v44, %v5494_v33  ;;  %v506_v50 = vcombine.low %v483_v42, %v498_v45  ;;  %v507_v51 = vcombine.high %v483_v42, %v498_v45  ;;  %v557_v52 = vcombine.high %v474_v43, %v5491_v28 }
 0x1d9   :  { %v564_v54 = vrot.slane %v474_v43, %v5494_v33  ;;  %v169_v55 = vpack.i.b16 %v162_v46, %v5458_v14  ;;  %v172_v3 = vshrl.u32 %v162_v46, 16  ;;  %v179_v26 = vshrl.u32 %v164_v8, 16 }
 0x1da   :  { %v514_v56 = vrot.slane %v506_v50, %v5498_v41  ;;  %v521_v57 = vrot.slane %v507_v51, %v5498_v41  ;;  %v522_v58 = vcombine.low %v490_v47, %v505_v49  ;;  %v523_v59 = vcombine.high %v490_v47, %v505_v49 }
 0x1db   :  { %v571_v60 = vrot.slane %v557_v52, %v5494_v33  ;;  %v572_v61 = vcombine.low %v549_v53, %v564_v54  ;;  %v573_v62 = vcombine.high %v549_v53, %v564_v54  ;;  %v189_v13 = vcombine.high %v169_v55, %v5491_v28  ;;  %v166_v23 = vpop.permute.xlu1 %165 }
 0x1dc   :  { %v608_v1 = vcombine.low %v514_v56, %v521_v57  ;;  %v4730_v2 = vcombine.high %v514_v56, %v521_v57  ;;  %v530_v4 = vrot.slane %v522_v58, %v5498_v41  ;;  %v537_v5 = vrot.slane %v523_v59, %v5498_v41 }
 0x1dd   :  { %v580_v6 = vrot.slane %v572_v61, %v5498_v41  ;;  %v587_v7 = vrot.slane %v573_v62, %v5498_v41  ;;  %v588_v19 = vcombine.low %v556_v63, %v571_v60  ;;  %v589_v20 = vcombine.high %v556_v63, %v571_v60 }
 0x1de   :  { %v615_v9 = vrot.slane %v608_v1, %v5494_v33  ;;  %v623_v10 = vrot.slane %v4730_v2, %v5494_v33  ;;  %v173_v25 = vpack.i.b16 %v172_v3, %v171_v11  ;;  %v658_v31 = vcombine.low %v530_v4, %v537_v5 }
 0x1df   :  { %v633_v21 = vcombine.low %v580_v6, %v587_v7  ;;  %v4731_v22 = vcombine.high %v580_v6, %v587_v7  ;;  %v4732_v32 = vcombine.high %v530_v4, %v537_v5  ;;  %v196_v34 = vrot.slane %v169_v55, %v5494_v33 }
 0x1e0   :  { %v177_v35 = vpack.i.b16 %v166_v23, %v164_v8  ;;  %v180_v14 = vshrl.u32 %v166_v23, 16  ;;  %v624_v36 = vcombine.low %v615_v9, %v623_v10  ;;  %v596_v37 = vrot.slane %v588_v19, %v5498_v41 }
 0x1e1   :  { %v640_v29 = vrot.slane %v633_v21, %v5494_v33  ;;  %v648_v30 = vrot.slane %v4731_v22, %v5494_v33  ;;  %v603_v38 = vrot.slane %v589_v20, %v5498_v41  ;;  %v203_v39 = vrot.slane %v189_v13, %v5494_v33 }
 0x1e2   :  { %v255_v42 = vcombine.high %v173_v25, %v5491_v28  ;;  %v181_v43 = vpack.i.b16 %v180_v14, %v179_v26  ;;  %v204_v44 = vcombine.high %v177_v35, %v5491_v28  ;;  %v211_v45 = vrot.slane %v177_v35, %v5494_v33 }
 0x1e3   :  { %v649_v40 = vcombine.low %v640_v29, %v648_v30  ;;  %v5532_v46 = vrot.slane %v658_v31, %v5494_v33  ;;  %v5535_v47 = vrot.slane %v4732_v32, %v5494_v33  ;;  %v631_v48 = vrot.slane %v624_v36, %v5498_v41 }
 0x1e4   :  { %v218_v50 = vrot.slane %v204_v44, %v5494_v33  ;;  %v219_v51 = vcombine.low %v196_v34, %v211_v45  ;;  %v220_v52 = vcombine.high %v196_v34, %v211_v45  ;;  %v270_v53 = vcombine.high %v181_v43, %v5491_v28 }
 0x1e5   :  { %v656_v49 = vrot.slane %v649_v40, %v5498_v41  ;;  %v683_v54 = vcombine.low %v596_v37, %v603_v38  ;;  %v262_v55 = vrot.slane %v173_v25, %v5494_v33  ;;  %v277_v56 = vrot.slane %v181_v43, %v5494_v33 }
 0x1e6   :  { %v4733_v58 = vcombine.high %v596_v37, %v603_v38  ;;  %v269_v59 = vrot.slane %v255_v42, %v5494_v33  ;;  %v227_v60 = vrot.slane %v219_v51, %v5498_v41  ;;  %v234_v61 = vrot.slane %v220_v52, %v5498_v41 }
 0x1e7   :  { %v710_v57 = vpack.i.b16 %v656_v49, %v631_v48  ;;  %v284_v62 = vrot.slane %v270_v53, %v5494_v33  ;;  %v285_v63 = vcombine.low %v262_v55, %v277_v56  ;;  %v286_v1 = vcombine.high %v262_v55, %v277_v56 }
 0x1e8   :  { %v235_v3 = vcombine.low %v203_v39, %v218_v50  ;;  %v321_v4 = vcombine.low %v227_v60, %v234_v61  ;;  %v4726_v5 = vcombine.high %v227_v60, %v234_v61  ;;  %v712_v6 = vshrl.u32 %v656_v49, 16 }
 0x1e9   :  { %v1017_v2 = vsel %vm1012_vm2, %v710_v57, 0  ;;  %v293_v7 = vrot.slane %v285_v63, %v5498_v41  ;;  %v300_v8 = vrot.slane %v286_v1, %v5498_v41  ;;  %v301_v9 = vcombine.low %v269_v59, %v284_v62 }
 0x1ea   :  { %4923 = vmatpush3.bf16.xpose.msra.mxu1 %v1017_v2  ;;  %v302_v10 = vcombine.high %v269_v59, %v284_v62  ;;  %v236_v11 = vcombine.high %v203_v39, %v218_v50  ;;  %v328_v13 = vrot.slane %v321_v4, %v5494_v33  ;;  %v336_v19 = vrot.slane %v4726_v5, %v5494_v33 }
 0x1eb   :  { %4934 = vmatprep.subr.bf16.mxu1 %v5305_v0  ;;  %v711_v20 = vshrl.u32 %v631_v48, 16  ;;  %v346_v21 = vcombine.low %v293_v7, %v300_v8  ;;  %v4727_v22 = vcombine.high %v293_v7, %v300_v8  ;;  %v690_v23 = vrot.slane %v683_v54, %v5494_v33 }
 0x1ec   :  { %v698_v25 = vrot.slane %v4733_v58, %v5494_v33  ;;  %v309_v26 = vrot.slane %v301_v9, %v5498_v41  ;;  %v316_v29 = vrot.slane %v302_v10, %v5498_v41  ;;  %v337_v30 = vcombine.low %v328_v13, %v336_v19 }
 0x1ed   :  { %v713_v31 = vpack.i.b16 %v712_v6, %v711_v20  ;;  %v243_v32 = vrot.slane %v235_v3, %v5498_v41  ;;  %v353_v34 = vrot.slane %v346_v21, %v5494_v33  ;;  %v361_v35 = vrot.slane %v4727_v22, %v5494_v33 }
 0x1ee   :  { %v250_v14 = vrot.slane %v236_v11, %v5498_v41  ;;  %v344_v36 = vrot.slane %v337_v30, %v5498_v41  ;;  %v632_v38 = vcombine.high %v631_v48, %v5313_v27  ;;  %v657_v40 = vcombine.high %v656_v49, %v5313_v27 }
 0x1ef   :  { %v1063_v37 = vsel %vm1012_vm2, %v713_v31, 0  ;;  %v362_v39 = vcombine.low %v353_v34, %v361_v35  ;;  %v699_v42 = vcombine.low %v690_v23, %v698_v25  ;;  %v396_v43 = vcombine.low %v309_v26, %v316_v29 }
 0x1f0   :  { %4929 = vmatpush3.bf16.xpose.msra.mxu0 %v1063_v37  ;;  %v4729_v44 = vcombine.high %v309_v26, %v316_v29  ;;  %v674_v45 = vcombine.low %v5532_v46, %v5535_v47  ;;  %v716_v51 = vpack.i.b16 %v657_v40, %v632_v38  ;;  %v717_v52 = vshrl.u32 %v632_v38, 16 }
 0x1f1   :  { %4940 = vmatprep.subr.bf16.mxu0 %v5305_v0  ;;  %v369_v50 = vrot.slane %v362_v39, %v5498_v41  ;;  %v718_v53 = vshrl.u32 %v657_v40, 16  ;;  %v371_v54 = vcombine.low %v243_v32, %v250_v14  ;;  %v4728_v55 = vcombine.high %v243_v32, %v250_v14 }
 0x1f2   :  { %v424_v48 = vshrl.u32 %v344_v36, 16  ;;  %v706_v49 = vrot.slane %v699_v42, %v5498_v41  ;;  %v403_v59 = vrot.slane %v396_v43, %v5494_v33  ;;  %v681_v60 = vrot.slane %v674_v45, %v5498_v41 }
 0x1f3   :  { %v423_v56 = vpack.i.b16 %v369_v50, %v344_v36  ;;  %v425_v57 = vshrl.u32 %v369_v50, 16  ;;  %v719_v58 = vpack.i.b16 %v718_v53, %v717_v52  ;;  %v411_v61 = vrot.slane %v4729_v44, %v5494_v33 }
 0x1f4   :  { %v1109_v46 = vsel %vm1012_vm2, %v716_v51, 0  ;;  %v370_v62 = vcombine.high %v369_v50, %v5313_v27  ;;  %v378_v63 = vrot.slane %v371_v54, %v5494_v33  ;;  %v386_v1 = vrot.slane %v4728_v55, %v5494_v33 }
 0x1f5   :  { %4925 = vmatmul.mubr.msk.bf16.vlgmr.msra.gmra.mrb[4].mxu1 %vm1012_vm2, %v423_v56  ;;  %v426_v47 = vpack.i.b16 %v425_v57, %v424_v48  ;;  %v1155_v2 = vsel %vm1012_vm2, %v719_v58, 0  ;;  %v345_v3 = vcombine.high %v344_v36, %v5313_v27  ;;  %v724_v4 = vshrl.u32 %v706_v49, 16 }
 0x1f6   :  { %4935 = vmatpush3.bf16.xpose.msra.mxu1 %v1109_v46  ;;  %4936 = vmatprep.mubr.msk.bf16.mxu1 %vm5306_vm0, %v5305_v0  ;;  %v412_v5 = vcombine.low %v403_v59, %v411_v61  ;;  %v722_v6 = vpack.i.b16 %v706_v49, %v681_v60  ;;  %v431_v7 = vshrl.u32 %v370_v62, 16  ;;  %v723_v8 = vshrl.u32 %v681_v60, 16 }
 0x1f7   :  { %4931 = vmatmul.mubr.msk.bf16.vlgmr.msra.gmra.mrb[0].mxu0 %vm1012_vm2, %v426_v47  ;;  %4946 = vmatprep.subr.bf16.mxu1 %v5305_v0  ;;  %v387_v9 = vcombine.low %v378_v63, %v386_v1  ;;  %v429_v10 = vpack.i.b16 %v370_v62, %v345_v3  ;;  %v430_v11 = vshrl.u32 %v345_v3, 16  ;;  %v707_v19 = vcombine.high %v706_v49, %v5313_v27 }
 0x1f8   :  { %4941 = vmatpush3.bf16.xpose.msra.mxu0 %v1155_v2  ;;  %4942 = vmatprep.mubr.msk.bf16.mxu0 %vm5306_vm0, %v5305_v0  ;;  %v725_v13 = vpack.i.b16 %v724_v4, %v723_v8  ;;  %v1201_v20 = vsel %vm1012_vm2, %v722_v6, 0  ;;  %v419_v22 = vrot.slane %v412_v5, %v5498_v41  ;;  %v682_v23 = vcombine.high %v681_v60, %v5313_v27 }
 0x1f9   :  { %4952 = vmatprep.subr.bf16.mxu0 %v5305_v0  ;;  %v432_v21 = vpack.i.b16 %v431_v7, %v430_v11  ;;  %v394_v26 = vrot.slane %v387_v9, %v5498_v41  ;;  %v730_v29 = vshrl.u32 %v707_v19, 16  ;;  %v81_v50 = vand.u32 127, %v78_v18 }
 0x1fa   :  { %v1247_v25 = vsel %vm1012_vm2, %v725_v13, 0  ;;  %v728_v30 = vpack.i.b16 %v707_v19, %v682_v23  ;;  %v437_v31 = vshrl.u32 %v419_v22, 16  ;;  %v729_v32 = vshrl.u32 %v682_v23, 16 }
 0x1fb   :  { %v435_v34 = vpack.i.b16 %v419_v22, %v394_v26  ;;  %v436_v35 = vshrl.u32 %v394_v26, 16  ;;  %v420_v38 = vcombine.high %v419_v22, %v5313_v27  ;;  %v395_v40 = vcombine.high %v394_v26, %v5313_v27 }
 0x1fc   :  { %v731_v14 = vpack.i.b16 %v730_v29, %v729_v32  ;;  %v1293_v36 = vsel %vm1012_vm2, %v728_v30, 0  ;;  %vm5621_vm3 = vcmp.le.s32.totalorder %v81_v50, %v5487_v24 }
 0x1fd   :  { %4937 = vmatmul.mubr.msk.bf16.vlgmr.msra.gmra.mrb[8].mxu1 %vm1012_vm2, %v429_v10  ;;  %v438_v37 = vpack.i.b16 %v437_v31, %v436_v35  ;;  %v443_v42 = vshrl.u32 %v420_v38, 16  ;;  %v441_v43 = vpack.i.b16 %v420_v38, %v395_v40  ;;  %v442_v44 = vshrl.u32 %v395_v40, 16 }
 0x1fe   :  { %4947 = vmatpush3.bf16.xpose.msra.mxu1 %v1201_v20  ;;  %4948 = vmatprep.mubr.msk.bf16.mxu1 %vm5306_vm0, %v5305_v0  ;;  %v1339_v39 = vsel %vm1012_vm2, %v731_v14, 0 }
 0x1ff   :  { %4943 = vmatmul.mubr.msk.bf16.vlgmr.msra.gmra.mrb[4].mxu0 %vm1012_vm2, %v432_v21  ;;  %4958 = vmatprep.subr.bf16.mxu1 %v5305_v0  ;;  %v444_v45 = vpack.i.b16 %v443_v42, %v442_v44 }
 0x200   :  { %4953 = vmatpush3.bf16.xpose.msra.mxu0 %v1247_v25  ;;  %4954 = vmatprep.mubr.msk.bf16.mxu0 %vm5306_vm0, %v5305_v0 }
 0x201   :  { %4964 = vmatprep.subr.bf16.mxu0 %v5305_v0 }
 0x205   :  { %4949 = vmatmul.mubr.msk.bf16.vlgmr.msra.gmra.mrb[12].mxu1 %vm1012_vm2, %v435_v34 }
 0x206   :  { %4959 = vmatpush3.bf16.xpose.msra.mxu1 %v1293_v36  ;;  %4960 = vmatprep.mubr.msk.bf16.mxu1 %vm5306_vm0, %v5305_v0 }
 0x207   :  { %4955 = vmatmul.mubr.msk.bf16.vlgmr.msra.gmra.mrb[8].mxu0 %vm1012_vm2, %v438_v37  ;;  %4970 = vmatprep.subr.bf16.mxu1 %v5305_v0 }
 0x208   :  { %4965 = vmatpush3.bf16.xpose.msra.mxu0 %v1339_v39  ;;  %4966 = vmatprep.mubr.msk.bf16.mxu0 %vm5306_vm0, %v5305_v0 }
 0x209   :  { %4976 = vmatprep.subr.bf16.mxu0 %v5305_v0 }
 0x20d   :  { %4961 = vmatmul.mubr.msk.bf16.vlgmr.msra.gmra.mrb[16].mxu1 %vm1012_vm2, %v441_v43 }
 0x20e   :  { %4972 = vmatprep.mubr.msk.bf16.mxu1 %vm5306_vm0, %v5305_v0 }
 0x20f   :  { %4967 = vmatmul.mubr.msk.bf16.vlgmr.msra.gmra.mrb[12].mxu0 %vm1012_vm2, %v444_v45 }
 0x210   :  { %4978 = vmatprep.mubr.msk.bf16.mxu0 %vm5306_vm0, %v5305_v0 }
 0x2c8   :  { %v1053_v52 = vpop.f32.mrb[4].mxu1 }
 0x2c9   :  { %v1383_v53 = vsel %vm5621_vm3, %v1053_v52, -1e+30  ;;  %v4926_v54 = vpop.f32.mrb[5].mxu1 }
 0x2ca   :  { %v1056_v55 = vpop.f32.mrb[6].mxu1  ;;  %v1099_v48 = vpop.f32.mrb[0].mxu0  ;;  %v1391_v56 = vsel %vm1012_vm2, %v1383_v53, -inf }
 0x2cb   :  { %v1384_v57 = vsel %vm5621_vm3, %v1099_v48, -1e+30  ;;  %v4932_v58 = vpop.f32.mrb[1].mxu0  ;;  %1392 = vmax.xlane.f32.xlu0 %v1391_v56  ;;  %v4927_v18 = vpop.f32.mrb[7].mxu1 }
 0x2cc   :  { %v1102_v49 = vpop.f32.mrb[2].mxu0  ;;  %v1394_v24 = vsel %vm1012_vm2, %v1384_v57, -inf }
 0x2cd   :  { %1395 = vmax.xlane.f32.xlu1 %v1394_v24  ;;  %v4933_v59 = vpop.f32.mrb[3].mxu0 }
 0x2d0   :  { %v1145_v60 = vpop.f32.mrb[8].mxu1 }
 0x2d1   :  { %v5633_v61 = vsel %vm5621_vm3, %v1145_v60, -1e+30  ;;  %v4938_v46 = vpop.f32.mrb[9].mxu1 }
 0x2d2   :  { %v1148_v47 = vpop.f32.mrb[10].mxu1  ;;  %v1191_v62 = vpop.f32.mrb[4].mxu0  ;;  %v1397_v63 = vsel %vm1012_vm2, %v5633_v61, -inf }
 0x2d3   :  { %v5639_v1 = vsel %vm5621_vm3, %v1191_v62, -1e+30  ;;  %v4944_v2 = vpop.f32.mrb[5].mxu0  ;;  %1398 = vmax.xlane.f32.xlu0 %v1397_v63  ;;  %v4939_v3 = vpop.f32.mrb[11].mxu1 }
 0x2d4   :  { %v1194_v4 = vpop.f32.mrb[6].mxu0  ;;  %v1400_v6 = vsel %vm1012_vm2, %v5639_v1, -inf }
 0x2d5   :  { %v4945_v5 = vpop.f32.mrb[7].mxu0 }
 0x2d7   :  { %1401 = vmax.xlane.f32.xlu0 %v1400_v6 }
 0x2d8   :  { %v1237_v7 = vpop.f32.mrb[12].mxu1 }
 0x2d9   :  { %v1387_v8 = vsel %vm5621_vm3, %v1237_v7, -1e+30  ;;  %v4950_v9 = vpop.f32.mrb[13].mxu1 }
 0x2da   :  { %v1240_v10 = vpop.f32.mrb[14].mxu1  ;;  %v1283_v11 = vpop.f32.mrb[8].mxu0  ;;  %v1403_v13 = vsel %vm1012_vm2, %v1387_v8, -inf }
 0x2db   :  { %v1388_v19 = vsel %vm5621_vm3, %v1283_v11, -1e+30  ;;  %v4956_v20 = vpop.f32.mrb[9].mxu0  ;;  %1404 = vmax.xlane.f32.xlu1 %v1403_v13  ;;  %v4951_v21 = vpop.f32.mrb[15].mxu1 }
 0x2dc   :  { %v1286_v22 = vpop.f32.mrb[10].mxu0  ;;  %v1406_v23 = vsel %vm1012_vm2, %v1388_v19, -inf }
 0x2dd   :  { %v4957_v25 = vpop.f32.mrb[11].mxu0  ;;  %1407 = vmax.xlane.f32.xlu0 %v1406_v23 }
 0x2e0   :  { %v1329_v26 = vpop.f32.mrb[16].mxu1 }
 0x2e1   :  { %v1389_v29 = vsel %vm5621_vm3, %v1329_v26, -1e+30  ;;  %v4962_v30 = vpop.f32.mrb[17].mxu1 }
 0x2e2   :  { %v1332_v31 = vpop.f32.mrb[18].mxu1  ;;  %v1375_v32 = vpop.f32.mrb[12].mxu0  ;;  %v1409_v34 = vsel %vm1012_vm2, %v1389_v29, -inf }
 0x2e3   :  { %v1390_v35 = vsel %vm5621_vm3, %v1375_v32, -1e+30  ;;  %v4968_v14 = vpop.f32.mrb[13].mxu0  ;;  %1410 = vmax.xlane.f32.xlu1 %v1409_v34  ;;  %v4963_v36 = vpop.f32.mrb[19].mxu1 }
 0x2e4   :  { %v1378_v37 = vpop.f32.mrb[14].mxu0  ;;  %v1412_v38 = vsel %vm1012_vm2, %v1390_v35, -inf }
 0x2e5   :  { %v4969_v39 = vpop.f32.mrb[15].mxu0  ;;  %1413 = vmax.xlane.f32.xlu0 %v1412_v38 }
 0x2f4   :  { %732 = vrot.lane.b32.xlu1 %v5456_v12, %s5314_s4 }
 0x358   :  { %v1393_v40 = vpop.xlane.xlu0 %1392 }
 0x359   :  { %v1415_v42 = vsub.f32 %v1383_v53, %v1393_v40 }
 0x35a   :  { %v1396_v43 = vpop.xlane.xlu1 %1395 }
 0x35b   :  { %v1423_v44 = vmul.f32 1.442695, %v1415_v42  ;;  %v1416_v45 = vsub.f32 %v1384_v57, %v1396_v43 }
 0x35d   :  { %5228 = vpow2.f32 %v1423_v44  ;;  %v1425_v50 = vmul.f32 1.442695, %v1416_v45 }
 0x35f   :  { %5230 = vpow2.f32 %v1425_v50 }
 0x360   :  { %v1399_v12 = vpop.xlane.xlu0 %1398 }
 0x361   :  { %v1417_v56 = vsub.f32 %v5633_v61, %v1399_v12 }
 0x363   :  { %v1427_v18 = vmul.f32 1.442695, %v1417_v56 }
 0x364   :  { %v1402_v53 = vpop.xlane.xlu0 %1401 }
 0x365   :  { %v1418_v57 = vsub.f32 %v5639_v1, %v1402_v53  ;;  %5232 = vpow2.f32 %v1427_v18 }
 0x367   :  { %v5656_v51 = vpop.eup %5228  ;;  %v1429_v59 = vmul.f32 1.442695, %v1418_v57 }
 0x368   :  { %v1439_v52 = vsel %vm1012_vm2, %v5656_v51, 0.0  ;;  %v1405_v48 = vpop.xlane.xlu1 %1404 }
 0x369   :  { %v5660_v54 = vpop.eup %5230  ;;  %1440 = vadd.xlane.f32.xlu1 %v1439_v52  ;;  %v1419_v49 = vsub.f32 %v1387_v8, %v1405_v48  ;;  %5234 = vpow2.f32 %v1429_v59 }
 0x36a   :  { %v1442_v55 = vsel %vm1012_vm2, %v5660_v54, 0.0  ;;  %v1408_v24 = vpop.xlane.xlu0 %1407 }
 0x36b   :  { %1443 = vadd.xlane.f32.xlu0 %v1442_v55  ;;  %v1431_v46 = vmul.f32 1.442695, %v1419_v49 }
 0x36d   :  { %5236 = vpow2.f32 %v1431_v46 }
 0x36f   :  { %v5669_v63 = vpop.eup %5232 }
 0x370   :  { %v1411_v58 = vpop.xlane.xlu1 %1410  ;;  %v1445_v2 = vsel %vm1012_vm2, %v5669_v63, 0.0 }
 0x371   :  { %v1421_v60 = vsub.f32 %v1389_v29, %v1411_v58 }
 0x372   :  { %v1414_v47 = vpop.xlane.xlu0 %1413 }
 0x373   :  { %v1422_v62 = vsub.f32 %v1390_v35, %v1414_v47  ;;  %v5671_v1 = vpop.eup %5234 }
 0x374   :  { %v1448_v4 = vsel %vm1012_vm2, %v5671_v1, 0.0  ;;  %v733_v13 = vpop.permute.xlu1 %732 }
 0x375   :  { %v1437_v61 = vmul.f32 1.442695, %v1422_v62  ;;  %v744_v29 = vshrl.u32 %v733_v13, 16 }
 0x377   :  { %v5675_v3 = vpop.eup %5236 }
 0x378   :  { %v1451_v6 = vsel %vm1012_vm2, %v5675_v3, 0.0 }
 0x37a   :  { %736 = vrot.lane.b32.xlu1 %v5474_v17, %s5314_s4  ;;  %v1420_v17 = vsub.f32 %v1388_v19, %v1408_v24 }
 0x37e   :  { %738 = vrot.lane.b32.xlu1 %v5472_v16, %s5314_s4  ;;  %v1435_v16 = vmul.f32 1.442695, %v1421_v60 }
 0x380   :  { %5238 = vpow2.f32 %v1435_v16 }
 0x381   :  { %734 = vrot.lane.b32.xlu0 %v5468_v15, %s5314_s4  ;;  %v1433_v15 = vmul.f32 1.442695, %v1420_v17 }
 0x383   :  { %5240 = vpow2.f32 %v1433_v15 }
 0x384   :  { %5242 = vpow2.f32 %v1437_v61 }
 0x38a   :  { %v5679_v5 = vpop.eup %5238 }
 0x38b   :  { %v1457_v8 = vsel %vm1012_vm2, %v5679_v5, 0.0 }
 0x38d   :  { %v5683_v7 = vpop.eup %5240 }
 0x38e   :  { %v1454_v9 = vsel %vm1012_vm2, %v5683_v7, 0.0  ;;  %v5689_v10 = vpop.eup %5242 }
 0x38f   :  { %v1460_v11 = vsel %vm1012_vm2, %v5689_v10, 0.0 }
 0x3a0   :  { %1446 = vadd.xlane.f32.xlu0 %v1445_v2 }
 0x3a2   :  { %1449 = vadd.xlane.f32.xlu1 %v1448_v4 }
 0x3a4   :  { %1452 = vadd.xlane.f32.xlu0 %v1451_v6 }
 0x3a6   :  { %1458 = vadd.xlane.f32.xlu1 %v1457_v8 }
 0x3a8   :  { %1455 = vadd.xlane.f32.xlu0 %v1454_v9 }
 0x3ac   :  { %1461 = vadd.xlane.f32.xlu0 %v1460_v11 }
 0x3f6   :  { %v1441_v19 = vpop.xlane.xlu1 %1440 }
 0x3f7   :  { %5244 = vrcp.f32 %v1441_v19 }
 0x3f8   :  { %v1444_v20 = vpop.xlane.xlu0 %1443 }
 0x3f9   :  { %5246 = vrcp.f32 %v1444_v20 }
 0x3fa   :  { %v737_v21 = vpop.permute.xlu1 %736 }
 0x3fb   :  { %v752_v31 = vshrl.u32 %v737_v21, 16 }
 0x3fc   :  { %v735_v22 = vpop.permute.xlu0 %734 }
 0x3fd   :  { %v745_v23 = vshrl.u32 %v735_v22, 16  ;;  %v5693_v25 = vpack.i.b16 %v735_v22, %v733_v13 }
 0x3fe   :  { %v739_v26 = vpop.permute.xlu1 %738 }
 0x3ff   :  { %v5695_v30 = vpack.i.b16 %v739_v26, %v737_v21  ;;  %v753_v32 = vshrl.u32 %v739_v26, 16  ;;  %v5697_v34 = vpack.i.b16 %v745_v23, %v744_v29  ;;  %v763_v35 = vrot.slane %v5693_v25, %v5494_v33 }
 0x400   :  { %v756_v29 = vcombine.high %v5693_v25, %v5491_v28 }
 0x401   :  { %v754_v14 = vpack.i.b16 %v753_v32, %v752_v31  ;;  %v778_v36 = vrot.slane %v5695_v30, %v5494_v33  ;;  %v829_v39 = vrot.slane %v5697_v34, %v5494_v33  ;;  %v5245_v59 = vpop.eup %5244  ;;  %v822_v22 = vcombine.high %v5697_v34, %v5491_v28 }
 0x402   :  { %v1471_v16 = vmul.f32 %v5245_v59, %v5656_v51  ;;  %v770_v25 = vrot.slane %v756_v29, %v5494_v33 }
 0x403   :  { %v786_v37 = vcombine.low %v763_v35, %v778_v36  ;;  %v787_v38 = vcombine.high %v763_v35, %v778_v36  ;;  %v844_v40 = vrot.slane %v754_v14, %v5494_v33  ;;  %v5247_v17 = vpop.eup %5246  ;;  %v837_v19 = vcombine.high %v754_v14, %v5491_v28 }
 0x404   :  { %v1472_v4 = vmul.f32 %v5247_v17, %v5660_v54  ;;  %v1479_v51 = vpack.c.bf16 %v1471_v16, %v1471_v16  ;;  %v771_v54 = vcombine.high %v5695_v30, %v5491_v28  ;;  %v836_v32 = vrot.slane %v822_v22, %v5494_v33 }
 0x405   :  { %v794_v42 = vrot.slane %v786_v37, %v5498_v41  ;;  %v801_v43 = vrot.slane %v787_v38, %v5498_v41  ;;  %v852_v44 = vcombine.low %v829_v39, %v844_v40  ;;  %v853_v45 = vcombine.high %v829_v39, %v844_v40 }
 0x406   :  { %v1480_v26 = vpack.c.bf16 %v1472_v4, %v1472_v4  ;;  %v851_v31 = vrot.slane %v837_v19, %v5494_v33  ;;  %v785_v34 = vrot.slane %v771_v54, %v5494_v33 }
 0x407   :  { %v888_v50 = vcombine.low %v794_v42, %v801_v43  ;;  %v4734_v52 = vcombine.high %v794_v42, %v801_v43  ;;  %v860_v55 = vrot.slane %v852_v44, %v5498_v41  ;;  %v867_v12 = vrot.slane %v853_v45, %v5498_v41 }
 0x408   :  { %v868_v35 = vcombine.low %v836_v32, %v851_v31  ;;  %v869_v14 = vcombine.high %v836_v32, %v851_v31  ;;  %v802_v36 = vcombine.low %v770_v25, %v785_v34  ;;  %v803_v37 = vcombine.high %v770_v25, %v785_v34 }
 0x409   :  { %v895_v53 = vrot.slane %v888_v50, %v5494_v33  ;;  %v903_v48 = vrot.slane %v4734_v52, %v5494_v33  ;;  %v913_v56 = vcombine.low %v860_v55, %v867_v12  ;;  %v4735_v57 = vcombine.high %v860_v55, %v867_v12 }
 0x40a   :  { %v876_v38 = vrot.slane %v868_v35, %v5498_v41  ;;  %v883_v39 = vrot.slane %v869_v14, %v5498_v41  ;;  %v810_v40 = vrot.slane %v802_v36, %v5498_v41  ;;  %v817_v42 = vrot.slane %v803_v37, %v5498_v41 }
 0x40b   :  { %v904_v58 = vcombine.low %v895_v53, %v903_v48  ;;  %v920_v18 = vrot.slane %v913_v56, %v5494_v33  ;;  %v928_v49 = vrot.slane %v4735_v57, %v5494_v33 }
 0x40c   :  { %v963_v43 = vcombine.low %v876_v38, %v883_v39  ;;  %v4737_v44 = vcombine.high %v876_v38, %v883_v39  ;;  %v938_v45 = vcombine.low %v810_v40, %v817_v42  ;;  %v4736_v50 = vcombine.high %v810_v40, %v817_v42 }
 0x40d   :  { %v911_v24 = vrot.slane %v904_v58, %v5498_v41  ;;  %v929_v60 = vcombine.low %v920_v18, %v928_v49 }
 0x40e   :  { %v970_v52 = vrot.slane %v963_v43, %v5494_v33  ;;  %v978_v55 = vrot.slane %v4737_v44, %v5494_v33  ;;  %v945_v12 = vrot.slane %v938_v45, %v5494_v33  ;;  %v953_v53 = vrot.slane %v4736_v50, %v5494_v33 }
 0x40f   :  { %v912_v46 = vcombine.high %v911_v24, %v5313_v27  ;;  %v936_v47 = vrot.slane %v929_v60, %v5498_v41  ;;  %v991_v62 = vshrl.u32 %v911_v24, 16 }
 0x410   :  { %v979_v57 = vcombine.low %v970_v52, %v978_v55  ;;  %v954_v18 = vcombine.low %v945_v12, %v953_v53 }
 0x411   :  { %v990_v15 = vpack.i.b16 %v936_v47, %v911_v24  ;;  %v992_v61 = vshrl.u32 %v936_v47, 16  ;;  %v937_v2 = vcombine.high %v936_v47, %v5313_v27  ;;  %v997_v6 = vshrl.u32 %v912_v46, 16 }
 0x412   :  { %v986_v49 = vrot.slane %v979_v57, %v5498_v41  ;;  %v961_v59 = vrot.slane %v954_v18, %v5498_v41 }
 0x413   :  { %v1492_v8 = vsel %vm1490_vm4, %v990_v15, 0  ;;  %v993_v9 = vpack.i.b16 %v992_v61, %v991_v62  ;;  %v996_v11 = vpack.i.b16 %v937_v2, %v912_v46  ;;  %v998_v13 = vshrl.u32 %v937_v2, 16 }
 0x414   :  { %4971 = vmatpush3.bf16.msra.mxu1 %v1492_v8  ;;  %v1004_v46 = vshrl.u32 %v986_v49, 16  ;;  %v1002_v15 = vpack.i.b16 %v986_v49, %v961_v59  ;;  %v1003_v62 = vshrl.u32 %v961_v59, 16  ;;  %v987_v8 = vcombine.high %v986_v49, %v5313_v27 }
 0x415   :  { %v1538_v20 = vsel %vm1490_vm4, %v993_v9, 0  ;;  %4982 = vmatprep.subr.bf16.mxu1 %v5305_v0  ;;  %v999_v21 = vpack.i.b16 %v998_v13, %v997_v6  ;;  %v1584_v23 = vsel %vm1490_vm4, %v996_v11, 0 }
 0x416   :  { %4977 = vmatpush3.bf16.msra.mxu0 %v1538_v20  ;;  %v1005_v6 = vpack.i.b16 %v1004_v46, %v1003_v62  ;;  %v1676_v11 = vsel %vm1490_vm4, %v1002_v15, 0  ;;  %v1010_v20 = vshrl.u32 %v987_v8, 16 }
 0x417   :  { %4973 = vmatmul.mubr.msk.bf16.vlgmr.msra.gmra.mrb[20].mxu1 %vm1012_vm2, %v1479_v51  ;;  %4988 = vmatprep.subr.bf16.mxu0 %v5305_v0  ;;  %v1630_v30 = vsel %vm1490_vm4, %v999_v21, 0 }
 0x418   :  { %4983 = vmatpush3.bf16.msra.mxu1 %v1584_v23  ;;  %4984 = vmatprep.mubr.msk.bf16.mxu1 %vm5306_vm0, %v5305_v0 }
 0x419   :  { %4979 = vmatmul.mubr.msk.bf16.vlgmr.msra.gmra.mrb[16].mxu0 %vm1012_vm2, %v1480_v26  ;;  %4994 = vmatprep.subr.bf16.mxu1 %v5305_v0 }
 0x41a   :  { %4989 = vmatpush3.bf16.msra.mxu0 %v1630_v30  ;;  %4990 = vmatprep.mubr.msk.bf16.mxu0 %vm5306_vm0, %v5305_v0 }
 0x41b   :  { %5000 = vmatprep.subr.bf16.mxu0 %v5305_v0 }
 0x42d   :  { %v1447_v48 = vpop.xlane.xlu0 %1446 }
 0x42e   :  { %5248 = vrcp.f32 %v1447_v48 }
 0x42f   :  { %v1450_v56 = vpop.xlane.xlu1 %1449 }
 0x430   :  { %5250 = vrcp.f32 %v1450_v56 }
 0x431   :  { %v1453_v58 = vpop.xlane.xlu0 %1452 }
 0x432   :  { %5252 = vrcp.f32 %v1453_v58 }
 0x433   :  { %v1459_v60 = vpop.xlane.xlu1 %1458 }
 0x435   :  { %v1456_v24 = vpop.xlane.xlu0 %1455 }
 0x436   :  { %5254 = vrcp.f32 %v1456_v24 }
 0x437   :  { %5256 = vrcp.f32 %v1459_v60 }
 0x438   :  { %v5249_v17 = vpop.eup %5248 }
 0x439   :  { %v1473_v47 = vmul.f32 %v5249_v17, %v5669_v63  ;;  %v1462_v16 = vpop.xlane.xlu0 %1461  ;;  %v962_v63 = vcombine.high %v961_v59, %v5313_v27 }
 0x43a   :  { %v5251_v61 = vpop.eup %5250  ;;  %5258 = vrcp.f32 %v1462_v16 }
 0x43b   :  { %v1474_v2 = vmul.f32 %v5251_v61, %v5671_v1  ;;  %v1481_v4 = vpack.c.bf16 %v1473_v47, %v1473_v47  ;;  %v1722_v1 = vsel %vm1490_vm4, %v1005_v6, 0  ;;  %v1008_v22 = vpack.i.b16 %v987_v8, %v962_v63 }
 0x43c   :  { %v5253_v9 = vpop.eup %5252  ;;  %v1009_v54 = vshrl.u32 %v962_v63, 16 }
 0x43d   :  { %4985 = vmatmul.mubr.msk.bf16.vlgmr.msra.gmra.mrb[24].mxu1 %vm1012_vm2, %v1481_v4  ;;  %v1482_v13 = vpack.c.bf16 %v1474_v2, %v1474_v2  ;;  %v1475_v19 = vmul.f32 %v5253_v9, %v5675_v3  ;;  %v1768_v29 = vsel %vm1490_vm4, %v1008_v22, 0 }
 0x43e   :  { %4995 = vmatpush3.bf16.msra.mxu1 %v1676_v11  ;;  %4996 = vmatprep.mubr.msk.bf16.mxu1 %vm5306_vm0, %v5305_v0  ;;  %v1011_v3 = vpack.i.b16 %v1010_v20, %v1009_v54 }
 0x43f   :  { %4991 = vmatmul.mubr.msk.bf16.vlgmr.msra.gmra.mrb[20].mxu0 %vm1012_vm2, %v1482_v13  ;;  %5006 = vmatprep.subr.bf16.mxu1 %v5305_v0  ;;  %v1483_v23 = vpack.c.bf16 %v1475_v19, %v1475_v19 }
 0x440   :  { %v5255_v51 = vpop.eup %5254  ;;  %5001 = vmatpush3.bf16.msra.mxu0 %v1722_v1  ;;  %5002 = vmatprep.mubr.msk.bf16.mxu0 %vm5306_vm0, %v5305_v0 }
 0x441   :  { %v1476_v21 = vmul.f32 %v5255_v51, %v5683_v7  ;;  %5012 = vmatprep.subr.bf16.mxu0 %v5305_v0  ;;  %v5257_v26 = vpop.eup %5256  ;;  %v1814_v7 = vsel %vm1490_vm4, %v1011_v3, 0 }
 0x442   :  { %v1477_v32 = vmul.f32 %v5257_v26, %v5679_v5 }
 0x443   :  { %v1484_v31 = vpack.c.bf16 %v1476_v21, %v1476_v21 }
 0x444   :  { %v5259_v30 = vpop.eup %5258  ;;  %v1485_v25 = vpack.c.bf16 %v1477_v32, %v1477_v32 }
 0x445   :  { %4997 = vmatmul.mubr.msk.bf16.vlgmr.msra.gmra.mrb[28].mxu1 %vm1012_vm2, %v1483_v23  ;;  %v1478_v34 = vmul.f32 %v5259_v30, %v5689_v10 }
 0x446   :  { %5007 = vmatpush3.bf16.msra.mxu1 %v1768_v29  ;;  %5008 = vmatprep.mubr.msk.bf16.mxu1 %vm5306_vm0, %v5305_v0 }
 0x447   :  { %5003 = vmatmul.mubr.msk.bf16.vlgmr.msra.gmra.mrb[24].mxu0 %vm1012_vm2, %v1484_v31  ;;  %5018 = vmatprep.subr.bf16.mxu1 %v5305_v0  ;;  %v1486_v35 = vpack.c.bf16 %v1478_v34, %v1478_v34 }
 0x448   :  { %5013 = vmatpush3.bf16.msra.mxu0 %v1814_v7  ;;  %5014 = vmatprep.mubr.msk.bf16.mxu0 %vm5306_vm0, %v5305_v0 }
 0x449   :  { %5026 = vmatprep.subr.bf16.mxu0 %v5305_v0 }
 0x44d   :  { %5009 = vmatmul.mubr.msk.bf16.vlgmr.msra.gmra.mrb[32].mxu1 %vm1012_vm2, %v1485_v25 }
 0x44e   :  { %5022 = vmatprep.mubr.msk.bf16.mxu1 %vm5306_vm0, %v5305_v0 }
 0x44f   :  { %5015 = vmatmul.mubr.msk.bf16.vlgmr.msra.gmra.mrb[28].mxu0 %vm1012_vm2, %v1486_v35 }
 0x450   :  { %5030 = vmatprep.mubr.msk.bf16.mxu0 %vm5306_vm0, %v5305_v0 }
 0x4ea   :  { %v1528_v5 = vpop.f32.mrb[20].mxu1 }
 0x4eb   :  { %v4974_v14 = vpop.f32.mrb[21].mxu1 }
 0x4ec   :  { %v1531_v36 = vpop.f32.mrb[22].mxu1  ;;  %v1574_v37 = vpop.f32.mrb[16].mxu0 }
 0x4ed   :  { %v4975_v38 = vpop.f32.mrb[23].mxu1  ;;  %v4980_v10 = vpop.f32.mrb[17].mxu0 }
 0x4ee   :  { %v1577_v39 = vpop.f32.mrb[18].mxu0 }
 0x4ef   :  { %v4981_v40 = vpop.f32.mrb[19].mxu0 }
 0x510   :  { %v1620_v42 = vpop.f32.mrb[24].mxu1 }
 0x511   :  { %v1856_v43 = vcombine.low %v1528_v5, %v1620_v42  ;;  %v1857_v44 = vcombine.high %v1528_v5, %v1620_v42  ;;  %v4986_v45 = vpop.f32.mrb[25].mxu1 }
 0x512   :  { %v1623_v50 = vpop.f32.mrb[26].mxu1  ;;  %v1666_v52 = vpop.f32.mrb[20].mxu0 }
 0x513   :  { %v1872_v55 = vcombine.low %v1574_v37, %v1666_v52  ;;  %v1873_v12 = vcombine.high %v1574_v37, %v1666_v52  ;;  %v4987_v53 = vpop.f32.mrb[27].mxu1  ;;  %v4992_v48 = vpop.f32.mrb[21].mxu0  ;;  %v1864_v57 = vrot.slane %v1856_v43, %v5494_v33  ;;  %v1871_v58 = vrot.slane %v1857_v44, %v5494_v33 }
 0x514   :  { %v1669_v56 = vpop.f32.mrb[22].mxu0 }
 0x515   :  { %v1880_v18 = vrot.slane %v1872_v55, %v5494_v33  ;;  %v1887_v49 = vrot.slane %v1873_v12, %v5494_v33  ;;  %v4993_v24 = vpop.f32.mrb[23].mxu0 }
 0x517   :  { %v1888_v59 = vcombine.low %v1864_v57, %v1880_v18  ;;  %v1889_v60 = vcombine.high %v1864_v57, %v1880_v18  ;;  %v1904_v46 = vcombine.low %v1871_v58, %v1887_v49  ;;  %v1905_v17 = vcombine.high %v1871_v58, %v1887_v49 }
 0x518   :  { %v1712_v47 = vpop.f32.mrb[28].mxu1 }
 0x519   :  { %v1896_v16 = vrot.slane %v1888_v59, %v5498_v41  ;;  %v1903_v15 = vrot.slane %v1889_v60, %v5498_v41  ;;  %v1912_v62 = vrot.slane %v1904_v46, %v5498_v41  ;;  %v1919_v61 = vrot.slane %v1905_v17, %v5498_v41  ;;  %v4998_v2 = vpop.f32.mrb[29].mxu1 }
 0x51a   :  { %v1715_v4 = vpop.f32.mrb[30].mxu1  ;;  %v1758_v6 = vpop.f32.mrb[24].mxu0  ;;  %v5212_v2 = vld [vmem:[%s6390_s30] sm:$0xff]  }
 0x51b   :  { %v1992_v8 = vcombine.low %v1896_v16, %v1903_v15  ;;  %v4754_v9 = vcombine.high %v1896_v16, %v1903_v15  ;;  %v2008_v11 = vcombine.low %v1912_v62, %v1919_v61  ;;  %v4755_v13 = vcombine.high %v1912_v62, %v1919_v61  ;;  %v4999_v63 = vpop.f32.mrb[31].mxu1  ;;  %v5004_v19 = vpop.f32.mrb[25].mxu0  ;;  %5019 = vmatpush3.bf16.msra.mxu1 %v5212_v2 }
 0x51c   :  { %v1761_v1 = vpop.f32.mrb[26].mxu0  ;;  %5020 = vmatprep.subr.bf16.mxu1 %v5305_v0 }
 0x51d   :  { %v1999_v20 = vrot.slane %v1992_v8, %v5494_v33  ;;  %v2007_v51 = vrot.slane %v4754_v9, %v5494_v33  ;;  %v2015_v21 = vrot.slane %v2008_v11, %v5494_v33  ;;  %v2023_v22 = vrot.slane %v4755_v13, %v5494_v33  ;;  %v5005_v54 = vpop.f32.mrb[27].mxu0  ;;  %v5213_v1 = vld [vmem:[%s6390_s30 + $0x8] sm:$0xff]   ;;  %s6393_s30 = sld [smem:[#allocation8_spill]] }
 0x51f   :  { %v2025_v23 = vcombine.high %v1999_v20, %v2007_v51  ;;  %v2041_v3 = vcombine.high %v2015_v21, %v2023_v22  ;;  %v2024_v26 = vcombine.low %v1999_v20, %v2007_v51  ;;  %v2040_v29 = vcombine.low %v2015_v21, %v2023_v22  ;;  %5021 = vmatpush3.bf16.msra.mxu1 %v5213_v1 }
 0x520   :  { %v1804_v31 = vpop.f32.mrb[32].mxu1  ;;  %5034 = vmatprep.subr.bf16.mxu1 %v5305_v0 }
 0x521   :  { %v1924_v30 = vcombine.low %v1712_v47, %v1804_v31  ;;  %v1925_v32 = vcombine.high %v1712_v47, %v1804_v31  ;;  %v5010_v7 = vpop.f32.mrb[33].mxu1  ;;  %v2039_v34 = vrot.slane %v2025_v23, %v5498_v41  ;;  %v2055_v25 = vrot.slane %v2041_v3, %v5498_v41 }
 0x522   :  { %v1807_v35 = vpop.f32.mrb[34].mxu1  ;;  %v1850_v5 = vpop.f32.mrb[28].mxu0  ;;  %v5804_v14 = vrot.slane %v2024_v26, %v5498_v41  ;;  %v5807_v36 = vrot.slane %v2040_v29, %v5498_v41 }
 0x523   :  { %v1940_v37 = vcombine.low %v1758_v6, %v1850_v5  ;;  %v1941_v38 = vcombine.high %v1758_v6, %v1850_v5  ;;  %v5011_v10 = vpop.f32.mrb[35].mxu1  ;;  %v5016_v39 = vpop.f32.mrb[29].mxu0  ;;  %v2058_v42 = vcombine.low %v2039_v34, %v2055_v25  ;;  %v2059_v45 = vcombine.high %v2039_v34, %v2055_v25 }
 0x524   :  { %v1853_v40 = vpop.f32.mrb[30].mxu0  ;;  %v2056_v43 = vcombine.low %v5804_v14, %v5807_v36  ;;  %v2057_v44 = vcombine.high %v5804_v14, %v5807_v36  ;;  %v1932_v50 = vrot.slane %v1924_v30, %v5494_v33  ;;  %v1939_v52 = vrot.slane %v1925_v32, %v5494_v33 }
 0x525   :  { %v1948_v55 = vrot.slane %v1940_v37, %v5494_v33  ;;  %v1955_v12 = vrot.slane %v1941_v38, %v5494_v33  ;;  %v5017_v53 = vpop.f32.mrb[31].mxu0  ;;  %v4758_v40 = vld [vmem:[%s6391_s28] ss:$0 sm:$0xff] }
 0x527   :  { %v1956_v48 = vcombine.low %v1932_v50, %v1948_v55  ;;  %v1957_v56 = vcombine.high %v1932_v50, %v1948_v55  ;;  %v1972_v57 = vcombine.low %v1939_v52, %v1955_v12  ;;  %v1973_v58 = vcombine.high %v1939_v52, %v1955_v12 }
 0x529   :  { %v1964_v18 = vrot.slane %v1956_v48, %v5498_v41  ;;  %v1971_v49 = vrot.slane %v1957_v56, %v5498_v41  ;;  %v1980_v24 = vrot.slane %v1972_v57, %v5498_v41  ;;  %v1987_v59 = vrot.slane %v1973_v58, %v5498_v41 }
 0x52b   :  { %v2060_v60 = vcombine.low %v1964_v18, %v1971_v49  ;;  %v4756_v46 = vcombine.high %v1964_v18, %v1971_v49  ;;  %v2076_v17 = vcombine.low %v1980_v24, %v1987_v59  ;;  %v4757_v47 = vcombine.high %v1980_v24, %v1987_v59  ;;  %v5214_v18 = vld [vmem:[%s6392_s1] sm:$0xff]   ;;  %v5215_v49 = vld [vmem:[%s6392_s1 + $0x8] sm:$0xff]  }
 0x52c   :  { %v5216_v24 = vld [vmem:[%s6393_s30] sm:$0xff]  }
 0x52d   :  { %v2067_v16 = vrot.slane %v2060_v60, %v5494_v33  ;;  %v2075_v15 = vrot.slane %v4756_v46, %v5494_v33  ;;  %v2083_v62 = vrot.slane %v2076_v17, %v5494_v33  ;;  %v2091_v61 = vrot.slane %v4757_v47, %v5494_v33 }
 0x52f   :  { %v2093_v4 = vcombine.high %v2067_v16, %v2075_v15  ;;  %v2109_v6 = vcombine.high %v2083_v62, %v2091_v61  ;;  %v2092_v8 = vcombine.low %v2067_v16, %v2075_v15  ;;  %v2108_v9 = vcombine.low %v2083_v62, %v2091_v61 }
 0x531   :  { %v2107_v11 = vrot.slane %v2093_v4, %v5498_v41  ;;  %v2123_v13 = vrot.slane %v2109_v6, %v5498_v41  ;;  %v2100_v63 = vrot.slane %v2092_v8, %v5498_v41  ;;  %v2116_v19 = vrot.slane %v2108_v9, %v5498_v41  ;;  %v5217_v4 = vld [vmem:[%s6358_s8] sm:$0xff]   ;;  %v5218_v6 = vld [vmem:[%s6358_s8 + $0x8] sm:$0xff]  }
 0x532   :  { %5027 = vmatpush3.bf16.msra.mxu0 %v5217_v4  ;;  %v4768_v8 = vld [vmem:[%s6359_s11] ss:$0 sm:$0xff] }
 0x533   :  { %v2126_v20 = vcombine.low %v2107_v11, %v2123_v13  ;;  %v2125_v51 = vcombine.high %v2100_v63, %v2116_v19  ;;  %v2124_v21 = vcombine.low %v2100_v63, %v2116_v19  ;;  %v2127_v22 = vcombine.high %v2107_v11, %v2123_v13  ;;  %5028 = vmatprep.subr.bf16.mxu0 %v5305_v0 }
 0x535   :  { %v5184_v54 = vpack.i.bf16 %v2126_v20, %v2058_v42  ;;  %v5179_v23 = vpack.i.bf16 %v2125_v51, %v2057_v44  ;;  %v5189_v3 = vpack.i.bf16 %v2127_v22, %v2059_v45  ;;  %v5304_v42 = vld [vmem:[%s6386_s0] sm:$0xff]  }
 0x536   :  { %v75_v52 = vunpack.c.h.bf16 %v5304_v42  ;;  %5029 = vmatpush3.bf16.msra.mxu0 %v5218_v6 }
 0x537   :  { %5185 = vrot.lane.b32.xlu0 %v5184_v54, %s5315_s23  ;;  %5180 = vrot.lane.b32.xlu1 %v5179_v23, %s5316_s10 }
 0x538   :  { %5042 = vmatprep.subr.bf16.mxu0 %v5305_v0 }
 0x53b   :  { %5190 = vrot.lane.b32.xlu1 %v5189_v3, %s5317_s24 }
 0x5a9   :  { %v5186_v26 = vpop.permute.xlu0 %5185  ;;  %v5181_v29 = vpop.permute.xlu1 %5180 }
 0x5aa   :  { %v5183_v31 = vunpack.i.h.bf16 %v5181_v29  ;;  %v5182_v30 = vunpack.i.l.bf16 %v5181_v29  ;;  %v5188_v32 = vunpack.i.h.bf16 %v5186_v26  ;;  %v5187_v7 = vunpack.i.l.bf16 %v5186_v26  ;;  %v4762_v29 = vld [vmem:[%s6360_s6] ss:$0 sm:$0xff] }
 0x5ac   :  { %v2152_v34 = vsel %vm1012_vm2, %v2056_v43, %v5182_v30  ;;  %v2153_v25 = vsel %vm1012_vm2, %v2124_v21, %v5183_v31  ;;  %v74_v43 = vunpack.c.l.bf16 %v5304_v42 }
 0x5ad   :  { %v5191_v35 = vpop.permute.xlu1 %5190  ;;  %v2155_v36 = vsel %vm2154_vm5, %v2152_v34, %v5187_v7  ;;  %v2156_v37 = vsel %vm2154_vm5, %v2153_v25, %v5188_v32  ;;  %v4763_v34 = vld [vmem:[%s6361_s7] ss:$0 sm:$0xff] }
 0x5ae   :  { %v5193_v5 = vunpack.i.h.bf16 %v5191_v35  ;;  %v5192_v14 = vunpack.i.l.bf16 %v5191_v35 }
 0x5b0   :  { %v2158_v38 = vsel %vm2157_vm6, %v2155_v36, %v5192_v14  ;;  %v2159_v10 = vsel %vm2157_vm6, %v2156_v37, %v5193_v5 }
 0x5b1   :  { %v2160_v39 = vpack.c.bf16 %v2159_v10, %v2158_v38 }
 0x5b3   :  { %5023 = vmatmul.mubr.msk.bf16.vlgmr.msra.gmra.mrb[36].mxu1 %vm111_vm1, %v2160_v39 }
 0x5b4   :  { %5038 = vmatprep.mubr.msk.bf16.mxu1 %vm5306_vm0, %v5305_v0  ;;  %5035 = vmatpush3.bf16.msra.mxu1 %v5214_v18 }
 0x5b5   :  { %5036 = vmatprep.subr.bf16.mxu1 %v5305_v0 }
 0x5b8   :  { %5037 = vmatpush3.bf16.msra.mxu1 %v5215_v49 }
 0x5b9   :  { %5048 = vmatprep.subr.bf16.mxu1 %v5305_v0 }
 0x5bb   :  { %5039 = vmatmul.mubr.msk.bf16.vlgmr.msra.gmra.mrb[40].mxu1 %vm111_vm1, %v5216_v24 }
 0x5bc   :  { %5050 = vmatprep.mubr.msk.bf16.mxu1 %vm5306_vm0, %v5305_v0 }
 0x686   :  { %v2221_v44 = vpop.f32.mrb[36].mxu1 }
 0x687   :  { %v2222_v45 = vadd.f32 %v4758_v40, %v2221_v44  ;;  %v5024_v50 = vpop.f32.mrb[37].mxu1 }
 0x688   :  { %v2224_v55 = vpop.f32.mrb[38].mxu1 }
 0x689   :  { %v2225_v12 = vadd.f32 %v4758_v40, %v2224_v55  ;;  %v5025_v53 = vpop.f32.mrb[39].mxu1  ;;  %v2228_v48 = vadd.f32 %v2222_v45, %v74_v43 }
 0x68b   :  { %v2230_v56 = vsel %vm111_vm1, %v2228_v48, 0.0  ;;  %v2229_v57 = vadd.f32 %v2225_v12, %v75_v52 }
 0x68c   :  { %2231 = vadd.xlane.f32.xlu1 %v2230_v56 }
 0x68d   :  { %v2233_v58 = vsel %vm111_vm1, %v2229_v57, 0.0 }
 0x68e   :  { %2234 = vadd.xlane.f32.xlu0 %v2233_v58  ;;  %v2408_v9 = vpop.f32.mrb[40].mxu1 }
 0x68f   :  { %v2409_v11 = vadd.f32 %v4768_v8, %v2408_v9  ;;  %v5040_v13 = vpop.f32.mrb[41].mxu1 }
 0x690   :  { %v2411_v63 = vpop.f32.mrb[42].mxu1 }
 0x691   :  { %v2412_v19 = vadd.f32 %v4768_v8, %v2411_v63  ;;  %v5041_v1 = vpop.f32.mrb[43].mxu1 }
 0x693   :  { %v5884_v20 = vpack.c.bf16 %v2412_v19, %v2409_v11 }
 0x695   :  { %v2709_v36 = vshrl.u32 %v5884_v20, 16 }
 0x719   :  { %v2232_v59 = vpop.xlane.xlu1 %2231 }
 0x71a   :  { %v2237_v60 = vmul.f32 0.03125, %v2232_v59 }
 0x71b   :  { %v2235_v46 = vpop.xlane.xlu0 %2234 }
 0x71c   :  { %v2239_v17 = vsub.f32 %v2228_v48, %v2237_v60  ;;  %v2238_v47 = vmul.f32 0.03125, %v2235_v46 }
 0x71e   :  { %v2240_v16 = vsub.f32 %v2229_v57, %v2238_v47  ;;  %v2241_v15 = vmul.f32 %v2239_v17, %v2239_v17 }
 0x720   :  { %v2243_v62 = vsel %vm111_vm1, %v2241_v15, 0.0  ;;  %v2242_v61 = vmul.f32 %v2240_v16, %v2240_v16 }
 0x721   :  { %2244 = vadd.xlane.f32.xlu0 %v2243_v62 }
 0x722   :  { %v2246_v2 = vsel %vm111_vm1, %v2242_v61, 0.0 }
 0x723   :  { %2247 = vadd.xlane.f32.xlu1 %v2246_v2 }
 0x734   :  { %2701 = vrot.lane.b32.xlu1 %v5884_v20, %s5310_s27 }
 0x737   :  { %2699 = vrot.lane.b32.xlu0 %v5884_v20, %s5308_s26 }
 0x738   :  { %2703 = vrot.lane.b32.xlu1 %v5884_v20, %s5307_s25 }
 0x7ae   :  { %v2245_v51 = vpop.xlane.xlu0 %2244 }
 0x7af   :  { %v2249_v21 = vmul.f32 0.03125, %v2245_v51 }
 0x7b0   :  { %v2248_v22 = vpop.xlane.xlu1 %2247 }
 0x7b1   :  { %v2251_v54 = vadd.f32 1e-05, %v2249_v21  ;;  %v2250_v23 = vmul.f32 0.03125, %v2248_v22 }
 0x7b2   :  { %v5910_v38 = vpop.permute.xlu0 %2699 }
 0x7b3   :  { %5260 = vrsqrt.f32 %v2251_v54  ;;  %v2252_v3 = vadd.f32 1e-05, %v2250_v23  ;;  %v2707_v10 = vpack.i.b16 %v5910_v38, %v5884_v20  ;;  %v2710_v39 = vshrl.u32 %v5910_v38, 16 }
 0x7b4   :  { %v5908_v37 = vpop.permute.xlu1 %2701 }
 0x7b5   :  { %5262 = vrsqrt.f32 %v2252_v3  ;;  %v2711_v40 = vpack.i.b16 %v2710_v39, %v2709_v36  ;;  %v2721_v42 = vcombine.high %v2707_v10, %v5491_v28  ;;  %v2717_v43 = vshrl.u32 %v5908_v37, 16 }
 0x7b6   :  { %v2728_v2 = vrot.slane %v2707_v10, %v5494_v33 }
 0x7b7   :  { %v2787_v50 = vcombine.high %v2711_v40, %v5491_v28  ;;  %v2735_v55 = vrot.slane %v2721_v42, %v5494_v33  ;;  %v2794_v6 = vrot.slane %v2711_v40, %v5494_v33 }
 0x7b8   :  { %v5917_v44 = vpop.permute.xlu1 %2703 }
 0x7b9   :  { %v2715_v45 = vpack.i.b16 %v5917_v44, %v5908_v37  ;;  %v2718_v52 = vshrl.u32 %v5917_v44, 16  ;;  %v2801_v56 = vrot.slane %v2787_v50, %v5494_v33 }
 0x7bb   :  { %v2736_v12 = vcombine.high %v2715_v45, %v5491_v28  ;;  %v2719_v53 = vpack.i.b16 %v2718_v52, %v2717_v43  ;;  %v2743_v4 = vrot.slane %v2715_v45, %v5494_v33 }
 0x7bd   :  { %v5261_v26 = vpop.eup %5260  ;;  %v2750_v48 = vrot.slane %v2736_v12, %v5494_v33  ;;  %v2802_v57 = vcombine.high %v2719_v53, %v5491_v28  ;;  %v2751_v8 = vcombine.low %v2728_v2, %v2743_v4  ;;  %v2752_v9 = vcombine.high %v2728_v2, %v2743_v4  ;;  %v4764_v4 = vld [vmem:[%s6362_s9] ss:$0 sm:$0xff] }
 0x7be   :  { %v2255_v31 = vmul.f32 %v5261_v26, %v2239_v17  ;;  %v2809_v11 = vrot.slane %v2719_v53, %v5494_v33 }
 0x7bf   :  { %v5263_v30 = vpop.eup %5262  ;;  %v2767_v58 = vcombine.low %v2735_v55, %v2750_v48  ;;  %v2768_v18 = vcombine.high %v2735_v55, %v2750_v48  ;;  %v2816_v49 = vrot.slane %v2802_v57, %v5494_v33  ;;  %v2759_v13 = vrot.slane %v2751_v8, %v5498_v41 }
 0x7c0   :  { %v2264_v32 = vmul.f32 %v4762_v29, %v2255_v31  ;;  %v2256_v7 = vmul.f32 %v5263_v30, %v2240_v16  ;;  %v2766_v63 = vrot.slane %v2752_v9, %v5498_v41  ;;  %v2817_v19 = vcombine.low %v2794_v6, %v2809_v11 }
 0x7c1   :  { %v2775_v24 = vrot.slane %v2767_v58, %v5498_v41  ;;  %v2782_v59 = vrot.slane %v2768_v18, %v5498_v41  ;;  %v2833_v60 = vcombine.low %v2801_v56, %v2816_v49  ;;  %v2834_v46 = vcombine.high %v2801_v56, %v2816_v49 }
 0x7c2   :  { %v2265_v25 = vmul.f32 %v4762_v29, %v2256_v7  ;;  %v5898_v35 = vadd.f32 %v4763_v34, %v2264_v32  ;;  %v2818_v1 = vcombine.high %v2794_v6, %v2809_v11  ;;  %v2825_v51 = vrot.slane %v2817_v19, %v5498_v41 }
 0x7c3   :  { %v2903_v17 = vcombine.low %v2775_v24, %v2782_v59  ;;  %v4779_v47 = vcombine.high %v2775_v24, %v2782_v59  ;;  %v2841_v16 = vrot.slane %v2833_v60, %v5498_v41  ;;  %v2848_v15 = vrot.slane %v2834_v46, %v5498_v41 }
 0x7c4   :  { %v5900_v5 = vadd.f32 %v4763_v34, %v2265_v25  ;;  %v2832_v21 = vrot.slane %v2818_v1, %v5498_v41  ;;  %v2853_v22 = vcombine.low %v2759_v13, %v2766_v63  ;;  %v4777_v54 = vcombine.high %v2759_v13, %v2766_v63 }
 0x7c5   :  { %v2928_v62 = vcombine.low %v2841_v16, %v2848_v15  ;;  %v4780_v61 = vcombine.high %v2841_v16, %v2848_v15  ;;  %v2910_v42 = vrot.slane %v2903_v17, %v5494_v33  ;;  %v2918_v43 = vrot.slane %v4779_v47, %v5494_v33 }
 0x7c6   :  { %v2275_v14 = vpack.c.bf16 %v5900_v5, %v5898_v35  ;;  %v2860_v23 = vrot.slane %v2853_v22, %v5494_v33  ;;  %v2868_v3 = vrot.slane %v4777_v54, %v5494_v33  ;;  %v2878_v26 = vcombine.low %v2825_v51, %v2832_v21 }
 0x7c7   :  { %v4778_v29 = vcombine.high %v2825_v51, %v2832_v21  ;;  %v2935_v45 = vrot.slane %v2928_v62, %v5494_v33  ;;  %v2943_v50 = vrot.slane %v4780_v61, %v5494_v33  ;;  %v2919_v55 = vcombine.low %v2910_v42, %v2918_v43 }
 0x7c8   :  { %5031 = vmatmul.mubr.msk.bf16.vlgmr.msra.gmra.mrb[32].mxu0 %vm111_vm1, %v2275_v14  ;;  %v2869_v31 = vcombine.low %v2860_v23, %v2868_v3  ;;  %v2885_v30 = vrot.slane %v2878_v26, %v5494_v33 }
 0x7c9   :  { %5044 = vmatprep.mubr.msk.bf16.mxu0 %vm5306_vm0, %v5305_v0  ;;  %v2893_v32 = vrot.slane %v4778_v29, %v5494_v33  ;;  %v2944_v12 = vcombine.low %v2935_v45, %v2943_v50  ;;  %v5962_v56 = vrot.slane %v2919_v55, %v5498_v41 }
 0x7ca   :  { %v2876_v7 = vrot.slane %v2869_v31, %v5498_v41 }
 0x7cb   :  { %v2894_v34 = vcombine.low %v2885_v30, %v2893_v32  ;;  %v5965_v57 = vrot.slane %v2944_v12, %v5498_v41  ;;  %v2968_v24 = vshrl.u32 %v5962_v56, 16  ;;  %v5977_v46 = vcombine.high %v5962_v56, %v5313_v27 }
 0x7cc   :  { %v2956_v14 = vshrl.u32 %v2876_v7, 16  ;;  %v5955_v53 = vcombine.high %v2876_v7, %v5313_v27 }
 0x7cd   :  { %v2901_v25 = vrot.slane %v2894_v34, %v5498_v41  ;;  %v2967_v59 = vpack.i.b16 %v5965_v57, %v5962_v56  ;;  %v2969_v60 = vshrl.u32 %v5965_v57, 16  ;;  %v5981_v17 = vcombine.high %v5965_v57, %v5313_v27 }
 0x7ce   :  { %v2962_v18 = vshrl.u32 %v5955_v53, 16  ;;  %v2974_v62 = vshrl.u32 %v5977_v46, 16 }
 0x7cf   :  { %v2955_v36 = vpack.i.b16 %v2901_v25, %v2876_v7  ;;  %v2957_v10 = vshrl.u32 %v2901_v25, 16  ;;  %v5958_v48 = vcombine.high %v2901_v25, %v5313_v27  ;;  %v5985_v16 = vpack.i.b16 %v2969_v60, %v2968_v24 }
 0x7d0   :  { %v2973_v15 = vpack.i.b16 %v5981_v17, %v5977_v46  ;;  %v2975_v61 = vshrl.u32 %v5981_v17, 16 }
 0x7d1   :  { %v3261_v39 = vsel %vm1012_vm2, %v2955_v36, 0  ;;  %v2958_v40 = vpack.i.b16 %v2957_v10, %v2956_v14  ;;  %v2961_v58 = vpack.i.b16 %v5958_v48, %v5955_v53  ;;  %v2963_v49 = vshrl.u32 %v5958_v48, 16 }
 0x7d2   :  { %5043 = vmatpush3.bf16.xpose.msra.mxu0 %v3261_v39  ;;  %v5991_v2 = vpack.i.b16 %v2975_v61, %v2974_v62 }
 0x7d3   :  { %v3307_v52 = vsel %vm1012_vm2, %v2958_v40, 0  ;;  %5054 = vmatprep.subr.bf16.mxu0 %v5305_v0  ;;  %v5983_v47 = vpack.i.b16 %v2963_v49, %v2962_v18 }
 0x7d4   :  { %5049 = vmatpush3.bf16.xpose.msra.mxu1 %v3307_v52 }
 0x7d5   :  { %5060 = vmatprep.subr.bf16.mxu1 %v5305_v0  ;;  %v3399_v53 = vsel %vm1012_vm2, %v5983_v47, 0  ;;  %v3445_v47 = vsel %vm1012_vm2, %v2967_v59, 0 }
 0x89b   :  { %v2336_v6 = vpop.f32.mrb[32].mxu0 }
 0x89c   :  { %v2337_v8 = vadd.f32 %v4764_v4, %v2336_v6  ;;  %v5032_v9 = vpop.f32.mrb[33].mxu0 }
 0x89d   :  { %v2339_v11 = vpop.f32.mrb[34].mxu0 }
 0x89e   :  { %v2340_v13 = vadd.f32 %v4764_v4, %v2339_v11  ;;  %v5033_v63 = vpop.f32.mrb[35].mxu0  ;;  %v2416_v19 = vmul.f32 0.35355338, %v2337_v8 }
 0x8a0   :  { %v2417_v1 = vmul.f32 0.35355338, %v2340_v13 }
 0x8a2   :  { %v2418_v51 = vpack.c.bf16 %v2417_v1, %v2416_v19 }
 0x8a4   :  { %2422 = vrot.lane.b32.xlu1 %v2418_v51, %s5310_s27  ;;  %2420 = vrot.lane.b32.xlu0 %v2418_v51, %s5308_s26  ;;  %v2430_v54 = vshrl.u32 %v2418_v51, 16 }
 0x8a8   :  { %2424 = vrot.lane.b32.xlu0 %v2418_v51, %s5307_s25 }
 0x916   :  { %v2421_v21 = vpop.permute.xlu0 %2420  ;;  %v2423_v3 = vpop.permute.xlu1 %2422 }
 0x917   :  { %v2431_v22 = vshrl.u32 %v2421_v21, 16  ;;  %v2428_v23 = vpack.i.b16 %v2421_v21, %v2418_v51  ;;  %v2438_v30 = vshrl.u32 %v2423_v3, 16 }
 0x919   :  { %v2432_v26 = vpack.i.b16 %v2431_v22, %v2430_v54  ;;  %v2449_v7 = vrot.slane %v2428_v23, %v5494_v33  ;;  %v2442_v10 = vcombine.high %v2428_v23, %v5491_v28 }
 0x91a   :  { %v2425_v29 = vpop.permute.xlu0 %2424 }
 0x91b   :  { %v2436_v31 = vpack.i.b16 %v2425_v29, %v2423_v3  ;;  %v2439_v32 = vshrl.u32 %v2425_v29, 16  ;;  %v2508_v14 = vcombine.high %v2432_v26, %v5491_v28  ;;  %v2515_v42 = vrot.slane %v2432_v26, %v5494_v33 }
 0x91c   :  { %v2456_v60 = vrot.slane %v2442_v10, %v5494_v33 }
 0x91d   :  { %v2457_v34 = vcombine.high %v2436_v31, %v5491_v28  ;;  %v2464_v25 = vrot.slane %v2436_v31, %v5494_v33  ;;  %v2440_v36 = vpack.i.b16 %v2439_v32, %v2438_v30  ;;  %v2522_v12 = vrot.slane %v2508_v14, %v5494_v33 }
 0x91f   :  { %v2472_v39 = vcombine.low %v2449_v7, %v2464_v25  ;;  %v2473_v40 = vcombine.high %v2449_v7, %v2464_v25  ;;  %v2523_v43 = vcombine.high %v2440_v36, %v5491_v28  ;;  %v2530_v45 = vrot.slane %v2440_v36, %v5494_v33 }
 0x920   :  { %v2471_v50 = vrot.slane %v2457_v34, %v5494_v33 }
 0x921   :  { %v2480_v52 = vrot.slane %v2472_v39, %v5498_v41  ;;  %v2487_v55 = vrot.slane %v2473_v40, %v5498_v41  ;;  %v2537_v18 = vrot.slane %v2523_v43, %v5494_v33  ;;  %v2538_v49 = vcombine.low %v2515_v42, %v2530_v45 }
 0x922   :  { %v2539_v24 = vcombine.high %v2515_v42, %v2530_v45  ;;  %v2488_v11 = vcombine.low %v2456_v60, %v2471_v50  ;;  %v2489_v13 = vcombine.high %v2456_v60, %v2471_v50  ;;  %v3353_v40 = vsel %vm1012_vm2, %v2961_v58, 0 }
 0x923   :  { %v2574_v62 = vcombine.low %v2480_v52, %v2487_v55  ;;  %v4773_v61 = vcombine.high %v2480_v52, %v2487_v55  ;;  %v2546_v4 = vrot.slane %v2538_v49, %v5498_v41  ;;  %v2554_v8 = vcombine.low %v2522_v12, %v2537_v18 }
 0x924   :  { %v2553_v6 = vrot.slane %v2539_v24, %v5498_v41  ;;  %v2555_v9 = vcombine.high %v2522_v12, %v2537_v18  ;;  %v2496_v26 = vrot.slane %v2488_v11, %v5498_v41  ;;  %v2503_v29 = vrot.slane %v2489_v13, %v5498_v41 }
 0x925   :  { %v2581_v63 = vrot.slane %v2574_v62, %v5494_v33  ;;  %v2589_v19 = vrot.slane %v4773_v61, %v5494_v33  ;;  %v2562_v22 = vrot.slane %v2554_v8, %v5498_v41  ;;  %v3491_v61 = vsel %vm1012_vm2, %v5985_v16, 0 }
 0x926   :  { %v2599_v1 = vcombine.low %v2546_v4, %v2553_v6  ;;  %v4774_v51 = vcombine.high %v2546_v4, %v2553_v6  ;;  %v2569_v54 = vrot.slane %v2555_v9, %v5498_v41  ;;  %v2624_v25 = vcombine.low %v2496_v26, %v2503_v29 }
 0x927   :  { %v2590_v21 = vcombine.low %v2581_v63, %v2589_v19  ;;  %v4775_v14 = vcombine.high %v2496_v26, %v2503_v29  ;;  %v3537_v16 = vsel %vm1012_vm2, %v2973_v15, 0  ;;  %v3583_v9 = vsel %vm1012_vm2, %v5991_v2, 0 }
 0x928   :  { %v2606_v23 = vrot.slane %v2599_v1, %v5494_v33  ;;  %v2614_v3 = vrot.slane %v4774_v51, %v5494_v33  ;;  %v2649_v32 = vcombine.low %v2562_v22, %v2569_v54  ;;  %v4776_v7 = vcombine.high %v2562_v22, %v2569_v54 }
 0x929   :  { %v2597_v31 = vrot.slane %v2590_v21, %v5498_v41  ;;  %v2631_v52 = vrot.slane %v2624_v25, %v5494_v33  ;;  %v2639_v55 = vrot.slane %v4775_v14, %v5494_v33 }
 0x92a   :  { %v2615_v30 = vcombine.low %v2606_v23, %v2614_v3  ;;  %v2656_v42 = vrot.slane %v2649_v32, %v5494_v33  ;;  %v2664_v43 = vrot.slane %v4776_v7, %v5494_v33 }
 0x92b   :  { %v2677_v10 = vshrl.u32 %v2597_v31, 16  ;;  %v2598_v48 = vcombine.high %v2597_v31, %v5313_v27  ;;  %v2640_v18 = vcombine.low %v2631_v52, %v2639_v55 }
 0x92c   :  { %v2622_v34 = vrot.slane %v2615_v30, %v5498_v41  ;;  %v2665_v58 = vcombine.low %v2656_v42, %v2664_v43 }
 0x92d   :  { %v2683_v24 = vshrl.u32 %v2598_v48, 16  ;;  %v2647_v4 = vrot.slane %v2640_v18, %v5498_v41 }
 0x92e   :  { %v2676_v36 = vpack.i.b16 %v2622_v34, %v2597_v31  ;;  %v2678_v39 = vshrl.u32 %v2622_v34, 16  ;;  %v2623_v50 = vcombine.high %v2622_v34, %v5313_v27  ;;  %v2672_v62 = vrot.slane %v2665_v58, %v5498_v41 }
 0x92f   :  { %v2689_v59 = vshrl.u32 %v2647_v4, 16  ;;  %v2648_v11 = vcombine.high %v2647_v4, %v5313_v27 }
 0x930   :  { %5045 = vmatmul.mubr.msk.bf16.vlgmr.msra.gmra.mrb[36].mxu0 %vm1012_vm2, %v2676_v36  ;;  %v2679_v45 = vpack.i.b16 %v2678_v39, %v2677_v10  ;;  %v2684_v12 = vshrl.u32 %v2623_v50, 16  ;;  %v2682_v49 = vpack.i.b16 %v2623_v50, %v2598_v48  ;;  %v2690_v56 = vshrl.u32 %v2672_v62, 16 }
 0x931   :  { %5055 = vmatpush3.bf16.xpose.msra.mxu0 %v3353_v40  ;;  %5056 = vmatprep.mubr.msk.bf16.mxu0 %vm5306_vm0, %v5305_v0  ;;  %v2688_v57 = vpack.i.b16 %v2672_v62, %v2647_v4  ;;  %v2673_v8 = vcombine.high %v2672_v62, %v5313_v27  ;;  %v2695_v15 = vshrl.u32 %v2648_v11, 16 }
 0x932   :  { %5051 = vmatmul.mubr.msk.bf16.vlgmr.msra.gmra.mrb[44].mxu1 %vm1012_vm2, %v2679_v45  ;;  %5066 = vmatprep.subr.bf16.mxu0 %v5305_v0  ;;  %v2685_v60 = vpack.i.b16 %v2684_v12, %v2683_v24  ;;  %v2691_v6 = vpack.i.b16 %v2690_v56, %v2689_v59 }
 0x933   :  { %5061 = vmatpush3.bf16.xpose.msra.mxu1 %v3399_v53  ;;  %5062 = vmatprep.mubr.msk.bf16.mxu1 %vm5306_vm0, %v5305_v0  ;;  %v2696_v46 = vshrl.u32 %v2673_v8, 16  ;;  %v2694_v17 = vpack.i.b16 %v2673_v8, %v2648_v11 }
 0x934   :  { %5072 = vmatprep.subr.bf16.mxu1 %v5305_v0 }
 0x935   :  { %v2697_v13 = vpack.i.b16 %v2696_v46, %v2695_v15 }
 0x938   :  { %5057 = vmatmul.mubr.msk.bf16.vlgmr.msra.gmra.mrb[40].mxu0 %vm1012_vm2, %v2682_v49 }
 0x939   :  { %5067 = vmatpush3.bf16.xpose.msra.mxu0 %v3445_v47  ;;  %5068 = vmatprep.mubr.msk.bf16.mxu0 %vm5306_vm0, %v5305_v0 }
 0x93a   :  { %5063 = vmatmul.mubr.msk.bf16.vlgmr.msra.gmra.mrb[48].mxu1 %vm1012_vm2, %v2685_v60  ;;  %5078 = vmatprep.subr.bf16.mxu0 %v5305_v0 }
 0x93b   :  { %5073 = vmatpush3.bf16.xpose.msra.mxu1 %v3491_v61  ;;  %5074 = vmatprep.mubr.msk.bf16.mxu1 %vm5306_vm0, %v5305_v0 }
 0x93c   :  { %5084 = vmatprep.subr.bf16.mxu1 %v5305_v0 }
 0x940   :  { %5069 = vmatmul.mubr.msk.bf16.vlgmr.msra.gmra.mrb[44].mxu0 %vm1012_vm2, %v2688_v57 }
 0x941   :  { %5079 = vmatpush3.bf16.xpose.msra.mxu0 %v3537_v16  ;;  %5080 = vmatprep.mubr.msk.bf16.mxu0 %vm5306_vm0, %v5305_v0 }
 0x942   :  { %5075 = vmatmul.mubr.msk.bf16.vlgmr.msra.gmra.mrb[52].mxu1 %vm1012_vm2, %v2691_v6  ;;  %5090 = vmatprep.subr.bf16.mxu0 %v5305_v0 }
 0x943   :  { %5085 = vmatpush3.bf16.xpose.msra.mxu1 %v3583_v9  ;;  %5086 = vmatprep.mubr.msk.bf16.mxu1 %vm5306_vm0, %v5305_v0 }
 0x944   :  { %5096 = vmatprep.subr.bf16.mxu1 %v5305_v0 }
 0x948   :  { %5081 = vmatmul.mubr.msk.bf16.vlgmr.msra.gmra.mrb[48].mxu0 %vm1012_vm2, %v2694_v17 }
 0x949   :  { %5092 = vmatprep.mubr.msk.bf16.mxu0 %vm5306_vm0, %v5305_v0 }
 0x94a   :  { %5087 = vmatmul.mubr.msk.bf16.vlgmr.msra.gmra.mrb[56].mxu1 %vm1012_vm2, %v2697_v13 }
 0x94b   :  { %5098 = vmatprep.mubr.msk.bf16.mxu1 %vm5306_vm0, %v5305_v0 }
 0xa03   :  { %v3297_v2 = vpop.f32.mrb[36].mxu0 }
 0xa04   :  { %v5046_v63 = vpop.f32.mrb[37].mxu0  ;;  %v3625_v19 = vsel %vm1012_vm2, %v3297_v2, -inf }
 0xa05   :  { %v3343_v1 = vpop.f32.mrb[44].mxu1  ;;  %3626 = vmax.xlane.f32.xlu1 %v3625_v19  ;;  %v3300_v51 = vpop.f32.mrb[38].mxu0 }
 0xa06   :  { %v5047_v21 = vpop.f32.mrb[39].mxu0  ;;  %v5052_v22 = vpop.f32.mrb[45].mxu1  ;;  %v3628_v54 = vsel %vm1012_vm2, %v3343_v1, -inf }
 0xa07   :  { %3629 = vmax.xlane.f32.xlu0 %v3628_v54  ;;  %v3346_v23 = vpop.f32.mrb[46].mxu1 }
 0xa08   :  { %v5053_v3 = vpop.f32.mrb[47].mxu1 }
 0xa0b   :  { %v6085_v26 = vpop.f32.mrb[40].mxu0 }
 0xa0c   :  { %v5058_v29 = vpop.f32.mrb[41].mxu0  ;;  %v3631_v31 = vsel %vm1012_vm2, %v6085_v26, -inf }
 0xa0d   :  { %v3435_v30 = vpop.f32.mrb[48].mxu1  ;;  %3632 = vmax.xlane.f32.xlu0 %v3631_v31  ;;  %v3392_v32 = vpop.f32.mrb[42].mxu0 }
 0xa0e   :  { %v5059_v7 = vpop.f32.mrb[43].mxu0  ;;  %v5064_v34 = vpop.f32.mrb[49].mxu1  ;;  %v3634_v25 = vsel %vm1012_vm2, %v3435_v30, -inf }
 0xa0f   :  { %3635 = vmax.xlane.f32.xlu1 %v3634_v25  ;;  %v3438_v14 = vpop.f32.mrb[50].mxu1 }
 0xa10   :  { %v5065_v36 = vpop.f32.mrb[51].mxu1 }
 0xa13   :  { %v3481_v10 = vpop.f32.mrb[44].mxu0 }
 0xa14   :  { %v5070_v39 = vpop.f32.mrb[45].mxu0  ;;  %v3637_v40 = vsel %vm1012_vm2, %v3481_v10, -inf }
 0xa15   :  { %v3527_v42 = vpop.f32.mrb[52].mxu1  ;;  %3638 = vmax.xlane.f32.xlu0 %v3637_v40  ;;  %v3484_v43 = vpop.f32.mrb[46].mxu0 }
 0xa16   :  { %v5071_v45 = vpop.f32.mrb[47].mxu0  ;;  %v5076_v50 = vpop.f32.mrb[53].mxu1  ;;  %v3640_v52 = vsel %vm1012_vm2, %v3527_v42, -inf }
 0xa17   :  { %3641 = vmax.xlane.f32.xlu1 %v3640_v52  ;;  %v3530_v55 = vpop.f32.mrb[54].mxu1 }
 0xa18   :  { %v5077_v53 = vpop.f32.mrb[55].mxu1 }
 0xa1b   :  { %v3573_v48 = vpop.f32.mrb[48].mxu0 }
 0xa1c   :  { %v5082_v58 = vpop.f32.mrb[49].mxu0  ;;  %v3643_v12 = vsel %vm1012_vm2, %v3573_v48, -inf }
 0xa1d   :  { %v3619_v18 = vpop.f32.mrb[56].mxu1  ;;  %3644 = vmax.xlane.f32.xlu0 %v3643_v12  ;;  %v3576_v49 = vpop.f32.mrb[50].mxu0 }
 0xa1e   :  { %v5083_v24 = vpop.f32.mrb[51].mxu0  ;;  %v5088_v47 = vpop.f32.mrb[57].mxu1  ;;  %v3646_v60 = vsel %vm1012_vm2, %v3619_v18, -inf }
 0xa1f   :  { %3647 = vmax.xlane.f32.xlu1 %v3646_v60  ;;  %v3622_v62 = vpop.f32.mrb[58].mxu1 }
 0xa20   :  { %v5089_v61 = vpop.f32.mrb[59].mxu1 }
 0xa30   :  { %2979 = vrot.lane.b32.xlu1 %v5910_v38, %s5309_s3 }
 0xa33   :  { %2977 = vrot.lane.b32.xlu0 %v5884_v20, %s5309_s3 }
 0xa92   :  { %v3627_v4 = vpop.xlane.xlu1 %3626 }
 0xa93   :  { %v3649_v56 = vsub.f32 %v3297_v2, %v3627_v4 }
 0xa94   :  { %v3630_v57 = vpop.xlane.xlu0 %3629 }
 0xa95   :  { %v3657_v59 = vmul.f32 1.442695, %v3649_v56  ;;  %v3650_v16 = vsub.f32 %v3343_v1, %v3630_v57 }
 0xa97   :  { %5264 = vpow2.f32 %v3657_v59  ;;  %v3659_v6 = vmul.f32 1.442695, %v3650_v16 }
 0xa99   :  { %5266 = vpow2.f32 %v3659_v6 }
 0xa9a   :  { %v3633_v20 = vpop.xlane.xlu0 %3632 }
 0xa9b   :  { %v3651_v13 = vsub.f32 %v6085_v26, %v3633_v20 }
 0xa9c   :  { %v3636_v46 = vpop.xlane.xlu1 %3635 }
 0xa9d   :  { %v3652_v17 = vsub.f32 %v3435_v30, %v3636_v46  ;;  %v3661_v51 = vmul.f32 1.442695, %v3651_v13 }
 0xa9f   :  { %v3663_v63 = vmul.f32 1.442695, %v3652_v17 }
 0xaa1   :  { %v6098_v8 = vpop.eup %5264  ;;  %5268 = vpow2.f32 %v3663_v63 }
 0xaa2   :  { %v3673_v9 = vsel %vm1012_vm2, %v6098_v8, 0.0  ;;  %v3639_v15 = vpop.xlane.xlu0 %3638  ;;  %5270 = vpow2.f32 %v3661_v51 }
 0xaa3   :  { %v6102_v11 = vpop.eup %5266  ;;  %3674 = vadd.xlane.f32.xlu0 %v3673_v9  ;;  %v3653_v19 = vsub.f32 %v3481_v10, %v3639_v15 }
 0xaa4   :  { %v3676_v38 = vsel %vm1012_vm2, %v6102_v11, 0.0  ;;  %v3642_v2 = vpop.xlane.xlu1 %3641 }
 0xaa5   :  { %3677 = vadd.xlane.f32.xlu1 %v3676_v38  ;;  %v3654_v21 = vsub.f32 %v3527_v42, %v3642_v2  ;;  %v3665_v54 = vmul.f32 1.442695, %v3653_v19 }
 0xaa7   :  { %5272 = vpow2.f32 %v3665_v54 }
 0xaaa   :  { %v3645_v1 = vpop.xlane.xlu0 %3644 }
 0xaab   :  { %v3655_v23 = vsub.f32 %v3573_v48, %v3645_v1  ;;  %v6111_v31 = vpop.eup %5268 }
 0xaac   :  { %v3648_v22 = vpop.xlane.xlu1 %3647  ;;  %v6113_v26 = vpop.eup %5270  ;;  %v3682_v30 = vsel %vm1012_vm2, %v6111_v31, 0.0 }
 0xaad   :  { %v3656_v3 = vsub.f32 %v3619_v18, %v3648_v22  ;;  %v3679_v7 = vsel %vm1012_vm2, %v6113_v26, 0.0 }
 0xaae   :  { %v2978_v42 = vpop.permute.xlu0 %2977 }
 0xaaf   :  { %v3671_v29 = vmul.f32 1.442695, %v3656_v3  ;;  %v2989_v48 = vshrl.u32 %v2978_v42, 16 }
 0xab0   :  { %v2980_v43 = vpop.permute.xlu1 %2979 }
 0xab1   :  { %v6117_v32 = vpop.eup %5272  ;;  %v2990_v52 = vshrl.u32 %v2980_v43, 16  ;;  %v6135_v53 = vpack.i.b16 %v2980_v43, %v2978_v42 }
 0xab2   :  { %v3685_v25 = vsel %vm1012_vm2, %v6117_v32, 0.0 }
 0xab3   :  { %v6139_v24 = vpack.i.b16 %v2990_v52, %v2989_v48  ;;  %v3008_v47 = vrot.slane %v6135_v53, %v5494_v33 }
 0xab5   :  { %v3074_v56 = vrot.slane %v6139_v24, %v5494_v33  ;;  %v3067_v48 = vcombine.high %v6139_v24, %v5491_v28 }
 0xab6   :  { %2981 = vrot.lane.b32.xlu1 %v5908_v37, %s5309_s3  ;;  %v3667_v37 = vmul.f32 1.442695, %v3654_v21 }
 0xab7   :  { %v3081_v24 = vrot.slane %v3067_v48, %v5494_v33 }
 0xab8   :  { %5274 = vpow2.f32 %v3667_v37 }
 0xab9   :  { %2983 = vrot.lane.b32.xlu0 %v5917_v44, %s5309_s3  ;;  %v3669_v44 = vmul.f32 1.442695, %v3655_v23 }
 0xabb   :  { %5276 = vpow2.f32 %v3669_v44 }
 0xabc   :  { %5278 = vpow2.f32 %v3671_v29 }
 0xac2   :  { %v6121_v34 = vpop.eup %5274 }
 0xac3   :  { %v3688_v36 = vsel %vm1012_vm2, %v6121_v34, 0.0 }
 0xac5   :  { %v6125_v14 = vpop.eup %5276 }
 0xac6   :  { %v6129_v10 = vpop.eup %5278  ;;  %v3691_v39 = vsel %vm1012_vm2, %v6125_v14, 0.0 }
 0xac7   :  { %v3694_v40 = vsel %vm1012_vm2, %v6129_v10, 0.0 }
 0xad8   :  { %3683 = vadd.xlane.f32.xlu0 %v3682_v30 }
 0xada   :  { %3680 = vadd.xlane.f32.xlu1 %v3679_v7 }
 0xadc   :  { %3686 = vadd.xlane.f32.xlu0 %v3685_v25 }
 0xade   :  { %3689 = vadd.xlane.f32.xlu1 %v3688_v36 }
 0xae0   :  { %3692 = vadd.xlane.f32.xlu0 %v3691_v39 }
 0xae2   :  { %3695 = vadd.xlane.f32.xlu1 %v3694_v40 }
 0xb30   :  { %v3675_v45 = vpop.xlane.xlu0 %3674 }
 0xb31   :  { %5280 = vrcp.f32 %v3675_v45 }
 0xb32   :  { %v3678_v50 = vpop.xlane.xlu1 %3677 }
 0xb33   :  { %5282 = vrcp.f32 %v3678_v50 }
 0xb34   :  { %v2984_v55 = vpop.permute.xlu0 %2983 }
 0xb35   :  { %v2998_v12 = vshrl.u32 %v2984_v55, 16 }
 0xb36   :  { %v2982_v58 = vpop.permute.xlu1 %2981 }
 0xb37   :  { %v6137_v18 = vpack.i.b16 %v2984_v55, %v2982_v58  ;;  %v2997_v49 = vshrl.u32 %v2982_v58, 16 }
 0xb39   :  { %v2999_v60 = vpack.i.b16 %v2998_v12, %v2997_v49  ;;  %v3023_v62 = vrot.slane %v6137_v18, %v5494_v33  ;;  %v3001_v49 = vcombine.high %v6135_v53, %v5491_v28 }
 0xb3b   :  { %v3031_v61 = vcombine.low %v3008_v47, %v3023_v62  ;;  %v3032_v4 = vcombine.high %v3008_v47, %v3023_v62  ;;  %v3089_v57 = vrot.slane %v2999_v60, %v5494_v33  ;;  %v5281_v22 = vpop.eup %5280  ;;  %v3082_v50 = vcombine.high %v2999_v60, %v5491_v28 }
 0xb3c   :  { %v3705_v44 = vmul.f32 %v5281_v22, %v6098_v8 }
 0xb3d   :  { %v3039_v59 = vrot.slane %v3031_v61, %v5498_v41  ;;  %v3046_v16 = vrot.slane %v3032_v4, %v5498_v41  ;;  %v3097_v6 = vcombine.low %v3074_v56, %v3089_v57  ;;  %v3098_v9 = vcombine.high %v3074_v56, %v3089_v57  ;;  %v5283_v37 = vpop.eup %5282 }
 0xb3e   :  { %v3706_v36 = vmul.f32 %v5283_v37, %v6102_v11  ;;  %v3713_v55 = vpack.c.bf16 %v3705_v44, %v3705_v44  ;;  %v3016_v11 = vcombine.high %v6137_v18, %v5491_v28  ;;  %v3096_v47 = vrot.slane %v3082_v50, %v5494_v33 }
 0xb3f   :  { %v3133_v38 = vcombine.low %v3039_v59, %v3046_v16  ;;  %v4781_v20 = vcombine.high %v3039_v59, %v3046_v16  ;;  %v3105_v46 = vrot.slane %v3097_v6, %v5498_v41  ;;  %v3112_v17 = vrot.slane %v3098_v9, %v5498_v41 }
 0xb40   :  { %v3714_v12 = vpack.c.bf16 %v3706_v36, %v3706_v36  ;;  %v3030_v60 = vrot.slane %v3016_v11, %v5494_v33  ;;  %v3015_v28 = vrot.slane %v3001_v49, %v5494_v33  ;;  %v3113_v53 = vcombine.low %v3081_v24, %v3096_v47 }
 0xb41   :  { %v3140_v15 = vrot.slane %v3133_v38, %v5494_v33  ;;  %v3148_v13 = vrot.slane %v4781_v20, %v5494_v33  ;;  %v3158_v2 = vcombine.low %v3105_v46, %v3112_v17  ;;  %v4782_v63 = vcombine.high %v3105_v46, %v3112_v17 }
 0xb42   :  { %v3114_v62 = vcombine.high %v3081_v24, %v3096_v47  ;;  %v3047_v61 = vcombine.low %v3015_v28, %v3030_v60  ;;  %v3048_v4 = vcombine.high %v3015_v28, %v3030_v60  ;;  %v3121_v56 = vrot.slane %v3113_v53, %v5498_v41 }
 0xb43   :  { %v3149_v19 = vcombine.low %v3140_v15, %v3148_v13  ;;  %v3165_v1 = vrot.slane %v3158_v2, %v5494_v33  ;;  %v3173_v51 = vrot.slane %v4782_v63, %v5494_v33 }
 0xb44   :  { %v3128_v57 = vrot.slane %v3114_v62, %v5498_v41  ;;  %v3055_v59 = vrot.slane %v3047_v61, %v5498_v41  ;;  %v3062_v16 = vrot.slane %v3048_v4, %v5498_v41 }
 0xb45   :  { %v3156_v21 = vrot.slane %v3149_v19, %v5498_v41  ;;  %v3174_v54 = vcombine.low %v3165_v1, %v3173_v51 }
 0xb46   :  { %v3208_v6 = vcombine.low %v3121_v56, %v3128_v57  ;;  %v4784_v9 = vcombine.high %v3121_v56, %v3128_v57  ;;  %v3183_v38 = vcombine.low %v3055_v59, %v3062_v16  ;;  %v4783_v20 = vcombine.high %v3055_v59, %v3062_v16 }
 0xb47   :  { %v3157_v23 = vcombine.high %v3156_v21, %v5313_v27  ;;  %v3181_v3 = vrot.slane %v3174_v54, %v5498_v41  ;;  %v3236_v30 = vshrl.u32 %v3156_v21, 16 }
 0xb48   :  { %v3215_v46 = vrot.slane %v3208_v6, %v5494_v33  ;;  %v3223_v17 = vrot.slane %v4784_v9, %v5494_v33  ;;  %v3190_v15 = vrot.slane %v3183_v38, %v5494_v33  ;;  %v3198_v13 = vrot.slane %v4783_v20, %v5494_v33 }
 0xb49   :  { %v3235_v29 = vpack.i.b16 %v3181_v3, %v3156_v21  ;;  %v3237_v7 = vshrl.u32 %v3181_v3, 16  ;;  %v3182_v25 = vcombine.high %v3181_v3, %v5313_v27  ;;  %v3242_v39 = vshrl.u32 %v3157_v23, 16 }
 0xb4a   :  { %v3224_v63 = vcombine.low %v3215_v46, %v3223_v17  ;;  %v3199_v1 = vcombine.low %v3190_v15, %v3198_v13 }
 0xb4b   :  { %v3725_v40 = vsel %vm1490_vm4, %v3235_v29, 0  ;;  %v3238_v42 = vpack.i.b16 %v3237_v7, %v3236_v30  ;;  %v3241_v43 = vpack.i.b16 %v3182_v25, %v3157_v23  ;;  %v3243_v45 = vshrl.u32 %v3182_v25, 16 }
 0xb4c   :  { %5091 = vmatpush3.bf16.msra.mxu0 %v3725_v40  ;;  %v3231_v21 = vrot.slane %v3224_v63, %v5498_v41  ;;  %v3206_v54 = vrot.slane %v3199_v1, %v5498_v41 }
 0xb4d   :  { %v3771_v52 = vsel %vm1490_vm4, %v3238_v42, 0  ;;  %5102 = vmatprep.subr.bf16.mxu0 %v5305_v0  ;;  %v3244_v8 = vpack.i.b16 %v3243_v45, %v3242_v39  ;;  %v3817_v58 = vsel %vm1490_vm4, %v3241_v43, 0 }
 0xb4e   :  { %5097 = vmatpush3.bf16.msra.mxu1 %v3771_v52  ;;  %v3249_v23 = vshrl.u32 %v3231_v21, 16  ;;  %v3248_v3 = vshrl.u32 %v3206_v54, 16  ;;  %v3232_v25 = vcombine.high %v3231_v21, %v5313_v27  ;;  %v3247_v42 = vpack.i.b16 %v3231_v21, %v3206_v54 }
 0xb4f   :  { %5093 = vmatmul.mubr.msk.bf16.vlgmr.msra.gmra.mrb[52].mxu0 %vm1012_vm2, %v3713_v55  ;;  %5108 = vmatprep.subr.bf16.mxu1 %v5305_v0  ;;  %v3863_v18 = vsel %vm1490_vm4, %v3244_v8, 0  ;;  %v3207_v43 = vcombine.high %v3206_v54, %v5313_v27 }
 0xb50   :  { %5103 = vmatpush3.bf16.msra.mxu0 %v3817_v58  ;;  %5104 = vmatprep.mubr.msk.bf16.mxu0 %vm5306_vm0, %v5305_v0  ;;  %v3250_v7 = vpack.i.b16 %v3249_v23, %v3248_v3 }
 0xb51   :  { %5099 = vmatmul.mubr.msk.bf16.vlgmr.msra.gmra.mrb[60].mxu1 %vm1012_vm2, %v3714_v12  ;;  %5114 = vmatprep.subr.bf16.mxu0 %v5305_v0  ;;  %v3254_v27 = vshrl.u32 %v3207_v43, 16  ;;  %v3253_v12 = vpack.i.b16 %v3232_v25, %v3207_v43 }
 0xb52   :  { %5109 = vmatpush3.bf16.msra.mxu1 %v3863_v18  ;;  %5110 = vmatprep.mubr.msk.bf16.mxu1 %vm5306_vm0, %v5305_v0  ;;  %v3955_v50 = vsel %vm1490_vm4, %v3250_v7, 0 }
 0xb53   :  { %5120 = vmatprep.subr.bf16.mxu1 %v5305_v0 }
 0xb65   :  { %v3684_v2 = vpop.xlane.xlu0 %3683 }
 0xb66   :  { %5284 = vrcp.f32 %v3684_v2 }
 0xb67   :  { %v3681_v19 = vpop.xlane.xlu1 %3680 }
 0xb68   :  { %5286 = vrcp.f32 %v3681_v19 }
 0xb69   :  { %v3687_v51 = vpop.xlane.xlu0 %3686 }
 0xb6a   :  { %5288 = vrcp.f32 %v3687_v51 }
 0xb6b   :  { %v3690_v22 = vpop.xlane.xlu1 %3689 }
 0xb6c   :  { %5290 = vrcp.f32 %v3690_v22 }
 0xb6d   :  { %v3693_v30 = vpop.xlane.xlu0 %3692 }
 0xb6f   :  { %v3696_v37 = vpop.xlane.xlu1 %3695 }
 0xb70   :  { %v5285_v44 = vpop.eup %5284  ;;  %5292 = vrcp.f32 %v3696_v37 }
 0xb71   :  { %v3708_v29 = vmul.f32 %v5285_v44, %v6111_v31  ;;  %5294 = vrcp.f32 %v3693_v30  ;;  %v3255_v31 = vshrl.u32 %v3232_v25, 16 }
 0xb72   :  { %v5287_v36 = vpop.eup %5286 }
 0xb73   :  { %v3707_v39 = vmul.f32 %v5287_v36, %v6113_v26  ;;  %v3716_v40 = vpack.c.bf16 %v3708_v29, %v3708_v29  ;;  %v3909_v26 = vsel %vm1490_vm4, %v3247_v42, 0  ;;  %v3256_v11 = vpack.i.b16 %v3255_v31, %v3254_v27 }
 0xb74   :  { %v5289_v45 = vpop.eup %5288 }
 0xb75   :  { %5111 = vmatmul.mubr.msk.bf16.vlgmr.msra.gmra.mrb[64].mxu1 %vm1012_vm2, %v3716_v40  ;;  %v3715_v52 = vpack.c.bf16 %v3707_v39, %v3707_v39  ;;  %v3709_v48 = vmul.f32 %v5289_v45, %v6117_v32  ;;  %v4001_v32 = vsel %vm1490_vm4, %v3253_v12, 0 }
 0xb76   :  { %v5291_v55 = vpop.eup %5290  ;;  %5121 = vmatpush3.bf16.msra.mxu1 %v3955_v50  ;;  %5122 = vmatprep.mubr.msk.bf16.mxu1 %vm5306_vm0, %v5305_v0 }
 0xb77   :  { %v3710_v8 = vmul.f32 %v5291_v55, %v6121_v34  ;;  %5105 = vmatmul.mubr.msk.bf16.vlgmr.msra.gmra.mrb[56].mxu0 %vm1012_vm2, %v3715_v52  ;;  %5132 = vmatprep.subr.bf16.mxu1 %v5305_v0  ;;  %v4047_v34 = vsel %vm1490_vm4, %v3256_v11, 0  ;;  %v3717_v47 = vpack.c.bf16 %v3709_v48, %v3709_v48 }
 0xb78   :  { %5115 = vmatpush3.bf16.msra.mxu0 %v3909_v26  ;;  %5116 = vmatprep.mubr.msk.bf16.mxu0 %vm5306_vm0, %v5305_v0 }
 0xb79   :  { %5126 = vmatprep.subr.bf16.mxu0 %v5305_v0  ;;  %v3718_v58 = vpack.c.bf16 %v3710_v8, %v3710_v8 }
 0xb7a   :  { %v5293_v49 = vpop.eup %5292 }
 0xb7b   :  { %v5295_v18 = vpop.eup %5294  ;;  %v3712_v24 = vmul.f32 %v5293_v49, %v6129_v10 }
 0xb7c   :  { %v3711_v60 = vmul.f32 %v5295_v18, %v6125_v14 }
 0xb7d   :  { %5123 = vmatmul.mubr.msk.bf16.vlgmr.msra.gmra.mrb[68].mxu1 %vm1012_vm2, %v3718_v58  ;;  %v3720_v28 = vpack.c.bf16 %v3712_v24, %v3712_v24 }
 0xb7e   :  { %5133 = vmatpush3.bf16.msra.mxu1 %v4047_v34  ;;  %5134 = vmatprep.mubr.msk.bf16.mxu1 %vm5306_vm0, %v5305_v0  ;;  %v3719_v53 = vpack.c.bf16 %v3711_v60, %v3711_v60 }
 0xb7f   :  { %5117 = vmatmul.mubr.msk.bf16.vlgmr.msra.gmra.mrb[60].mxu0 %vm1012_vm2, %v3717_v47  ;;  %5146 = vmatprep.subr.bf16.mxu1 %v5305_v0 }
 0xb80   :  { %5127 = vmatpush3.bf16.msra.mxu0 %v4001_v32  ;;  %5128 = vmatprep.mubr.msk.bf16.mxu0 %vm5306_vm0, %v5305_v0 }
 0xb81   :  { %5138 = vmatprep.subr.bf16.mxu0 %v5305_v0 }
 0xb85   :  { %5135 = vmatmul.mubr.msk.bf16.vlgmr.msra.gmra.mrb[72].mxu1 %vm1012_vm2, %v3720_v28 }
 0xb86   :  { %5150 = vmatprep.mubr.msk.bf16.mxu1 %vm5306_vm0, %v5305_v0 }
 0xb87   :  { %5129 = vmatmul.mubr.msk.bf16.vlgmr.msra.gmra.mrb[64].mxu0 %vm1012_vm2, %v3719_v53 }
 0xb88   :  { %5142 = vmatprep.mubr.msk.bf16.mxu0 %vm5306_vm0, %v5305_v0 }
 0xc22   :  { %v3761_v10 = vpop.f32.mrb[52].mxu0 }
 0xc23   :  { %v5094_v62 = vpop.f32.mrb[53].mxu0 }
 0xc24   :  { %v3764_v61 = vpop.f32.mrb[54].mxu0  ;;  %v3807_v4 = vpop.f32.mrb[60].mxu1 }
 0xc25   :  { %v5095_v56 = vpop.f32.mrb[55].mxu0  ;;  %v5100_v14 = vpop.f32.mrb[61].mxu1 }
 0xc26   :  { %v3810_v57 = vpop.f32.mrb[62].mxu1 }
 0xc27   :  { %v5101_v59 = vpop.f32.mrb[63].mxu1 }
 0xc48   :  { %v3899_v16 = vpop.f32.mrb[64].mxu1 }
 0xc49   :  { %v4105_v6 = vcombine.low %v3807_v4, %v3899_v16  ;;  %v4106_v9 = vcombine.high %v3807_v4, %v3899_v16  ;;  %v5112_v38 = vpop.f32.mrb[65].mxu1 }
 0xc4a   :  { %v3853_v20 = vpop.f32.mrb[56].mxu0  ;;  %v3902_v46 = vpop.f32.mrb[66].mxu1 }
 0xc4b   :  { %v4089_v17 = vcombine.low %v3761_v10, %v3853_v20  ;;  %v4090_v15 = vcombine.high %v3761_v10, %v3853_v20  ;;  %v5106_v13 = vpop.f32.mrb[57].mxu0  ;;  %v5113_v2 = vpop.f32.mrb[67].mxu1  ;;  %v4113_v19 = vrot.slane %v4105_v6, %v5494_v33  ;;  %v4120_v1 = vrot.slane %v4106_v9, %v5494_v33 }
 0xc4c   :  { %v3856_v63 = vpop.f32.mrb[58].mxu0 }
 0xc4d   :  { %v4097_v51 = vrot.slane %v4089_v17, %v5494_v33  ;;  %v4104_v21 = vrot.slane %v4090_v15, %v5494_v33  ;;  %v5107_v22 = vpop.f32.mrb[59].mxu0 }
 0xc4f   :  { %v4121_v54 = vcombine.low %v4097_v51, %v4113_v19  ;;  %v4122_v23 = vcombine.high %v4097_v51, %v4113_v19  ;;  %v4137_v37 = vcombine.low %v4104_v21, %v4120_v1  ;;  %v4138_v3 = vcombine.high %v4104_v21, %v4120_v1 }
 0xc50   :  { %v3991_v44 = vpop.f32.mrb[68].mxu1 }
 0xc51   :  { %v4129_v29 = vrot.slane %v4121_v54, %v5498_v41  ;;  %v4136_v30 = vrot.slane %v4122_v23, %v5498_v41  ;;  %v4145_v7 = vrot.slane %v4137_v37, %v5498_v41  ;;  %v4152_v25 = vrot.slane %v4138_v3, %v5498_v41  ;;  %v5124_v36 = vpop.f32.mrb[69].mxu1 }
 0xc52   :  { %v3945_v39 = vpop.f32.mrb[60].mxu0  ;;  %v3994_v40 = vpop.f32.mrb[70].mxu1  ;;  %v5219_v36 = vld [vmem:[%s6363_s12] sm:$0xff]  }
 0xc53   :  { %v4225_v42 = vcombine.low %v4129_v29, %v4136_v30  ;;  %v4801_v43 = vcombine.high %v4129_v29, %v4136_v30  ;;  %v4241_v45 = vcombine.low %v4145_v7, %v4152_v25  ;;  %v4802_v50 = vcombine.high %v4145_v7, %v4152_v25  ;;  %v5118_v52 = vpop.f32.mrb[61].mxu0  ;;  %v5125_v31 = vpop.f32.mrb[71].mxu1  ;;  %5139 = vmatpush3.bf16.msra.mxu0 %v5219_v36 }
 0xc54   :  { %v3948_v55 = vpop.f32.mrb[62].mxu0  ;;  %5140 = vmatprep.subr.bf16.mxu0 %v5305_v0 }
 0xc55   :  { %v4232_v8 = vrot.slane %v4225_v42, %v5494_v33  ;;  %v4240_v26 = vrot.slane %v4801_v43, %v5494_v33  ;;  %v4248_v27 = vrot.slane %v4241_v45, %v5494_v33  ;;  %v4256_v48 = vrot.slane %v4802_v50, %v5494_v33  ;;  %v5119_v11 = vpop.f32.mrb[63].mxu0 }
 0xc57   :  { %v4258_v58 = vcombine.high %v4232_v8, %v4240_v26  ;;  %v4274_v12 = vcombine.high %v4248_v27, %v4256_v48  ;;  %v4257_v49 = vcombine.low %v4232_v8, %v4240_v26  ;;  %v4273_v34 = vcombine.low %v4248_v27, %v4256_v48 }
 0xc58   :  { %v4083_v47 = vpop.f32.mrb[72].mxu1 }
 0xc59   :  { %v4173_v18 = vcombine.low %v3991_v44, %v4083_v47  ;;  %v4174_v24 = vcombine.high %v3991_v44, %v4083_v47  ;;  %v5136_v32 = vpop.f32.mrb[73].mxu1  ;;  %v4272_v60 = vrot.slane %v4258_v58, %v5498_v41  ;;  %v4288_v28 = vrot.slane %v4274_v12, %v5498_v41 }
 0xc5a   :  { %v4037_v53 = vpop.f32.mrb[64].mxu0  ;;  %v4086_v10 = vpop.f32.mrb[74].mxu1  ;;  %v6246_v62 = vrot.slane %v4257_v49, %v5498_v41  ;;  %v6249_v61 = vrot.slane %v4273_v34, %v5498_v41 }
 0xc5b   :  { %v4157_v4 = vcombine.low %v3945_v39, %v4037_v53  ;;  %v4158_v56 = vcombine.high %v3945_v39, %v4037_v53  ;;  %v5130_v14 = vpop.f32.mrb[65].mxu0  ;;  %v5137_v57 = vpop.f32.mrb[75].mxu1  ;;  %v4291_v16 = vcombine.low %v4272_v60, %v4288_v28  ;;  %v4292_v38 = vcombine.high %v4272_v60, %v4288_v28 }
 0xc5c   :  { %v4040_v59 = vpop.f32.mrb[66].mxu0  ;;  %v4289_v6 = vcombine.low %v6246_v62, %v6249_v61  ;;  %v4290_v9 = vcombine.high %v6246_v62, %v6249_v61  ;;  %v4181_v20 = vrot.slane %v4173_v18, %v5494_v33  ;;  %v4188_v46 = vrot.slane %v4174_v24, %v5494_v33  ;;  %v4805_v14 = vld [vmem:[%s6364_s13] ss:$0 sm:$0xff] }
 0xc5d   :  { %v4165_v17 = vrot.slane %v4157_v4, %v5494_v33  ;;  %v4172_v15 = vrot.slane %v4158_v56, %v5494_v33  ;;  %v5131_v13 = vpop.f32.mrb[67].mxu0 }
 0xc5f   :  { %v4189_v2 = vcombine.low %v4165_v17, %v4181_v20  ;;  %v4190_v63 = vcombine.high %v4165_v17, %v4181_v20  ;;  %v4205_v19 = vcombine.low %v4172_v15, %v4188_v46  ;;  %v4206_v1 = vcombine.high %v4172_v15, %v4188_v46 }
 0xc61   :  { %v4197_v51 = vrot.slane %v4189_v2, %v5498_v41  ;;  %v4204_v21 = vrot.slane %v4190_v63, %v5498_v41  ;;  %v4213_v22 = vrot.slane %v4205_v19, %v5498_v41  ;;  %v4220_v54 = vrot.slane %v4206_v1, %v5498_v41 }
 0xc63   :  { %v4293_v23 = vcombine.low %v4197_v51, %v4204_v21  ;;  %v4803_v37 = vcombine.high %v4197_v51, %v4204_v21  ;;  %v4309_v3 = vcombine.low %v4213_v22, %v4220_v54  ;;  %v4804_v44 = vcombine.high %v4213_v22, %v4220_v54 }
 0xc65   :  { %v4300_v29 = vrot.slane %v4293_v23, %v5494_v33  ;;  %v4308_v30 = vrot.slane %v4803_v37, %v5494_v33  ;;  %v4316_v7 = vrot.slane %v4309_v3, %v5494_v33  ;;  %v4324_v25 = vrot.slane %v4804_v44, %v5494_v33  ;;  %v5220_v33 = vld [vmem:[%s6363_s12 + $0x8] sm:$0xff]   ;;  %v5223_v37 = vld [vmem:[%s6366_s18] sm:$0xff]  }
 0xc66   :  { %5141 = vmatpush3.bf16.msra.mxu0 %v5220_v33  ;;  %v5222_v23 = vld [vmem:[%s6365_s16 + $0x8] sm:$0xff]  }
 0xc67   :  { %v4326_v39 = vcombine.high %v4300_v29, %v4308_v30  ;;  %v4342_v40 = vcombine.high %v4316_v7, %v4324_v25  ;;  %v4325_v42 = vcombine.low %v4300_v29, %v4308_v30  ;;  %v4341_v43 = vcombine.low %v4316_v7, %v4324_v25  ;;  %5154 = vmatprep.subr.bf16.mxu0 %v5305_v0  ;;  %v5224_v3 = vld [vmem:[%s6366_s18 + $0x8] sm:$0xff]  }
 0xc69   :  { %v4340_v45 = vrot.slane %v4326_v39, %v5498_v41  ;;  %v4356_v50 = vrot.slane %v4342_v40, %v5498_v41  ;;  %v4333_v52 = vrot.slane %v4325_v42, %v5498_v41  ;;  %v4349_v31 = vrot.slane %v4341_v43, %v5498_v41  ;;  %v4809_v42 = vld [vmem:[%s6367_s14] ss:$0 sm:$0xff] }
 0xc6b   :  { %v4359_v55 = vcombine.low %v4340_v45, %v4356_v50  ;;  %v4358_v8 = vcombine.high %v4333_v52, %v4349_v31  ;;  %v4357_v26 = vcombine.low %v4333_v52, %v4349_v31  ;;  %v4360_v27 = vcombine.high %v4340_v45, %v4356_v50  ;;  %v4810_v52 = vld [vmem:[%s6368_s15] ss:$0 sm:$0xff] }
 0xc6d   :  { %v5199_v48 = vpack.i.bf16 %v4359_v55, %v4291_v16  ;;  %v5194_v11 = vpack.i.bf16 %v4358_v8, %v4290_v9  ;;  %v5204_v58 = vpack.i.bf16 %v4360_v27, %v4292_v38  ;;  %v5226_v27 = vld [vmem:[%s6366_s18 + $0x18] sm:$0xff]  }
 0xc6f   :  { %5200 = vrot.lane.b32.xlu1 %v5199_v48, %s5315_s23  ;;  %5195 = vrot.lane.b32.xlu0 %v5194_v11, %s5316_s10  ;;  %v4811_v48 = vld [vmem:[%s6369_s17] ss:$0 sm:$0xff] }
 0xc73   :  { %5205 = vrot.lane.b32.xlu1 %v5204_v58, %s5317_s24 }
 0xce1   :  { %v5201_v41 = vpop.permute.xlu1 %5200  ;;  %v5196_v12 = vpop.permute.xlu0 %5195 }
 0xce2   :  { %v5198_v49 = vunpack.i.h.bf16 %v5196_v12  ;;  %v5197_v34 = vunpack.i.l.bf16 %v5196_v12  ;;  %v5203_v47 = vunpack.i.h.bf16 %v5201_v41  ;;  %v5202_v18 = vunpack.i.l.bf16 %v5201_v41 }
 0xce4   :  { %v4385_v24 = vsel %vm1012_vm2, %v4289_v6, %v5197_v34  ;;  %v4386_v32 = vsel %vm1012_vm2, %v4357_v26, %v5198_v49  ;;  %v5225_v26 = vld [vmem:[%s6366_s18 + $0x10] sm:$0xff]  }
 0xce5   :  { %v5206_v60 = vpop.permute.xlu1 %5205  ;;  %v4387_v10 = vsel %vm2154_vm5, %v4385_v24, %v5202_v18  ;;  %v4388_v62 = vsel %vm2154_vm5, %v4386_v32, %v5203_v47 }
 0xce6   :  { %v5208_v28 = vunpack.i.h.bf16 %v5206_v60  ;;  %v5207_v53 = vunpack.i.l.bf16 %v5206_v60 }
 0xce8   :  { %v4389_v61 = vsel %vm2157_vm6, %v4387_v10, %v5207_v53  ;;  %v4390_v4 = vsel %vm2157_vm6, %v4388_v62, %v5208_v28 }
 0xce9   :  { %v4391_v56 = vpack.c.bf16 %v4390_v4, %v4389_v61 }
 0xceb   :  { %5143 = vmatmul.mubr.msk.bf16.vlgmr.msra.gmra.mrb[68].mxu0 %vm111_vm1, %v4391_v56 }
 0xcec   :  { %5162 = vmatprep.mubr.msk.bf16.mxu0 %vm5306_vm0, %v5305_v0  ;;  %5155 = vmatpush3.bf16.msra.mxu0 %v5223_v37 }
 0xced   :  { %5156 = vmatprep.subr.bf16.mxu0 %v5305_v0 }
 0xcf0   :  { %5157 = vmatpush3.bf16.msra.mxu0 %v5224_v3 }
 0xcf1   :  { %5158 = vmatprep.subr.bf16.mxu0 %v5305_v0 }
 0xcf4   :  { %5159 = vmatpush3.bf16.msra.mxu0 %v5225_v26 }
 0xcf5   :  { %5160 = vmatprep.subr.bf16.mxu0 %v5305_v0 }
 0xcf8   :  { %5161 = vmatpush3.bf16.msra.mxu0 %v5226_v27 }
 0xdbe   :  { %v4452_v57 = vpop.f32.mrb[68].mxu0 }
 0xdbf   :  { %v4453_v59 = vadd.f32 %v4805_v14, %v4452_v57  ;;  %v5144_v16 = vpop.f32.mrb[69].mxu0 }
 0xdc0   :  { %v4455_v6 = vpop.f32.mrb[70].mxu0 }
 0xdc1   :  { %v4456_v9 = vadd.f32 %v4805_v14, %v4455_v6  ;;  %v5145_v38 = vpop.f32.mrb[71].mxu0  ;;  %v4459_v20 = vadd.f32 %v4453_v59, %v5898_v35 }
 0xdc3   :  { %v4461_v46 = vsel %vm111_vm1, %v4459_v20, 0.0  ;;  %v4460_v17 = vadd.f32 %v4456_v9, %v5900_v5  ;;  %v5221_v5 = vld [vmem:[%s6365_s16] sm:$0xff]  }
 0xdc4   :  { %4462 = vadd.xlane.f32.xlu0 %v4461_v46  ;;  %5147 = vmatpush3.bf16.msra.mxu1 %v5221_v5  ;;  %v4822_v5 = vld [vmem:[%s6372_s21] ss:$0 sm:$0xff] }
 0xdc5   :  { %v4464_v15 = vsel %vm111_vm1, %v4460_v17, 0.0  ;;  %5148 = vmatprep.subr.bf16.mxu1 %v5305_v0  ;;  %v4815_v0 = vld [vmem:[%s6370_s19] ss:$0 sm:$0xff] }
 0xdc6   :  { %4465 = vadd.xlane.f32.xlu1 %v4464_v15 }
 0xdc8   :  { %5149 = vmatpush3.bf16.msra.mxu1 %v5222_v23 }
 0xe51   :  { %v4463_v13 = vpop.xlane.xlu0 %4462 }
 0xe52   :  { %v4467_v2 = vmul.f32 0.03125, %v4463_v13 }
 0xe53   :  { %v4466_v63 = vpop.xlane.xlu1 %4465 }
 0xe54   :  { %v4469_v19 = vsub.f32 %v4459_v20, %v4467_v2  ;;  %v4468_v1 = vmul.f32 0.03125, %v4466_v63 }
 0xe56   :  { %v4470_v51 = vsub.f32 %v4460_v17, %v4468_v1  ;;  %v4471_v21 = vmul.f32 %v4469_v19, %v4469_v19 }
 0xe58   :  { %v4473_v22 = vsel %vm111_vm1, %v4471_v21, 0.0  ;;  %v4472_v54 = vmul.f32 %v4470_v51, %v4470_v51 }
 0xe59   :  { %4474 = vadd.xlane.f32.xlu0 %v4473_v22  ;;  %v4821_v22 = vld [vmem:[%s6371_s20] ss:$0 sm:$0xff] }
 0xe5a   :  { %v4476_v35 = vsel %vm111_vm1, %v4472_v54, 0.0 }
 0xe5d   :  { %4477 = vadd.xlane.f32.xlu0 %v4476_v35 }
 0xee6   :  { %v4475_v44 = vpop.xlane.xlu0 %4474 }
 0xee7   :  { %v4479_v29 = vmul.f32 0.03125, %v4475_v44 }
 0xee9   :  { %v4481_v30 = vadd.f32 1e-05, %v4479_v29 }
 0xeea   :  { %v4478_v7 = vpop.xlane.xlu0 %4477 }
 0xeeb   :  { %5296 = vrsqrt.f32 %v4481_v30  ;;  %v4480_v25 = vmul.f32 0.03125, %v4478_v7 }
 0xeed   :  { %v4482_v36 = vadd.f32 1e-05, %v4480_v25 }
 0xeef   :  { %5298 = vrsqrt.f32 %v4482_v36 }
 0xef5   :  { %v5297_v39 = vpop.eup %5296 }
 0xef6   :  { %v4485_v40 = vmul.f32 %v5297_v39, %v4469_v19 }
 0xef8   :  { %v4494_v45 = vmul.f32 %v4809_v42, %v4485_v40 }
 0xef9   :  { %v5299_v43 = vpop.eup %5298 }
 0xefa   :  { %v4486_v50 = vmul.f32 %v5299_v43, %v4470_v51  ;;  %v4503_v33 = vadd.f32 %v4810_v52, %v4494_v45 }
 0xefc   :  { %v4495_v31 = vmul.f32 %v4809_v42, %v4486_v50 }
 0xefe   :  { %v4504_v55 = vadd.f32 %v4810_v52, %v4495_v31 }
 0xf00   :  { %v4505_v8 = vpack.c.bf16 %v4504_v55, %v4503_v33 }
 0xf02   :  { %5151 = vmatmul.mubr.msk.bf16.vlgmr.msra.gmra.mrb[76].mxu1 %vm111_vm1, %v4505_v8 }
 0xfd5   :  { %v4566_v11 = vpop.f32.mrb[76].mxu1 }
 0xfd6   :  { %v4567_v58 = vadd.f32 %v4811_v48, %v4566_v11  ;;  %v5152_v41 = vpop.f32.mrb[77].mxu1 }
 0xfd7   :  { %v4569_v12 = vpop.f32.mrb[78].mxu1 }
 0xfd8   :  { %v4570_v49 = vadd.f32 %v4811_v48, %v4569_v12  ;;  %v5153_v34 = vpop.f32.mrb[79].mxu1  ;;  %v4573_v47 = vmax.f32 %v4567_v58, 0.0 }
 0xfda   :  { %v4574_v18 = vmax.f32 %v4570_v49, 0.0 }
 0xfdc   :  { %v4575_v24 = vpack.c.bf16 %v4574_v18, %v4573_v47 }
 0xfde   :  { %5163 = vmatmul.mubr.msk.bf16.vlgmr.msra.gmra.mrb[72].mxu0 %vm4615_vm7, %v4575_v24 }
0x10b1   :  { %v4653_v32 = vpop.f32.mrb[72].mxu0 }
0x10b2   :  { %v4654_v60 = vadd.f32 %v4815_v0, %v4653_v32  ;;  %v5164_v28 = vpop.f32.mrb[73].mxu0 }
0x10b3   :  { %v4656_v53 = vpop.f32.mrb[74].mxu0 }
0x10b4   :  { %v4657_v10 = vadd.f32 %v4815_v0, %v4656_v53  ;;  %v5165_v62 = vpop.f32.mrb[75].mxu0  ;;  %v4660_v61 = vadd.f32 %v4654_v60, %v4503_v33 }
0x10b6   :  { %v4662_v4 = vsel %vm111_vm1, %v4660_v61, 0.0  ;;  %v4661_v56 = vadd.f32 %v4657_v10, %v4504_v55 }
0x10b7   :  { %4663 = vadd.xlane.f32.xlu1 %v4662_v4 }
0x10b8   :  { %v4665_v14 = vsel %vm111_vm1, %v4661_v56, 0.0 }
0x10b9   :  { %4666 = vadd.xlane.f32.xlu0 %v4665_v14 }
0x1144   :  { %v4664_v57 = vpop.xlane.xlu1 %4663 }
0x1145   :  { %v4668_v59 = vmul.f32 0.03125, %v4664_v57 }
0x1146   :  { %v4667_v16 = vpop.xlane.xlu0 %4666 }
0x1147   :  { %v4670_v6 = vsub.f32 %v4660_v61, %v4668_v59  ;;  %v4669_v9 = vmul.f32 0.03125, %v4667_v16 }
0x1149   :  { %v4671_v38 = vsub.f32 %v4661_v56, %v4669_v9  ;;  %v4672_v20 = vmul.f32 %v4670_v6, %v4670_v6 }
0x114b   :  { %v4674_v46 = vsel %vm111_vm1, %v4672_v20, 0.0  ;;  %v4673_v17 = vmul.f32 %v4671_v38, %v4671_v38 }
0x114c   :  { %4675 = vadd.xlane.f32.xlu1 %v4674_v46 }
0x114d   :  { %v4677_v15 = vsel %vm111_vm1, %v4673_v17, 0.0 }
0x114e   :  { %4678 = vadd.xlane.f32.xlu0 %v4677_v15 }
0x11d9   :  { %v4676_v13 = vpop.xlane.xlu1 %4675 }
0x11da   :  { %v4680_v2 = vmul.f32 0.03125, %v4676_v13 }
0x11db   :  { %v4679_v63 = vpop.xlane.xlu0 %4678 }
0x11dc   :  { %v4682_v19 = vadd.f32 1e-05, %v4680_v2  ;;  %v4681_v1 = vmul.f32 0.03125, %v4679_v63 }
0x11de   :  { %5300 = vrsqrt.f32 %v4682_v19  ;;  %v4683_v51 = vadd.f32 1e-05, %v4681_v1 }
0x11e0   :  { %5302 = vrsqrt.f32 %v4683_v51 }
0x11e8   :  { %v5301_v21 = vpop.eup %5300 }
0x11e9   :  { %v4686_v54 = vmul.f32 %v5301_v21, %v4670_v6 }
0x11ea   :  { %v5303_v35 = vpop.eup %5302 }
0x11eb   :  { %v4695_v23 = vmul.f32 %v4821_v22, %v4686_v54  ;;  %v4687_v37 = vmul.f32 %v5303_v35, %v4671_v38 }
0x11ed   :  { %v4704_v3 = vadd.f32 %v4822_v5, %v4695_v23  ;;  %v4696_v44 = vmul.f32 %v4821_v22, %v4687_v37 }
0x11ef   :  { %v4825_v29 = vpack.c.bf16 %v4704_v3, %v4704_v3  ;;  %v4705_v30 = vadd.f32 %v4822_v5, %v4696_v44 }
0x11f1   :  { %4715 = vst.msk [vmem:[%s6373_s22] sm:$0xf] %vm4714_vm8, %v4825_v29  ;;  %v4826_v7 = vpack.c.bf16 %v4705_v30, %v4705_v30 }
0x11f3   :  { %4716 = vst.msk [vmem:[%s6373_s22 + $0x4] sm:$0xf] %vm4714_vm8, %v4826_v7 }

</bundles_post_ra>
